<compile_context>
chip_gen: v5e
topology: v5e:2x2
jax: 0.10.0
libtpu: 0.0.40
codegen_flags: <defaults>
</compile_context>

<pallas_src>
import jax
import jax.numpy as jnp
from jax.experimental import pallas as pl
from jax.experimental.pallas import tpu as pltpu


def gpsa_kernel(x_ref, wqkv_ref, wp_ref, pb_ref, pos_gated_ref,
                one_minus_g_ref, o_ref):
    BB, N, C = x_ref.shape            # batch block, seq, dim
    H = pos_gated_ref.shape[0]        # heads
    D = C // H
    T = BB * N
    G = H * BB

    # (BB, N, C) -> (T, C) token slab (leading-dim merge only), bf16 for MXU.
    xs = x_ref[...].reshape(T, C).astype(jnp.bfloat16)

    # One fused lane-dense projection: (T, C) @ (C, 3C) -> (T, 3C), f32 accum.
    # Column order: [q (scale folded) | k | v], each head-major (h*D + d).
    qkv = jnp.dot(xs, wqkv_ref[...], preferred_element_type=jnp.float32)

    # Head split done once with static lane slices + leading-axis stack
    # (avoids general minor-dim reshapes / 4-D transposes).
    def to_heads(col0):
        cols = [qkv[:, col0 + h * D: col0 + (h + 1) * D] for h in range(H)]
        t = jnp.stack(cols, axis=0)                       # (H, T, D)
        return t.reshape(H, BB, N, D).reshape(G, N, D).astype(jnp.bfloat16)

    qg = to_heads(0)
    kg = to_heads(C)
    vg = to_heads(2 * C)

    # Patch scores + softmax over keys (f32 math).
    s = jnp.einsum('gnd,gmd->gnm', qg, kg, preferred_element_type=jnp.float32)
    m = jnp.max(s, axis=-1, keepdims=True)
    e = jnp.exp(s - m)
    patch = e * pl.reciprocal(jnp.sum(e, axis=-1, keepdims=True), approx=True)

    # Gated mix with the precomputed (sigmoid(g) * softmax(pos)) term; the
    # final renormalization is an EXACT divide for parity with the module.
    patch4 = patch.reshape(H, BB, N, N)
    attn4 = one_minus_g_ref[...] * patch4 + pos_gated_ref[...].astype(jnp.float32)
    attn4 = attn4 / jnp.sum(attn4, axis=-1, keepdims=True)
    attn = attn4.reshape(G, N, N).astype(jnp.bfloat16)

    # Attention output, then merge heads back to channels via a minor-axis
    # concat (column order h*D + d) and one dense (T, C) @ (C, C) projection.
    y = jnp.einsum('gnm,gmd->gnd', attn, vg, preferred_element_type=jnp.float32)
    y4 = y.reshape(H, BB, N, D)
    yc = jnp.concatenate([y4[h] for h in range(H)], axis=-1)      # (BB, N, C)
    yc = yc.reshape(T, C).astype(jnp.bfloat16)

    out = jnp.dot(yc, wp_ref[...], preferred_element_type=jnp.float32) + pb_ref[...]

    if len(o_ref.shape) == 2:
        # Lane-dense store for C < 128: pack the (BB, N, C) result into
        # (BB, N*C) rows (multiple of 128 lanes) via minor-dim concat.
        out3 = out.reshape(BB, N, C)
        flat = jnp.concatenate([out3[:, n, :] for n in range(N)], axis=-1)
        o_ref[...] = flat.astype(o_ref.dtype)
    else:
        o_ref[...] = out.reshape(BB, N, C).astype(o_ref.dtype)


def _rel_pos_scores(N, pos_w, pos_b):
    # rel_indices: (N, N, 2) = [signed offset, |offset|]; pos_proj -> (H, N, N)
    idx = jnp.arange(N, dtype=jnp.float32)
    rel = idx[:, None] - idx[None, :]
    rel_ind = jnp.stack([rel, jnp.abs(rel)], axis=-1)             # (N, N, 2)
    return jnp.einsum('nmk,hk->hnm', rel_ind, pos_w) + pos_b[:, None, None]


def _estimate_vmem_bytes(block_b, N, C, H):
    # Rough per-grid-step VMEM footprint used to cap block_b.
    D = C // H
    T = block_b * N
    G = H * block_b
    io = 2 * 2 * T * C * 4                       # x + out blocks, double-buffered
    weights = 4 * C * C * 2 + C * 4 + H * N * N * 2 + H * 4
    proj = T * 3 * C * 4 + 3 * G * N * D * 2     # fused qkv (f32) + bf16 head copies
    scores = 3 * G * N * N * 4                   # s / patch / attn live as f32
    misc = G * N * D * 4 + T * C * (4 + 2)
    return io + weights + proj + scores + misc


def gpsa1d_forward(x, params, num_heads, *, block_b=None,
                   vmem_limit_bytes=32 * 1024 * 1024, min_grid_steps=1):
    """GPSA1D forward.  Set min_grid_steps=2 on v7x (2 TensorCores); leave 1 on
    v5e/v6e (serial grid).  vmem_limit_bytes=32 MiB is safe on all generations
    (incl. v7x's 64 MiB VMEM); raise it on v5e/v6e to allow fatter blocks."""
    B, N, C = x.shape
    H = num_heads
    D = C // H
    scale = D ** -0.5

    # ---- batch-invariant precompute, hoisted out of the kernel ----
    pos_raw = _rel_pos_scores(N, params['pos_w'], params['pos_b'])       # (H, N, N)
    g = jax.nn.sigmoid(params['gating']).astype(jnp.float32)            # (H,)
    pos_gated = g[:, None, None] * jax.nn.softmax(pos_raw, axis=-1)
    pos_gated = pos_gated[:, None].astype(jnp.bfloat16)                 # (H, 1, N, N)
    one_minus_g = (1.0 - g).reshape(H, 1, 1, 1)                         # (H, 1, 1, 1)

    # One stacked (C, 3C) projection weight [q | k | v] (scale folded into q),
    # shipped in bf16; proj weight stays in its natural (C, C) layout.
    wqkv = jnp.concatenate(
        [params['qk_w'][:, :C] * scale, params['qk_w'][:, C:], params['v_w']],
        axis=1).astype(jnp.bfloat16)                                    # (C, 3C)
    wp = params['proj_w'].astype(jnp.bfloat16)                          # (C, C)
    pb = params['proj_b'].reshape(1, C).astype(jnp.float32)

    # ---- VMEM-aware batch blocking: target 256-512 token rows per step ----
    if block_b is None:
        target_rows = 512
        block_b = max(1, min(B, max(1, target_rows // max(N, 1))))
        budget = int(0.8 * vmem_limit_bytes)
        while block_b > 1 and _estimate_vmem_bytes(block_b, N, C, H) > budget:
            block_b -= 1
        if min_grid_steps > 1:
            block_b = min(block_b, max(1, -(-B // min_grid_steps)))
        if B % block_b != 0:
            # Prefer a nearby divisor of B to avoid wasted compute on pad rows.
            for cand in range(block_b, max(1, block_b // 2) - 1, -1):
                if B % cand == 0:
                    block_b = cand
                    break
    nb = pl.cdiv(B, block_b)
    Bp = nb * block_b
    xp = x if Bp == B else jnp.pad(x, ((0, Bp - B), (0, 0), (0, 0)))

    # Lane-dense output slab when C < 128 (masked-store avoidance).
    flatten_out = (C % 128 != 0) and ((N * C) % 128 == 0) and (N <= 256) \
        and (nb == 1 or block_b % 8 == 0)

    def call(single_buffer_weights):
        def const_spec(shape):
            idx = lambda b, _nd=len(shape): (0,) * _nd
            if single_buffer_weights:
                # Grid-invariant inputs: no need for double buffers.
                return pl.BlockSpec(shape, idx, pipeline_mode=pl.Buffered(1))
            return pl.BlockSpec(shape, idx)

        in_specs = [
            pl.BlockSpec((block_b, N, C), lambda b: (b, 0, 0)),   # x block
            const_spec((C, 3 * C)),                               # Wqkv (bf16)
            const_spec((C, C)),                                   # Wproj (bf16)
            const_spec((1, C)),                                   # proj bias
            const_spec((H, 1, N, N)),                             # g*softmax(pos) bf16
            const_spec((H, 1, 1, 1)),                             # 1 - sigmoid(g)
        ]
        if flatten_out:
            out_shape = jax.ShapeDtypeStruct((Bp, N * C), x.dtype)
            out_spec = pl.BlockSpec((block_b, N * C), lambda b: (b, 0))
        else:
            out_shape = jax.ShapeDtypeStruct((Bp, N, C), x.dtype)
            out_spec = pl.BlockSpec((block_b, N, C), lambda b: (b, 0, 0))

        return pl.pallas_call(
            gpsa_kernel,
            out_shape=out_shape,
            grid=(nb,),
            in_specs=in_specs,
            out_specs=out_spec,
            compiler_params=pltpu.CompilerParams(
                dimension_semantics=("parallel",),
                vmem_limit_bytes=vmem_limit_bytes),
        )(xp, wqkv, wp, pb, pos_gated, one_minus_g)

    try:
        out = call(True)
    except Exception:
        # Fallback if Buffered(1) single-buffering is unsupported in this jax.
        out = call(False)

    if flatten_out:
        out = out.reshape(Bp, N, C)
    return out[:B] if Bp != B else out


def gpsa1d_reference(x, params, num_heads):
    """Pure-JAX f32 reference mirroring the PyTorch forward exactly."""
    B, N, C = x.shape
    D = C // num_heads
    scale = D ** -0.5
    qk = (x @ params['qk_w']).reshape(B, N, 2, num_heads, D).transpose(2, 0, 3, 1, 4)
    q, k = qk[0], qk[1]                                              # (B, H, N, D)
    v = (x @ params['v_w']).reshape(B, N, num_heads, D).transpose(0, 2, 1, 3)
    pos = _rel_pos_scores(N, params['pos_w'], params['pos_b'])       # (H, N, N)
    patch = jax.nn.softmax(jnp.einsum('bhnd,bhmd->bhnm', q, k) * scale, axis=-1)
    pos_sm = jax.nn.softmax(pos, axis=-1)[None]
    g = jax.nn.sigmoid(params['gating'])[None, :, None, None]
    attn = (1.0 - g) * patch + g * pos_sm
    attn = attn / attn.sum(-1, keepdims=True)
    out = jnp.einsum('bhnm,bhmd->bhnd', attn, v).transpose(0, 2, 1, 3).reshape(B, N, C)
    return out @ params['proj_w'] + params['proj_b']


if __name__ == "__main__":
    # dim=32, num_patches=8, num_heads=8 -> head_dim=4
    B, N, C, H = 2, 8, 32, 8
    key = jax.random.PRNGKey(0)
    keys = jax.random.split(key, 8)
    params = {
        'qk_w': jax.random.normal(keys[0], (C, 2 * C), jnp.float32) * 0.05,
        'v_w': jax.random.normal(keys[1], (C, C), jnp.float32) * 0.05,
        'proj_w': jax.random.normal(keys[2], (C, C), jnp.float32) * 0.05,
        'proj_b': jax.random.normal(keys[3], (C,), jnp.float32) * 0.05,
        'pos_w': jax.random.normal(keys[4], (H, 2), jnp.float32) * 0.5,
        'pos_b': jax.random.normal(keys[5], (H,), jnp.float32) * 0.5,
        'gating': jnp.ones((H,), jnp.float32),   # matches nn.Parameter(torch.ones(H))
    }
    x = jax.random.normal(keys[6], (B, N, C), jnp.float32)

    out = gpsa1d_forward(x, params, H)
    jax.block_until_ready(out)

    ref = gpsa1d_reference(x, params, H)
    assert out.shape == (B, N, C)
    err = float(jnp.max(jnp.abs(out - ref)))
    # bf16 MXU operands (f32 accumulation) + one approx reciprocal dominate the
    # deviation from the exact f32 reference; 2e-2 leaves ample margin.
    assert jnp.allclose(out, ref, atol=2e-2, rtol=2e-2), err
    print("KERNEL_OK")
</pallas_src>

<mosaic_0001>
module attributes {stable_mosaic.version = 11 : i64} {
  func.func @gpsa_kernel(%arg0: i32, %arg1: memref<2x8x32xf32, #tpu.memory_space<vmem>>, %arg2: memref<32x96xbf16, #tpu.memory_space<vmem>>, %arg3: memref<32x32xbf16, #tpu.memory_space<vmem>>, %arg4: memref<1x32xf32, #tpu.memory_space<vmem>>, %arg5: memref<8x1x8x8xbf16, #tpu.memory_space<vmem>>, %arg6: memref<8x1x1x1xf32, #tpu.memory_space<vmem>>, %arg7: memref<2x256xf32, #tpu.memory_space<vmem>>) attributes {dimension_semantics = [#tpu.dimension_semantics<parallel>], iteration_bounds = array<i64: 1>, scalar_prefetch = 0 : i64, scratch_operands = 0 : i64, tpu.core_type = #tpu.core_type<tc>, window_params = [{transform_indices = @transform_0, window_bounds = array<i64: 2, 8, 32>}, {pipeline_mode = #tpu.pipeline_mode<synchronous>, transform_indices = @transform_1, window_bounds = array<i64: 32, 96>}, {pipeline_mode = #tpu.pipeline_mode<synchronous>, transform_indices = @transform_2, window_bounds = array<i64: 32, 32>}, {pipeline_mode = #tpu.pipeline_mode<synchronous>, transform_indices = @transform_3, window_bounds = array<i64: 1, 32>}, {pipeline_mode = #tpu.pipeline_mode<synchronous>, transform_indices = @transform_4, window_bounds = array<i64: 8, 1, 8, 8>}, {pipeline_mode = #tpu.pipeline_mode<synchronous>, transform_indices = @transform_5, window_bounds = array<i64: 8, 1, 1, 1>}, {transform_indices = @transform_6, window_bounds = array<i64: 2, 256>}]} {
    %c0 = arith.constant 0 : index
    %c0_0 = arith.constant 0 : index
    %c0_1 = arith.constant 0 : index
    %0 = vector.load %arg1[%c0, %c0_0, %c0_1] : memref<2x8x32xf32, #tpu.memory_space<vmem>>, vector<2x8x32xf32>
    %1 = vector.shape_cast %0 : vector<2x8x32xf32> to vector<16x32xf32>
    %2 = arith.truncf %1 : vector<16x32xf32> to vector<16x32xbf16>
    %c0_2 = arith.constant 0 : index
    %c0_3 = arith.constant 0 : index
    %3 = vector.load %arg2[%c0_2, %c0_3] : memref<32x96xbf16, #tpu.memory_space<vmem>>, vector<32x96xbf16>
    %cst = arith.constant dense<0.000000e+00> : vector<16x96xf32>
    %4 = tpu.matmul %2, %3, %cst {dimension_numbers = #tpu.dot_dimension_numbers<[1], [0], [0], [1], [0, 0, 1, 1], [], []>} : vector<16x32xbf16>, vector<32x96xbf16>, vector<16x96xf32> -> vector<16x96xf32>
    %5 = vector.extract_strided_slice %4 {offsets = [0, 0], sizes = [16, 4], strides = [1, 1]} : vector<16x96xf32> to vector<16x4xf32>
    %6 = vector.extract_strided_slice %4 {offsets = [0, 4], sizes = [16, 4], strides = [1, 1]} : vector<16x96xf32> to vector<16x4xf32>
    %7 = vector.extract_strided_slice %4 {offsets = [0, 8], sizes = [16, 4], strides = [1, 1]} : vector<16x96xf32> to vector<16x4xf32>
    %8 = vector.extract_strided_slice %4 {offsets = [0, 12], sizes = [16, 4], strides = [1, 1]} : vector<16x96xf32> to vector<16x4xf32>
    %9 = vector.extract_strided_slice %4 {offsets = [0, 16], sizes = [16, 4], strides = [1, 1]} : vector<16x96xf32> to vector<16x4xf32>
    %10 = vector.extract_strided_slice %4 {offsets = [0, 20], sizes = [16, 4], strides = [1, 1]} : vector<16x96xf32> to vector<16x4xf32>
    %11 = vector.extract_strided_slice %4 {offsets = [0, 24], sizes = [16, 4], strides = [1, 1]} : vector<16x96xf32> to vector<16x4xf32>
    %12 = vector.extract_strided_slice %4 {offsets = [0, 28], sizes = [16, 4], strides = [1, 1]} : vector<16x96xf32> to vector<16x4xf32>
    %13 = vector.shape_cast %5 : vector<16x4xf32> to vector<1x16x4xf32>
    %14 = vector.shape_cast %6 : vector<16x4xf32> to vector<1x16x4xf32>
    %15 = vector.shape_cast %7 : vector<16x4xf32> to vector<1x16x4xf32>
    %16 = vector.shape_cast %8 : vector<16x4xf32> to vector<1x16x4xf32>
    %17 = vector.shape_cast %9 : vector<16x4xf32> to vector<1x16x4xf32>
    %18 = vector.shape_cast %10 : vector<16x4xf32> to vector<1x16x4xf32>
    %19 = vector.shape_cast %11 : vector<16x4xf32> to vector<1x16x4xf32>
    %20 = vector.shape_cast %12 : vector<16x4xf32> to vector<1x16x4xf32>
    %21 = tpu.concatenate %13, %14, %15, %16, %17, %18, %19, %20 in 0 : vector<1x16x4xf32>, vector<1x16x4xf32>, vector<1x16x4xf32>, vector<1x16x4xf32>, vector<1x16x4xf32>, vector<1x16x4xf32>, vector<1x16x4xf32>, vector<1x16x4xf32> -> vector<8x16x4xf32>
    %22 = vector.shape_cast %21 : vector<8x16x4xf32> to vector<8x2x8x4xf32>
    %23 = vector.shape_cast %22 : vector<8x2x8x4xf32> to vector<16x8x4xf32>
    %24 = arith.truncf %23 : vector<16x8x4xf32> to vector<16x8x4xbf16>
    %25 = vector.extract_strided_slice %4 {offsets = [0, 32], sizes = [16, 4], strides = [1, 1]} : vector<16x96xf32> to vector<16x4xf32>
    %26 = vector.extract_strided_slice %4 {offsets = [0, 36], sizes = [16, 4], strides = [1, 1]} : vector<16x96xf32> to vector<16x4xf32>
    %27 = vector.extract_strided_slice %4 {offsets = [0, 40], sizes = [16, 4], strides = [1, 1]} : vector<16x96xf32> to vector<16x4xf32>
    %28 = vector.extract_strided_slice %4 {offsets = [0, 44], sizes = [16, 4], strides = [1, 1]} : vector<16x96xf32> to vector<16x4xf32>
    %29 = vector.extract_strided_slice %4 {offsets = [0, 48], sizes = [16, 4], strides = [1, 1]} : vector<16x96xf32> to vector<16x4xf32>
    %30 = vector.extract_strided_slice %4 {offsets = [0, 52], sizes = [16, 4], strides = [1, 1]} : vector<16x96xf32> to vector<16x4xf32>
    %31 = vector.extract_strided_slice %4 {offsets = [0, 56], sizes = [16, 4], strides = [1, 1]} : vector<16x96xf32> to vector<16x4xf32>
    %32 = vector.extract_strided_slice %4 {offsets = [0, 60], sizes = [16, 4], strides = [1, 1]} : vector<16x96xf32> to vector<16x4xf32>
    %33 = vector.shape_cast %25 : vector<16x4xf32> to vector<1x16x4xf32>
    %34 = vector.shape_cast %26 : vector<16x4xf32> to vector<1x16x4xf32>
    %35 = vector.shape_cast %27 : vector<16x4xf32> to vector<1x16x4xf32>
    %36 = vector.shape_cast %28 : vector<16x4xf32> to vector<1x16x4xf32>
    %37 = vector.shape_cast %29 : vector<16x4xf32> to vector<1x16x4xf32>
    %38 = vector.shape_cast %30 : vector<16x4xf32> to vector<1x16x4xf32>
    %39 = vector.shape_cast %31 : vector<16x4xf32> to vector<1x16x4xf32>
    %40 = vector.shape_cast %32 : vector<16x4xf32> to vector<1x16x4xf32>
    %41 = tpu.concatenate %33, %34, %35, %36, %37, %38, %39, %40 in 0 : vector<1x16x4xf32>, vector<1x16x4xf32>, vector<1x16x4xf32>, vector<1x16x4xf32>, vector<1x16x4xf32>, vector<1x16x4xf32>, vector<1x16x4xf32>, vector<1x16x4xf32> -> vector<8x16x4xf32>
    %42 = vector.shape_cast %41 : vector<8x16x4xf32> to vector<8x2x8x4xf32>
    %43 = vector.shape_cast %42 : vector<8x2x8x4xf32> to vector<16x8x4xf32>
    %44 = arith.truncf %43 : vector<16x8x4xf32> to vector<16x8x4xbf16>
    %45 = vector.extract_strided_slice %4 {offsets = [0, 64], sizes = [16, 4], strides = [1, 1]} : vector<16x96xf32> to vector<16x4xf32>
    %46 = vector.extract_strided_slice %4 {offsets = [0, 68], sizes = [16, 4], strides = [1, 1]} : vector<16x96xf32> to vector<16x4xf32>
    %47 = vector.extract_strided_slice %4 {offsets = [0, 72], sizes = [16, 4], strides = [1, 1]} : vector<16x96xf32> to vector<16x4xf32>
    %48 = vector.extract_strided_slice %4 {offsets = [0, 76], sizes = [16, 4], strides = [1, 1]} : vector<16x96xf32> to vector<16x4xf32>
    %49 = vector.extract_strided_slice %4 {offsets = [0, 80], sizes = [16, 4], strides = [1, 1]} : vector<16x96xf32> to vector<16x4xf32>
    %50 = vector.extract_strided_slice %4 {offsets = [0, 84], sizes = [16, 4], strides = [1, 1]} : vector<16x96xf32> to vector<16x4xf32>
    %51 = vector.extract_strided_slice %4 {offsets = [0, 88], sizes = [16, 4], strides = [1, 1]} : vector<16x96xf32> to vector<16x4xf32>
    %52 = vector.extract_strided_slice %4 {offsets = [0, 92], sizes = [16, 4], strides = [1, 1]} : vector<16x96xf32> to vector<16x4xf32>
    %53 = vector.shape_cast %45 : vector<16x4xf32> to vector<1x16x4xf32>
    %54 = vector.shape_cast %46 : vector<16x4xf32> to vector<1x16x4xf32>
    %55 = vector.shape_cast %47 : vector<16x4xf32> to vector<1x16x4xf32>
    %56 = vector.shape_cast %48 : vector<16x4xf32> to vector<1x16x4xf32>
    %57 = vector.shape_cast %49 : vector<16x4xf32> to vector<1x16x4xf32>
    %58 = vector.shape_cast %50 : vector<16x4xf32> to vector<1x16x4xf32>
    %59 = vector.shape_cast %51 : vector<16x4xf32> to vector<1x16x4xf32>
    %60 = vector.shape_cast %52 : vector<16x4xf32> to vector<1x16x4xf32>
    %61 = tpu.concatenate %53, %54, %55, %56, %57, %58, %59, %60 in 0 : vector<1x16x4xf32>, vector<1x16x4xf32>, vector<1x16x4xf32>, vector<1x16x4xf32>, vector<1x16x4xf32>, vector<1x16x4xf32>, vector<1x16x4xf32>, vector<1x16x4xf32> -> vector<8x16x4xf32>
    %62 = vector.shape_cast %61 : vector<8x16x4xf32> to vector<8x2x8x4xf32>
    %63 = vector.shape_cast %62 : vector<8x2x8x4xf32> to vector<16x8x4xf32>
    %64 = arith.truncf %63 : vector<16x8x4xf32> to vector<16x8x4xbf16>
    "tpu.trace_start"() <{level = 10 : i32, message = "gnd,gmd->gnm"}> : () -> ()
    %cst_4 = arith.constant dense<0.000000e+00> : vector<16x8x8xf32>
    %65 = tpu.matmul %24, %44, %cst_4 {dimension_numbers = #tpu.dot_dimension_numbers<[2], [2], [1], [1], [0, 0, 0, 1, 1, 1], [0], [0]>} : vector<16x8x4xbf16>, vector<16x8x4xbf16>, vector<16x8x8xf32> -> vector<16x8x8xf32>
    "tpu.trace_stop"() : () -> ()
    %cst_5 = arith.constant dense<0xFF800000> : vector<16x8xf32>
    %66 = vector.multi_reduction <maximumf>, %65, %cst_5 [2] : vector<16x8x8xf32> to vector<16x8xf32>
    %67 = vector.shape_cast %66 : vector<16x8xf32> to vector<16x8x1xf32>
    %68 = vector.broadcast %67 : vector<16x8x1xf32> to vector<16x8x8xf32>
    %69 = arith.subf %65, %68 : vector<16x8x8xf32>
    %70 = math.exp %69 : vector<16x8x8xf32>
    %cst_6 = arith.constant dense<0.000000e+00> : vector<16x8xf32>
    %71 = vector.multi_reduction <add>, %70, %cst_6 [2] : vector<16x8x8xf32> to vector<16x8xf32>
    %72 = vector.shape_cast %71 : vector<16x8xf32> to vector<16x8x1xf32>
    %73 = tpu.reciprocal %72 {approx = true} : vector<16x8x1xf32> -> vector<16x8x1xf32>
    %74 = vector.broadcast %73 : vector<16x8x1xf32> to vector<16x8x8xf32>
    %75 = arith.mulf %70, %74 : vector<16x8x8xf32>
    %76 = vector.shape_cast %75 : vector<16x8x8xf32> to vector<8x2x8x8xf32>
    %c0_7 = arith.constant 0 : index
    %c0_8 = arith.constant 0 : index
    %c0_9 = arith.constant 0 : index
    %c0_10 = arith.constant 0 : index
    %77 = vector.load %arg6[%c0_7, %c0_8, %c0_9, %c0_10] : memref<8x1x1x1xf32, #tpu.memory_space<vmem>>, vector<8x1x1x1xf32>
    %78 = vector.broadcast %77 : vector<8x1x1x1xf32> to vector<8x2x8x8xf32>
    %79 = arith.mulf %78, %76 : vector<8x2x8x8xf32>
    %c0_11 = arith.constant 0 : index
    %c0_12 = arith.constant 0 : index
    %c0_13 = arith.constant 0 : index
    %c0_14 = arith.constant 0 : index
    %80 = vector.load %arg5[%c0_11, %c0_12, %c0_13, %c0_14] : memref<8x1x8x8xbf16, #tpu.memory_space<vmem>>, vector<8x1x8x8xbf16>
    %81 = arith.extf %80 : vector<8x1x8x8xbf16> to vector<8x1x8x8xf32>
    %82 = vector.broadcast %81 : vector<8x1x8x8xf32> to vector<8x2x8x8xf32>
    %83 = arith.addf %79, %82 : vector<8x2x8x8xf32>
    %cst_15 = arith.constant dense<0.000000e+00> : vector<8x2x8xf32>
    %84 = vector.multi_reduction <add>, %83, %cst_15 [3] : vector<8x2x8x8xf32> to vector<8x2x8xf32>
    %85 = vector.shape_cast %84 : vector<8x2x8xf32> to vector<8x2x8x1xf32>
    %86 = vector.broadcast %85 : vector<8x2x8x1xf32> to vector<8x2x8x8xf32>
    %87 = arith.divf %83, %86 : vector<8x2x8x8xf32>
    %88 = vector.shape_cast %87 : vector<8x2x8x8xf32> to vector<16x8x8xf32>
    %89 = arith.truncf %88 : vector<16x8x8xf32> to vector<16x8x8xbf16>
    "tpu.trace_start"() <{level = 10 : i32, message = "gnm,gmd->gnd"}> : () -> ()
    %cst_16 = arith.constant dense<0.000000e+00> : vector<16x8x4xf32>
    %90 = tpu.matmul %89, %64, %cst_16 {dimension_numbers = #tpu.dot_dimension_numbers<[2], [1], [1], [2], [0, 0, 0, 1, 1, 2], [0], [0]>} : vector<16x8x8xbf16>, vector<16x8x4xbf16>, vector<16x8x4xf32> -> vector<16x8x4xf32>
    "tpu.trace_stop"() : () -> ()
    %91 = vector.shape_cast %90 : vector<16x8x4xf32> to vector<8x2x8x4xf32>
    %92 = vector.extract_strided_slice %91 {offsets = [0, 0, 0, 0], sizes = [1, 2, 8, 4], strides = [1, 1, 1, 1]} : vector<8x2x8x4xf32> to vector<1x2x8x4xf32>
    %93 = vector.shape_cast %92 : vector<1x2x8x4xf32> to vector<2x8x4xf32>
    %94 = vector.extract_strided_slice %91 {offsets = [1, 0, 0, 0], sizes = [1, 2, 8, 4], strides = [1, 1, 1, 1]} : vector<8x2x8x4xf32> to vector<1x2x8x4xf32>
    %95 = vector.shape_cast %94 : vector<1x2x8x4xf32> to vector<2x8x4xf32>
    %96 = vector.extract_strided_slice %91 {offsets = [2, 0, 0, 0], sizes = [1, 2, 8, 4], strides = [1, 1, 1, 1]} : vector<8x2x8x4xf32> to vector<1x2x8x4xf32>
    %97 = vector.shape_cast %96 : vector<1x2x8x4xf32> to vector<2x8x4xf32>
    %98 = vector.extract_strided_slice %91 {offsets = [3, 0, 0, 0], sizes = [1, 2, 8, 4], strides = [1, 1, 1, 1]} : vector<8x2x8x4xf32> to vector<1x2x8x4xf32>
    %99 = vector.shape_cast %98 : vector<1x2x8x4xf32> to vector<2x8x4xf32>
    %100 = vector.extract_strided_slice %91 {offsets = [4, 0, 0, 0], sizes = [1, 2, 8, 4], strides = [1, 1, 1, 1]} : vector<8x2x8x4xf32> to vector<1x2x8x4xf32>
    %101 = vector.shape_cast %100 : vector<1x2x8x4xf32> to vector<2x8x4xf32>
    %102 = vector.extract_strided_slice %91 {offsets = [5, 0, 0, 0], sizes = [1, 2, 8, 4], strides = [1, 1, 1, 1]} : vector<8x2x8x4xf32> to vector<1x2x8x4xf32>
    %103 = vector.shape_cast %102 : vector<1x2x8x4xf32> to vector<2x8x4xf32>
    %104 = vector.extract_strided_slice %91 {offsets = [6, 0, 0, 0], sizes = [1, 2, 8, 4], strides = [1, 1, 1, 1]} : vector<8x2x8x4xf32> to vector<1x2x8x4xf32>
    %105 = vector.shape_cast %104 : vector<1x2x8x4xf32> to vector<2x8x4xf32>
    %106 = vector.extract_strided_slice %91 {offsets = [7, 0, 0, 0], sizes = [1, 2, 8, 4], strides = [1, 1, 1, 1]} : vector<8x2x8x4xf32> to vector<1x2x8x4xf32>
    %107 = vector.shape_cast %106 : vector<1x2x8x4xf32> to vector<2x8x4xf32>
    %108 = tpu.concatenate %93, %95, %97, %99, %101, %103, %105, %107 in 2 : vector<2x8x4xf32>, vector<2x8x4xf32>, vector<2x8x4xf32>, vector<2x8x4xf32>, vector<2x8x4xf32>, vector<2x8x4xf32>, vector<2x8x4xf32>, vector<2x8x4xf32> -> vector<2x8x32xf32>
    %109 = vector.shape_cast %108 : vector<2x8x32xf32> to vector<16x32xf32>
    %110 = arith.truncf %109 : vector<16x32xf32> to vector<16x32xbf16>
    %c0_17 = arith.constant 0 : index
    %c0_18 = arith.constant 0 : index
    %111 = vector.load %arg3[%c0_17, %c0_18] : memref<32x32xbf16, #tpu.memory_space<vmem>>, vector<32x32xbf16>
    %cst_19 = arith.constant dense<0.000000e+00> : vector<16x32xf32>
    %112 = tpu.matmul %110, %111, %cst_19 {dimension_numbers = #tpu.dot_dimension_numbers<[1], [0], [0], [1], [0, 0, 1, 1], [], []>} : vector<16x32xbf16>, vector<32x32xbf16>, vector<16x32xf32> -> vector<16x32xf32>
    %c0_20 = arith.constant 0 : index
    %c0_21 = arith.constant 0 : index
    %113 = vector.load %arg4[%c0_20, %c0_21] : memref<1x32xf32, #tpu.memory_space<vmem>>, vector<1x32xf32>
    %114 = vector.broadcast %113 : vector<1x32xf32> to vector<16x32xf32>
    %115 = arith.addf %112, %114 : vector<16x32xf32>
    %116 = vector.shape_cast %115 : vector<16x32xf32> to vector<2x8x32xf32>
    %117 = vector.extract_strided_slice %116 {offsets = [0, 0, 0], sizes = [2, 1, 32], strides = [1, 1, 1]} : vector<2x8x32xf32> to vector<2x1x32xf32>
    %118 = vector.shape_cast %117 : vector<2x1x32xf32> to vector<2x32xf32>
    %119 = vector.extract_strided_slice %116 {offsets = [0, 1, 0], sizes = [2, 1, 32], strides = [1, 1, 1]} : vector<2x8x32xf32> to vector<2x1x32xf32>
    %120 = vector.shape_cast %119 : vector<2x1x32xf32> to vector<2x32xf32>
    %121 = vector.extract_strided_slice %116 {offsets = [0, 2, 0], sizes = [2, 1, 32], strides = [1, 1, 1]} : vector<2x8x32xf32> to vector<2x1x32xf32>
    %122 = vector.shape_cast %121 : vector<2x1x32xf32> to vector<2x32xf32>
    %123 = vector.extract_strided_slice %116 {offsets = [0, 3, 0], sizes = [2, 1, 32], strides = [1, 1, 1]} : vector<2x8x32xf32> to vector<2x1x32xf32>
    %124 = vector.shape_cast %123 : vector<2x1x32xf32> to vector<2x32xf32>
    %125 = vector.extract_strided_slice %116 {offsets = [0, 4, 0], sizes = [2, 1, 32], strides = [1, 1, 1]} : vector<2x8x32xf32> to vector<2x1x32xf32>
    %126 = vector.shape_cast %125 : vector<2x1x32xf32> to vector<2x32xf32>
    %127 = vector.extract_strided_slice %116 {offsets = [0, 5, 0], sizes = [2, 1, 32], strides = [1, 1, 1]} : vector<2x8x32xf32> to vector<2x1x32xf32>
    %128 = vector.shape_cast %127 : vector<2x1x32xf32> to vector<2x32xf32>
    %129 = vector.extract_strided_slice %116 {offsets = [0, 6, 0], sizes = [2, 1, 32], strides = [1, 1, 1]} : vector<2x8x32xf32> to vector<2x1x32xf32>
    %130 = vector.shape_cast %129 : vector<2x1x32xf32> to vector<2x32xf32>
    %131 = vector.extract_strided_slice %116 {offsets = [0, 7, 0], sizes = [2, 1, 32], strides = [1, 1, 1]} : vector<2x8x32xf32> to vector<2x1x32xf32>
    %132 = vector.shape_cast %131 : vector<2x1x32xf32> to vector<2x32xf32>
    %133 = tpu.concatenate %118, %120, %122, %124, %126, %128, %130, %132 in 1 : vector<2x32xf32>, vector<2x32xf32>, vector<2x32xf32>, vector<2x32xf32>, vector<2x32xf32>, vector<2x32xf32>, vector<2x32xf32>, vector<2x32xf32> -> vector<2x256xf32>
    %c0_22 = arith.constant 0 : index
    %c0_23 = arith.constant 0 : index
    %134 = vector.load %arg7[%c0_22, %c0_23] : memref<2x256xf32, #tpu.memory_space<vmem>>, vector<2x256xf32>
    tpu.vector_store %arg7[%c0_22, %c0_23], %133 {strides = array<i32>} : memref<2x256xf32, #tpu.memory_space<vmem>>, vector<2x256xf32>,
    return
  }
  func.func @transform_0(%arg0: i32) -> (i32, i32, i32) {
    %c0_i32 = arith.constant 0 : i32
    %c0_i32_0 = arith.constant 0 : i32
    %c0_i32_1 = arith.constant 0 : i32
    return %arg0, %c0_i32, %c0_i32_0 : i32, i32, i32
  }
  func.func @transform_1(%arg0: i32) -> (i32, i32) {
    %c0_i32 = arith.constant 0 : i32
    %c0_i32_0 = arith.constant 0 : i32
    %c0_i32_1 = arith.constant 0 : i32
    return %c0_i32, %c0_i32_0 : i32, i32
  }
  func.func @transform_2(%arg0: i32) -> (i32, i32) {
    %c0_i32 = arith.constant 0 : i32
    %c0_i32_0 = arith.constant 0 : i32
    %c0_i32_1 = arith.constant 0 : i32
    return %c0_i32, %c0_i32_0 : i32, i32
  }
  func.func @transform_3(%arg0: i32) -> (i32, i32) {
    %c0_i32 = arith.constant 0 : i32
    %c0_i32_0 = arith.constant 0 : i32
    %c0_i32_1 = arith.constant 0 : i32
    return %c0_i32, %c0_i32_0 : i32, i32
  }
  func.func @transform_4(%arg0: i32) -> (i32, i32, i32, i32) {
    %c0_i32 = arith.constant 0 : i32
    %c0_i32_0 = arith.constant 0 : i32
    %c0_i32_1 = arith.constant 0 : i32
    %c0_i32_2 = arith.constant 0 : i32
    %c0_i32_3 = arith.constant 0 : i32
    return %c0_i32, %c0_i32_0, %c0_i32_1, %c0_i32_2 : i32, i32, i32, i32
  }
  func.func @transform_5(%arg0: i32) -> (i32, i32, i32, i32) {
    %c0_i32 = arith.constant 0 : i32
    %c0_i32_0 = arith.constant 0 : i32
    %c0_i32_1 = arith.constant 0 : i32
    %c0_i32_2 = arith.constant 0 : i32
    %c0_i32_3 = arith.constant 0 : i32
    return %c0_i32, %c0_i32_0, %c0_i32_1, %c0_i32_2 : i32, i32, i32, i32
  }
  func.func @transform_6(%arg0: i32) -> (i32, i32) {
    %c0_i32 = arith.constant 0 : i32
    %c0_i32_0 = arith.constant 0 : i32
    return %arg0, %c0_i32 : i32, i32
  }
}

module attributes {stable_mosaic.version = 11 : i64} {
  func.func @gpsa_kernel(%arg0: i32, %arg1: memref<2x8x32xf32, #tpu.memory_space<vmem>>, %arg2: memref<32x96xbf16, #tpu.memory_space<vmem>>, %arg3: memref<32x32xbf16, #tpu.memory_space<vmem>>, %arg4: memref<1x32xf32, #tpu.memory_space<vmem>>, %arg5: memref<8x1x8x8xbf16, #tpu.memory_space<vmem>>, %arg6: memref<8x1x1x1xf32, #tpu.memory_space<vmem>>, %arg7: memref<2x256xf32, #tpu.memory_space<vmem>>) attributes {dimension_semantics = [#tpu.dimension_semantics<parallel>], iteration_bounds = array<i64: 1>, scalar_prefetch = 0 : i64, scratch_operands = 0 : i64, tpu.core_type = #tpu.core_type<tc>, window_params = [{transform_indices = @transform_0, window_bounds = array<i64: 2, 8, 32>}, {pipeline_mode = #tpu.pipeline_mode<synchronous>, transform_indices = @transform_1, window_bounds = array<i64: 32, 96>}, {pipeline_mode = #tpu.pipeline_mode<synchronous>, transform_indices = @transform_2, window_bounds = array<i64: 32, 32>}, {pipeline_mode = #tpu.pipeline_mode<synchronous>, transform_indices = @transform_3, window_bounds = array<i64: 1, 32>}, {pipeline_mode = #tpu.pipeline_mode<synchronous>, transform_indices = @transform_4, window_bounds = array<i64: 8, 1, 8, 8>}, {pipeline_mode = #tpu.pipeline_mode<synchronous>, transform_indices = @transform_5, window_bounds = array<i64: 8, 1, 1, 1>}, {transform_indices = @transform_6, window_bounds = array<i64: 2, 256>}]} {
    %c0 = arith.constant 0 : index
    %c0_0 = arith.constant 0 : index
    %c0_1 = arith.constant 0 : index
    %0 = vector.load %arg1[%c0, %c0_0, %c0_1] : memref<2x8x32xf32, #tpu.memory_space<vmem>>, vector<2x8x32xf32>
    %1 = vector.shape_cast %0 : vector<2x8x32xf32> to vector<16x32xf32>
    %2 = arith.truncf %1 : vector<16x32xf32> to vector<16x32xbf16>
    %c0_2 = arith.constant 0 : index
    %c0_3 = arith.constant 0 : index
    %3 = vector.load %arg2[%c0_2, %c0_3] : memref<32x96xbf16, #tpu.memory_space<vmem>>, vector<32x96xbf16>
    %cst = arith.constant dense<0.000000e+00> : vector<16x96xf32>
    %4 = tpu.matmul %2, %3, %cst {dimension_numbers = #tpu.dot_dimension_numbers<[1], [0], [0], [1], [0, 0, 1, 1], [], []>} : vector<16x32xbf16>, vector<32x96xbf16>, vector<16x96xf32> -> vector<16x96xf32>
    %5 = vector.extract_strided_slice %4 {offsets = [0, 0], sizes = [16, 4], strides = [1, 1]} : vector<16x96xf32> to vector<16x4xf32>
    %6 = vector.extract_strided_slice %4 {offsets = [0, 4], sizes = [16, 4], strides = [1, 1]} : vector<16x96xf32> to vector<16x4xf32>
    %7 = vector.extract_strided_slice %4 {offsets = [0, 8], sizes = [16, 4], strides = [1, 1]} : vector<16x96xf32> to vector<16x4xf32>
    %8 = vector.extract_strided_slice %4 {offsets = [0, 12], sizes = [16, 4], strides = [1, 1]} : vector<16x96xf32> to vector<16x4xf32>
    %9 = vector.extract_strided_slice %4 {offsets = [0, 16], sizes = [16, 4], strides = [1, 1]} : vector<16x96xf32> to vector<16x4xf32>
    %10 = vector.extract_strided_slice %4 {offsets = [0, 20], sizes = [16, 4], strides = [1, 1]} : vector<16x96xf32> to vector<16x4xf32>
    %11 = vector.extract_strided_slice %4 {offsets = [0, 24], sizes = [16, 4], strides = [1, 1]} : vector<16x96xf32> to vector<16x4xf32>
    %12 = vector.extract_strided_slice %4 {offsets = [0, 28], sizes = [16, 4], strides = [1, 1]} : vector<16x96xf32> to vector<16x4xf32>
    %13 = vector.shape_cast %5 : vector<16x4xf32> to vector<1x16x4xf32>
    %14 = vector.shape_cast %6 : vector<16x4xf32> to vector<1x16x4xf32>
    %15 = vector.shape_cast %7 : vector<16x4xf32> to vector<1x16x4xf32>
    %16 = vector.shape_cast %8 : vector<16x4xf32> to vector<1x16x4xf32>
    %17 = vector.shape_cast %9 : vector<16x4xf32> to vector<1x16x4xf32>
    %18 = vector.shape_cast %10 : vector<16x4xf32> to vector<1x16x4xf32>
    %19 = vector.shape_cast %11 : vector<16x4xf32> to vector<1x16x4xf32>
    %20 = vector.shape_cast %12 : vector<16x4xf32> to vector<1x16x4xf32>
    %21 = tpu.concatenate %13, %14, %15, %16, %17, %18, %19, %20 in 0 : vector<1x16x4xf32>, vector<1x16x4xf32>, vector<1x16x4xf32>, vector<1x16x4xf32>, vector<1x16x4xf32>, vector<1x16x4xf32>, vector<1x16x4xf32>, vector<1x16x4xf32> -> vector<8x16x4xf32>
    %22 = vector.shape_cast %21 : vector<8x16x4xf32> to vector<8x2x8x4xf32>
    %23 = vector.shape_cast %22 : vector<8x2x8x4xf32> to vector<16x8x4xf32>
    %24 = arith.truncf %23 : vector<16x8x4xf32> to vector<16x8x4xbf16>
    %25 = vector.extract_strided_slice %4 {offsets = [0, 32], sizes = [16, 4], strides = [1, 1]} : vector<16x96xf32> to vector<16x4xf32>
    %26 = vector.extract_strided_slice %4 {offsets = [0, 36], sizes = [16, 4], strides = [1, 1]} : vector<16x96xf32> to vector<16x4xf32>
    %27 = vector.extract_strided_slice %4 {offsets = [0, 40], sizes = [16, 4], strides = [1, 1]} : vector<16x96xf32> to vector<16x4xf32>
    %28 = vector.extract_strided_slice %4 {offsets = [0, 44], sizes = [16, 4], strides = [1, 1]} : vector<16x96xf32> to vector<16x4xf32>
    %29 = vector.extract_strided_slice %4 {offsets = [0, 48], sizes = [16, 4], strides = [1, 1]} : vector<16x96xf32> to vector<16x4xf32>
    %30 = vector.extract_strided_slice %4 {offsets = [0, 52], sizes = [16, 4], strides = [1, 1]} : vector<16x96xf32> to vector<16x4xf32>
    %31 = vector.extract_strided_slice %4 {offsets = [0, 56], sizes = [16, 4], strides = [1, 1]} : vector<16x96xf32> to vector<16x4xf32>
    %32 = vector.extract_strided_slice %4 {offsets = [0, 60], sizes = [16, 4], strides = [1, 1]} : vector<16x96xf32> to vector<16x4xf32>
    %33 = vector.shape_cast %25 : vector<16x4xf32> to vector<1x16x4xf32>
    %34 = vector.shape_cast %26 : vector<16x4xf32> to vector<1x16x4xf32>
    %35 = vector.shape_cast %27 : vector<16x4xf32> to vector<1x16x4xf32>
    %36 = vector.shape_cast %28 : vector<16x4xf32> to vector<1x16x4xf32>
    %37 = vector.shape_cast %29 : vector<16x4xf32> to vector<1x16x4xf32>
    %38 = vector.shape_cast %30 : vector<16x4xf32> to vector<1x16x4xf32>
    %39 = vector.shape_cast %31 : vector<16x4xf32> to vector<1x16x4xf32>
    %40 = vector.shape_cast %32 : vector<16x4xf32> to vector<1x16x4xf32>
    %41 = tpu.concatenate %33, %34, %35, %36, %37, %38, %39, %40 in 0 : vector<1x16x4xf32>, vector<1x16x4xf32>, vector<1x16x4xf32>, vector<1x16x4xf32>, vector<1x16x4xf32>, vector<1x16x4xf32>, vector<1x16x4xf32>, vector<1x16x4xf32> -> vector<8x16x4xf32>
    %42 = vector.shape_cast %41 : vector<8x16x4xf32> to vector<8x2x8x4xf32>
    %43 = vector.shape_cast %42 : vector<8x2x8x4xf32> to vector<16x8x4xf32>
    %44 = arith.truncf %43 : vector<16x8x4xf32> to vector<16x8x4xbf16>
    %45 = vector.extract_strided_slice %4 {offsets = [0, 64], sizes = [16, 4], strides = [1, 1]} : vector<16x96xf32> to vector<16x4xf32>
    %46 = vector.extract_strided_slice %4 {offsets = [0, 68], sizes = [16, 4], strides = [1, 1]} : vector<16x96xf32> to vector<16x4xf32>
    %47 = vector.extract_strided_slice %4 {offsets = [0, 72], sizes = [16, 4], strides = [1, 1]} : vector<16x96xf32> to vector<16x4xf32>
    %48 = vector.extract_strided_slice %4 {offsets = [0, 76], sizes = [16, 4], strides = [1, 1]} : vector<16x96xf32> to vector<16x4xf32>
    %49 = vector.extract_strided_slice %4 {offsets = [0, 80], sizes = [16, 4], strides = [1, 1]} : vector<16x96xf32> to vector<16x4xf32>
    %50 = vector.extract_strided_slice %4 {offsets = [0, 84], sizes = [16, 4], strides = [1, 1]} : vector<16x96xf32> to vector<16x4xf32>
    %51 = vector.extract_strided_slice %4 {offsets = [0, 88], sizes = [16, 4], strides = [1, 1]} : vector<16x96xf32> to vector<16x4xf32>
    %52 = vector.extract_strided_slice %4 {offsets = [0, 92], sizes = [16, 4], strides = [1, 1]} : vector<16x96xf32> to vector<16x4xf32>
    %53 = vector.shape_cast %45 : vector<16x4xf32> to vector<1x16x4xf32>
    %54 = vector.shape_cast %46 : vector<16x4xf32> to vector<1x16x4xf32>
    %55 = vector.shape_cast %47 : vector<16x4xf32> to vector<1x16x4xf32>
    %56 = vector.shape_cast %48 : vector<16x4xf32> to vector<1x16x4xf32>
    %57 = vector.shape_cast %49 : vector<16x4xf32> to vector<1x16x4xf32>
    %58 = vector.shape_cast %50 : vector<16x4xf32> to vector<1x16x4xf32>
    %59 = vector.shape_cast %51 : vector<16x4xf32> to vector<1x16x4xf32>
    %60 = vector.shape_cast %52 : vector<16x4xf32> to vector<1x16x4xf32>
    %61 = tpu.concatenate %53, %54, %55, %56, %57, %58, %59, %60 in 0 : vector<1x16x4xf32>, vector<1x16x4xf32>, vector<1x16x4xf32>, vector<1x16x4xf32>, vector<1x16x4xf32>, vector<1x16x4xf32>, vector<1x16x4xf32>, vector<1x16x4xf32> -> vector<8x16x4xf32>
    %62 = vector.shape_cast %61 : vector<8x16x4xf32> to vector<8x2x8x4xf32>
    %63 = vector.shape_cast %62 : vector<8x2x8x4xf32> to vector<16x8x4xf32>
    %64 = arith.truncf %63 : vector<16x8x4xf32> to vector<16x8x4xbf16>
    "tpu.trace_start"() <{level = 10 : i32, message = "gnd,gmd->gnm"}> : () -> ()
    %cst_4 = arith.constant dense<0.000000e+00> : vector<16x8x8xf32>
    %65 = tpu.matmul %24, %44, %cst_4 {dimension_numbers = #tpu.dot_dimension_numbers<[2], [2], [1], [1], [0, 0, 0, 1, 1, 1], [0], [0]>} : vector<16x8x4xbf16>, vector<16x8x4xbf16>, vector<16x8x8xf32> -> vector<16x8x8xf32>
    "tpu.trace_stop"() : () -> ()
    %cst_5 = arith.constant dense<0xFF800000> : vector<16x8xf32>
    %66 = vector.multi_reduction <maximumf>, %65, %cst_5 [2] : vector<16x8x8xf32> to vector<16x8xf32>
    %67 = vector.shape_cast %66 : vector<16x8xf32> to vector<16x8x1xf32>
    %68 = vector.broadcast %67 : vector<16x8x1xf32> to vector<16x8x8xf32>
    %69 = arith.subf %65, %68 : vector<16x8x8xf32>
    %70 = math.exp %69 : vector<16x8x8xf32>
    %cst_6 = arith.constant dense<0.000000e+00> : vector<16x8xf32>
    %71 = vector.multi_reduction <add>, %70, %cst_6 [2] : vector<16x8x8xf32> to vector<16x8xf32>
    %72 = vector.shape_cast %71 : vector<16x8xf32> to vector<16x8x1xf32>
    %73 = tpu.reciprocal %72 {approx = true} : vector<16x8x1xf32> -> vector<16x8x1xf32>
    %74 = vector.broadcast %73 : vector<16x8x1xf32> to vector<16x8x8xf32>
    %75 = arith.mulf %70, %74 : vector<16x8x8xf32>
    %76 = vector.shape_cast %75 : vector<16x8x8xf32> to vector<8x2x8x8xf32>
    %c0_7 = arith.constant 0 : index
    %c0_8 = arith.constant 0 : index
    %c0_9 = arith.constant 0 : index
    %c0_10 = arith.constant 0 : index
    %77 = vector.load %arg6[%c0_7, %c0_8, %c0_9, %c0_10] : memref<8x1x1x1xf32, #tpu.memory_space<vmem>>, vector<8x1x1x1xf32>
    %78 = vector.broadcast %77 : vector<8x1x1x1xf32> to vector<8x2x8x8xf32>
    %79 = arith.mulf %78, %76 : vector<8x2x8x8xf32>
    %c0_11 = arith.constant 0 : index
    %c0_12 = arith.constant 0 : index
    %c0_13 = arith.constant 0 : index
    %c0_14 = arith.constant 0 : index
    %80 = vector.load %arg5[%c0_11, %c0_12, %c0_13, %c0_14] : memref<8x1x8x8xbf16, #tpu.memory_space<vmem>>, vector<8x1x8x8xbf16>
    %81 = arith.extf %80 : vector<8x1x8x8xbf16> to vector<8x1x8x8xf32>
    %82 = vector.broadcast %81 : vector<8x1x8x8xf32> to vector<8x2x8x8xf32>
    %83 = arith.addf %79, %82 : vector<8x2x8x8xf32>
    %cst_15 = arith.constant dense<0.000000e+00> : vector<8x2x8xf32>
    %84 = vector.multi_reduction <add>, %83, %cst_15 [3] : vector<8x2x8x8xf32> to vector<8x2x8xf32>
    %85 = vector.shape_cast %84 : vector<8x2x8xf32> to vector<8x2x8x1xf32>
    %86 = vector.broadcast %85 : vector<8x2x8x1xf32> to vector<8x2x8x8xf32>
    %87 = arith.divf %83, %86 : vector<8x2x8x8xf32>
    %88 = vector.shape_cast %87 : vector<8x2x8x8xf32> to vector<16x8x8xf32>
    %89 = arith.truncf %88 : vector<16x8x8xf32> to vector<16x8x8xbf16>
    "tpu.trace_start"() <{level = 10 : i32, message = "gnm,gmd->gnd"}> : () -> ()
    %cst_16 = arith.constant dense<0.000000e+00> : vector<16x8x4xf32>
    %90 = tpu.matmul %89, %64, %cst_16 {dimension_numbers = #tpu.dot_dimension_numbers<[2], [1], [1], [2], [0, 0, 0, 1, 1, 2], [0], [0]>} : vector<16x8x8xbf16>, vector<16x8x4xbf16>, vector<16x8x4xf32> -> vector<16x8x4xf32>
    "tpu.trace_stop"() : () -> ()
    %91 = vector.shape_cast %90 : vector<16x8x4xf32> to vector<8x2x8x4xf32>
    %92 = vector.extract_strided_slice %91 {offsets = [0, 0, 0, 0], sizes = [1, 2, 8, 4], strides = [1, 1, 1, 1]} : vector<8x2x8x4xf32> to vector<1x2x8x4xf32>
    %93 = vector.shape_cast %92 : vector<1x2x8x4xf32> to vector<2x8x4xf32>
    %94 = vector.extract_strided_slice %91 {offsets = [1, 0, 0, 0], sizes = [1, 2, 8, 4], strides = [1, 1, 1, 1]} : vector<8x2x8x4xf32> to vector<1x2x8x4xf32>
    %95 = vector.shape_cast %94 : vector<1x2x8x4xf32> to vector<2x8x4xf32>
    %96 = vector.extract_strided_slice %91 {offsets = [2, 0, 0, 0], sizes = [1, 2, 8, 4], strides = [1, 1, 1, 1]} : vector<8x2x8x4xf32> to vector<1x2x8x4xf32>
    %97 = vector.shape_cast %96 : vector<1x2x8x4xf32> to vector<2x8x4xf32>
    %98 = vector.extract_strided_slice %91 {offsets = [3, 0, 0, 0], sizes = [1, 2, 8, 4], strides = [1, 1, 1, 1]} : vector<8x2x8x4xf32> to vector<1x2x8x4xf32>
    %99 = vector.shape_cast %98 : vector<1x2x8x4xf32> to vector<2x8x4xf32>
    %100 = vector.extract_strided_slice %91 {offsets = [4, 0, 0, 0], sizes = [1, 2, 8, 4], strides = [1, 1, 1, 1]} : vector<8x2x8x4xf32> to vector<1x2x8x4xf32>
    %101 = vector.shape_cast %100 : vector<1x2x8x4xf32> to vector<2x8x4xf32>
    %102 = vector.extract_strided_slice %91 {offsets = [5, 0, 0, 0], sizes = [1, 2, 8, 4], strides = [1, 1, 1, 1]} : vector<8x2x8x4xf32> to vector<1x2x8x4xf32>
    %103 = vector.shape_cast %102 : vector<1x2x8x4xf32> to vector<2x8x4xf32>
    %104 = vector.extract_strided_slice %91 {offsets = [6, 0, 0, 0], sizes = [1, 2, 8, 4], strides = [1, 1, 1, 1]} : vector<8x2x8x4xf32> to vector<1x2x8x4xf32>
    %105 = vector.shape_cast %104 : vector<1x2x8x4xf32> to vector<2x8x4xf32>
    %106 = vector.extract_strided_slice %91 {offsets = [7, 0, 0, 0], sizes = [1, 2, 8, 4], strides = [1, 1, 1, 1]} : vector<8x2x8x4xf32> to vector<1x2x8x4xf32>
    %107 = vector.shape_cast %106 : vector<1x2x8x4xf32> to vector<2x8x4xf32>
    %108 = tpu.concatenate %93, %95, %97, %99, %101, %103, %105, %107 in 2 : vector<2x8x4xf32>, vector<2x8x4xf32>, vector<2x8x4xf32>, vector<2x8x4xf32>, vector<2x8x4xf32>, vector<2x8x4xf32>, vector<2x8x4xf32>, vector<2x8x4xf32> -> vector<2x8x32xf32>
    %109 = vector.shape_cast %108 : vector<2x8x32xf32> to vector<16x32xf32>
    %110 = arith.truncf %109 : vector<16x32xf32> to vector<16x32xbf16>
    %c0_17 = arith.constant 0 : index
    %c0_18 = arith.constant 0 : index
    %111 = vector.load %arg3[%c0_17, %c0_18] : memref<32x32xbf16, #tpu.memory_space<vmem>>, vector<32x32xbf16>
    %cst_19 = arith.constant dense<0.000000e+00> : vector<16x32xf32>
    %112 = tpu.matmul %110, %111, %cst_19 {dimension_numbers = #tpu.dot_dimension_numbers<[1], [0], [0], [1], [0, 0, 1, 1], [], []>} : vector<16x32xbf16>, vector<32x32xbf16>, vector<16x32xf32> -> vector<16x32xf32>
    %c0_20 = arith.constant 0 : index
    %c0_21 = arith.constant 0 : index
    %113 = vector.load %arg4[%c0_20, %c0_21] : memref<1x32xf32, #tpu.memory_space<vmem>>, vector<1x32xf32>
    %114 = vector.broadcast %113 : vector<1x32xf32> to vector<16x32xf32>
    %115 = arith.addf %112, %114 : vector<16x32xf32>
    %116 = vector.shape_cast %115 : vector<16x32xf32> to vector<2x8x32xf32>
    %117 = vector.extract_strided_slice %116 {offsets = [0, 0, 0], sizes = [2, 1, 32], strides = [1, 1, 1]} : vector<2x8x32xf32> to vector<2x1x32xf32>
    %118 = vector.shape_cast %117 : vector<2x1x32xf32> to vector<2x32xf32>
    %119 = vector.extract_strided_slice %116 {offsets = [0, 1, 0], sizes = [2, 1, 32], strides = [1, 1, 1]} : vector<2x8x32xf32> to vector<2x1x32xf32>
    %120 = vector.shape_cast %119 : vector<2x1x32xf32> to vector<2x32xf32>
    %121 = vector.extract_strided_slice %116 {offsets = [0, 2, 0], sizes = [2, 1, 32], strides = [1, 1, 1]} : vector<2x8x32xf32> to vector<2x1x32xf32>
    %122 = vector.shape_cast %121 : vector<2x1x32xf32> to vector<2x32xf32>
    %123 = vector.extract_strided_slice %116 {offsets = [0, 3, 0], sizes = [2, 1, 32], strides = [1, 1, 1]} : vector<2x8x32xf32> to vector<2x1x32xf32>
    %124 = vector.shape_cast %123 : vector<2x1x32xf32> to vector<2x32xf32>
    %125 = vector.extract_strided_slice %116 {offsets = [0, 4, 0], sizes = [2, 1, 32], strides = [1, 1, 1]} : vector<2x8x32xf32> to vector<2x1x32xf32>
    %126 = vector.shape_cast %125 : vector<2x1x32xf32> to vector<2x32xf32>
    %127 = vector.extract_strided_slice %116 {offsets = [0, 5, 0], sizes = [2, 1, 32], strides = [1, 1, 1]} : vector<2x8x32xf32> to vector<2x1x32xf32>
    %128 = vector.shape_cast %127 : vector<2x1x32xf32> to vector<2x32xf32>
    %129 = vector.extract_strided_slice %116 {offsets = [0, 6, 0], sizes = [2, 1, 32], strides = [1, 1, 1]} : vector<2x8x32xf32> to vector<2x1x32xf32>
    %130 = vector.shape_cast %129 : vector<2x1x32xf32> to vector<2x32xf32>
    %131 = vector.extract_strided_slice %116 {offsets = [0, 7, 0], sizes = [2, 1, 32], strides = [1, 1, 1]} : vector<2x8x32xf32> to vector<2x1x32xf32>
    %132 = vector.shape_cast %131 : vector<2x1x32xf32> to vector<2x32xf32>
    %133 = tpu.concatenate %118, %120, %122, %124, %126, %128, %130, %132 in 1 : vector<2x32xf32>, vector<2x32xf32>, vector<2x32xf32>, vector<2x32xf32>, vector<2x32xf32>, vector<2x32xf32>, vector<2x32xf32>, vector<2x32xf32> -> vector<2x256xf32>
    %c0_22 = arith.constant 0 : index
    %c0_23 = arith.constant 0 : index
    %134 = vector.load %arg7[%c0_22, %c0_23] : memref<2x256xf32, #tpu.memory_space<vmem>>, vector<2x256xf32>
    tpu.vector_store %arg7[%c0_22, %c0_23], %133 {strides = array<i32>} : memref<2x256xf32, #tpu.memory_space<vmem>>, vector<2x256xf32>,
    return
  }
  func.func @transform_0(%arg0: i32) -> (i32, i32, i32) {
    %c0_i32 = arith.constant 0 : i32
    %c0_i32_0 = arith.constant 0 : i32
    %c0_i32_1 = arith.constant 0 : i32
    return %arg0, %c0_i32, %c0_i32_0 : i32, i32, i32
  }
  func.func @transform_1(%arg0: i32) -> (i32, i32) {
    %c0_i32 = arith.constant 0 : i32
    %c0_i32_0 = arith.constant 0 : i32
    %c0_i32_1 = arith.constant 0 : i32
    return %c0_i32, %c0_i32_0 : i32, i32
  }
  func.func @transform_2(%arg0: i32) -> (i32, i32) {
    %c0_i32 = arith.constant 0 : i32
    %c0_i32_0 = arith.constant 0 : i32
    %c0_i32_1 = arith.constant 0 : i32
    return %c0_i32, %c0_i32_0 : i32, i32
  }
  func.func @transform_3(%arg0: i32) -> (i32, i32) {
    %c0_i32 = arith.constant 0 : i32
    %c0_i32_0 = arith.constant 0 : i32
    %c0_i32_1 = arith.constant 0 : i32
    return %c0_i32, %c0_i32_0 : i32, i32
  }
  func.func @transform_4(%arg0: i32) -> (i32, i32, i32, i32) {
    %c0_i32 = arith.constant 0 : i32
    %c0_i32_0 = arith.constant 0 : i32
    %c0_i32_1 = arith.constant 0 : i32
    %c0_i32_2 = arith.constant 0 : i32
    %c0_i32_3 = arith.constant 0 : i32
    return %c0_i32, %c0_i32_0, %c0_i32_1, %c0_i32_2 : i32, i32, i32, i32
  }
  func.func @transform_5(%arg0: i32) -> (i32, i32, i32, i32) {
    %c0_i32 = arith.constant 0 : i32
    %c0_i32_0 = arith.constant 0 : i32
    %c0_i32_1 = arith.constant 0 : i32
    %c0_i32_2 = arith.constant 0 : i32
    %c0_i32_3 = arith.constant 0 : i32
    return %c0_i32, %c0_i32_0, %c0_i32_1, %c0_i32_2 : i32, i32, i32, i32
  }
  func.func @transform_6(%arg0: i32) -> (i32, i32) {
    %c0_i32 = arith.constant 0 : i32
    %c0_i32_0 = arith.constant 0 : i32
    return %arg0, %c0_i32 : i32, i32
  }
}

</mosaic_0001>

<bundles_post_ra>
// kernel: tpu_custom_call.1
= control target key start
LH: loop header
LB: loop body
LE: loop exit
PB: predicated region body
PF: predicated region fallthrough
CT: control target
= control target key end

     0   :  { %11 = vsyncpa [#allocation3], 0  ;;  %s2806_s0 = inlined_call_operand.hbm [shape: f32[2,8,32], index: 0, kind: input, shape index: {}]   ;;  %s2807_s1 = inlined_call_operand.hbm [shape: bf16[32,96], index: 1, kind: input, shape index: {}]   ;;  %s2808_s2 = inlined_call_operand.hbm [shape: bf16[32,32], index: 2, kind: input, shape index: {}]   ;;  %s2809_s3 = inlined_call_operand.vmem [shape: f32[1,32], index: 3, kind: input, shape index: {}]   ;;  %s2810_s4 = inlined_call_operand.hbm [shape: bf16[8,1,8,8], index: 4, kind: input, shape index: {}]   ;;  %s2811_s5 = inlined_call_operand.vmem [shape: f32[8,1,1,1], index: 5, kind: input, shape index: {}]   ;;  %s2812_s6 = inlined_call_operand.hbm [shape: f32[2,256], index: 6, kind: output, shape index: {}]  }
   0x1   :  { %12 = vsyncpa [#allocation6], 0 }
   0x2   :  { %13 = vsyncpa [#allocation9], 0  ;;  %s32_s23 = sshll.u32 %s2807_s1, 4  ;;  %s33_s23 = int_to_ptr.hbm [resolvable:$true] %s32_s23 }
   0x3   :  { %14 = vsyncpa [#allocation4], 0  ;;  %s2087_s24 = smov [#allocation5]   ;;  %s19_s28 = sshll.u32 %s2806_s0, 4  ;;  %s20_s28 = int_to_ptr.hbm [resolvable:$true] %s19_s28 }
   0x4   :  { %s34_s25 = sshll.u32 %s2087_s24, 4  ;;  %s2088_s29 = smov 64   ;;  %s35_s25 = int_to_ptr.vmem [resolvable:$true] %s34_s25 }
   0x5   :  { %s2089_s30 = smov 4   ;;  %s2090_s7 = smov [#allocation2]  }
   0x6   :  { %40 = dma.hbm_to_vmem [thread:$0]  %s33_s23, 256, %s35_s25, [#allocation6], %s2088_s29, %s2088_s29, %s2089_s30  }
   0x7   :  { %s21_s8 = sshll.u32 %s2090_s7, 4  ;;  %s2091_s1 = smov 128   ;;  %s22_s8 = int_to_ptr.vmem [resolvable:$true] %s21_s8 }
   0x8   :  { %s2092_s9 = smov 8   ;;  %s45_s12 = sshll.u32 %s2808_s2, 4  ;;  %s46_s12 = int_to_ptr.hbm [resolvable:$true] %s45_s12 }
   0x9   :  { %27 = dma.hbm_to_vmem [thread:$0]  %s20_s28, 256, %s22_s8, [#allocation3], %s2091_s1, %s2091_s1, %s2092_s9  }
   0xa   :  { %s2093_s0 = smov [#allocation7]   ;;  %s60_s16 = sshll.u32 %s2810_s4, 4  ;;  %s61_s16 = int_to_ptr.hbm [resolvable:$true] %s60_s16 }
   0xb   :  { %s47_s13 = sshll.u32 %s2093_s0, 4  ;;  %s2094_s17 = smov [#allocation8]   ;;  %s48_s13 = int_to_ptr.vmem [resolvable:$true] %s47_s13 }
   0xc   :  { %53 = dma.hbm_to_vmem [thread:$0]  %s46_s12, 256, %s48_s13, [#allocation6], %s2088_s29, %s2088_s29, %s2089_s30  }
   0xd   :  { %s62_s18 = sshll.u32 %s2094_s17, 4  ;;  %s63_s18 = int_to_ptr.vmem [resolvable:$true] %s62_s18 }
   0xe   :  { %68 = dma.hbm_to_vmem [thread:$0]  %s61_s16, 512, %s63_s18, [#allocation9], %s2088_s29, %s2088_s29, %s2089_s30  }
   0xf   :  { %2079 = dma.done.wait [#allocation3], 256  }
  0x10   :  { %2080 = vsyncadd [#allocation3], 4294967040 }
  0x11   :  { %2081 = dma.done.wait [#allocation6], 512  }
  0x12   :  { %2082 = vsyncadd [#allocation6], 4294966784 }
  0x13   :  { %2083 = dma.done.wait [#allocation9], 512  }
  0x14   :  { %2084 = vsyncadd [#allocation9], 4294966784  ;;  %v1735_v0 = vld [vmem:[#allocation5 + $0x8] sm:$0xff]  ;;  %v1734_v1 = vld [vmem:[#allocation5] sm:$0xff]  ;;  %vm107_vm0 = vcmask 261120   ;;  %s2095_s2 = smov 108  }
  0x15   :  { %v88_v2 = vld [vmem:[#allocation2] sm:$0xff]  ;;  %v89_v3 = vld [vmem:[#allocation2 + $0x8] sm:$0xff]  ;;  %117 = vmatpush.bf16.msra.mxu0 %v1735_v0  ;;  %s2096_s4 = smov 116   ;;  %s2097_s19 = smov 124   ;;  %vm190_vm1 = vcmask 31744   ;;  %v2103_v35 = vmov 0  }
  0x16   :  { %v90_v4 = vpack.c.bf16 %v89_v3, %v88_v2  ;;  %s2098_s20 = smov 112   ;;  %s2099_s21 = smov 96   ;;  %1818 = vset.pattern.permute.xlu2 %v2103_v35  ;;  %1817 = vset.pattern.permute.xlu1 %v2103_v35  ;;  %vm570_vm2 = vcmask 64512   ;;  %vm1160_vm3 = vcmask 1043456  }
  0x17   :  { %s2100_s22 = smov 120   ;;  %s2101_s23 = smov 104   ;;  %1816 = vset.pattern.permute.xlu0 %v2103_v35 }
  0x18   :  { %s2102_s24 = smov 100   ;;  %s2107_s18 = smov 24  }
  0x19   :  { %118 = vmatpush.bf16.msra.mxu0 %v1734_v1 }
  0x1c   :  { %1692 = vmatmul.msk.bf16.vlgmr.msra.gmra.mxu0 %vm107_vm0, %v90_v4 }
  0x99   :  { %v120_v5 = vpop.f32.mrf.mxu0 }
  0x9a   :  { %v2183_v23 = vpack.c.bf16 %v120_v5, %v120_v5 }
  0x9c   :  { %v186_v30 = vunpack.c.l.b16 %v2183_v23 }
  0x9e   :  { %v2201_v39 = vpack.c.b16 %v186_v30, %v186_v30  ;;  %v1861_v30 = vld [vmem:[%s2811_s5 + $0x5] ss:$0 sm:$0xff] }
  0xa1   :  { %v122_v6 = vpop.f32.mrf.mxu0 }
  0xa2   :  { %v1801_v7 = vpack.i.bf16 %v122_v6, %v120_v5  ;;  %v170_v8 = vpack.c.bf16 %v122_v6, %v122_v6  ;;  %v1796_v10 = vpack.i.bf16 %v120_v5, %v122_v6 }
  0xa4   :  { %1802 = vrot.lane.b32.xlu2 %v1801_v7, %s2095_s2  ;;  %1792 = vrot.lane.b32.xlu1 %v1801_v7, %s2096_s4  ;;  %v211_v9 = vunpack.c.l.b16 %v170_v8  ;;  %s2108_s2 = smov 28  }
  0xa5   :  { %1782 = vrot.lane.b32.xlu0 %v1801_v7, %s2097_s19 }
  0xa6   :  { %v2169_v11 = vpack.c.b16 %v211_v9, %v211_v9 }
  0xac   :  { %1797 = vrot.lane.b32.xlu1 %v1796_v10, %s2098_s20  ;;  %213 = vrot.lane.b32.xlu2 %v2169_v11, %s2099_s21  ;;  %s2109_s20 = smov 32  }
  0xad   :  { %1787 = vrot.lane.b32.xlu0 %v1796_v10, %s2100_s22 }
  0xb4   :  { %1807 = vrot.lane.b32.xlu1 %v1796_v10, %s2101_s23  ;;  %1812 = vrot.lane.b32.xlu2 %v1801_v7, %s2102_s24 }
  0xfe   :  { %v2173_v12 = vpop.permute.xlu2 %1802 }
  0xff   :  { %v1804_v31 = vunpack.i.l.bf16 %v2173_v12  ;;  %v1805_v59 = vunpack.i.h.bf16 %v2173_v12 }
 0x101   :  { %v2203_v40 = vpack.c.bf16 %v1804_v31, %v1804_v31  ;;  %v2238_v1 = vpack.c.bf16 %v1805_v59, %v1805_v59 }
 0x103   :  { %v427_v46 = vunpack.c.l.b16 %v2203_v40  ;;  %v451_v7 = vunpack.c.l.b16 %v2238_v1 }
 0x105   :  { %v2226_v54 = vpack.c.b16 %v427_v46, %v427_v46 }
 0x106   :  { %v214_v13 = vpop.permute.xlu2 %213 }
 0x107   :  { %v219_v14 = vsel %vm190_vm1, %v214_v13, 0  ;;  %v2258_v13 = vpack.c.b16 %v451_v7, %v451_v7 }
 0x108   :  { %228 = vmatpush.bf16.xpose.msra.mxu2 %v219_v14 }
 0x10e   :  { %v1813_v56 = vpop.permute.xlu2 %1812 }
 0x10f   :  { %1694 = vmatmul.msk.bf16.vlgmr.msra.gmra.mxu2 %vm190_vm1, %v170_v8  ;;  %v1815_v60 = vunpack.i.h.bf16 %v1813_v56  ;;  %v1814_v63 = vunpack.i.l.bf16 %v1813_v56 }
 0x111   :  { %v2240_v2 = vpack.c.bf16 %v1815_v60, %v1815_v60  ;;  %v2244_v5 = vpack.c.bf16 %v1814_v63, %v1814_v63 }
 0x113   :  { %v547_v8 = vunpack.c.l.b16 %v2240_v2  ;;  %v523_v10 = vunpack.c.l.b16 %v2244_v5 }
 0x115   :  { %v2260_v14 = vpack.c.b16 %v547_v8, %v547_v8 }
 0x116   :  { %v1793_v15 = vpop.permute.xlu1 %1792 }
 0x117   :  { %v1783_v16 = vpop.permute.xlu0 %1782  ;;  %v1794_v32 = vunpack.i.l.bf16 %v1793_v15  ;;  %v1795_v36 = vunpack.i.h.bf16 %v1793_v15  ;;  %v2262_v15 = vpack.c.b16 %v523_v10, %v523_v10 }
 0x118   :  { %v1785_v17 = vunpack.i.h.bf16 %v1783_v16  ;;  %v1784_v18 = vunpack.i.l.bf16 %v1783_v16 }
 0x119   :  { %v2205_v41 = vpack.c.bf16 %v1794_v32, %v1794_v32  ;;  %v2211_v44 = vpack.c.bf16 %v1795_v36, %v1795_v36 }
 0x11a   :  { %v2177_v19 = vpack.c.bf16 %v1785_v17, %v1785_v17  ;;  %v2179_v20 = vpack.c.bf16 %v1784_v18, %v1784_v18  ;;  %v1854_v17 = vld [vmem:[%s2811_s5 + $0x1] ss:$0 sm:$0xff]  ;;  %v1855_v18 = vld [vmem:[%s2811_s5 + $0x2] ss:$0 sm:$0xff] }
 0x11b   :  { %v331_v47 = vunpack.c.l.b16 %v2205_v41  ;;  %v355_v50 = vunpack.c.l.b16 %v2211_v44 }
 0x11c   :  { %v259_v21 = vunpack.c.l.b16 %v2177_v19  ;;  %v235_v22 = vunpack.c.l.b16 %v2179_v20 }
 0x11d   :  { %v332_v55 = vpack.c.b16 %v331_v47, %v331_v47  ;;  %v356_v58 = vpack.c.b16 %v355_v50, %v355_v50 }
 0x11e   :  { %v1798_v24 = vpop.permute.xlu1 %1797  ;;  %v2185_v25 = vpack.c.b16 %v259_v21, %v259_v21  ;;  %v2187_v26 = vpack.c.b16 %v235_v22, %v235_v22  ;;  %v1856_v22 = vld [vmem:[%s2811_s5] ss:$0 sm:$0xff] }
 0x11f   :  { %v1788_v27 = vpop.permute.xlu0 %1787  ;;  %v1799_v48 = vunpack.i.l.bf16 %v1798_v24  ;;  %v1800_v51 = vunpack.i.h.bf16 %v1798_v24  ;;  %v1857_v24 = vld [vmem:[%s2811_s5 + $0x4] ss:$0 sm:$0xff] }
 0x120   :  { %v1790_v28 = vunpack.i.h.bf16 %v1788_v27  ;;  %v1789_v29 = vunpack.i.l.bf16 %v1788_v27  ;;  %261 = vrot.lane.b32.xlu1 %v2185_v25, %s2099_s21  ;;  %237 = vrot.lane.b32.xlu0 %v2187_v26, %s2099_s21  ;;  %v1858_v27 = vld [vmem:[%s2811_s5 + $0x6] ss:$0 sm:$0xff] }
 0x121   :  { %v2222_v52 = vpack.c.bf16 %v1799_v48, %v1799_v48  ;;  %v2228_v57 = vpack.c.bf16 %v1800_v51, %v1800_v51 }
 0x122   :  { %v2195_v33 = vpack.c.bf16 %v1790_v28, %v1790_v28  ;;  %v2197_v34 = vpack.c.bf16 %v1789_v29, %v1789_v29  ;;  %v1859_v28 = vld [vmem:[%s2811_s5 + $0x3] ss:$0 sm:$0xff]  ;;  %v1860_v29 = vld [vmem:[%s2811_s5 + $0x7] ss:$0 sm:$0xff]  ;;  %s2104_s5 = smov 12  }
 0x123   :  { %v403_v61 = vunpack.c.l.b16 %v2222_v52  ;;  %v379_v0 = vunpack.c.l.b16 %v2228_v57 }
 0x124   :  { %v283_v37 = vunpack.c.l.b16 %v2195_v33  ;;  %v307_v38 = vunpack.c.l.b16 %v2197_v34 }
 0x125   :  { %v404_v4 = vpack.c.b16 %v403_v61, %v403_v61  ;;  %v2246_v6 = vpack.c.b16 %v379_v0, %v379_v0 }
 0x126   :  { %v2207_v42 = vpack.c.b16 %v283_v37, %v283_v37  ;;  %v2209_v43 = vpack.c.b16 %v307_v38, %v307_v38  ;;  %v1808_v45 = vpop.permute.xlu1 %1807 }
 0x127   :  { %v1809_v49 = vunpack.i.l.bf16 %v1808_v45  ;;  %v1810_v9 = vunpack.i.h.bf16 %v1808_v45 }
 0x128   :  { %285 = vrot.lane.b32.xlu1 %v2207_v42, %s2099_s21  ;;  %188 = vrot.lane.b32.xlu0 %v2201_v39, %s2099_s21 }
 0x129   :  { %309 = vrot.lane.b32.xlu2 %v2209_v43, %s2099_s21  ;;  %v2224_v53 = vpack.c.bf16 %v1809_v49, %v1809_v49  ;;  %v2256_v12 = vpack.c.bf16 %v1810_v9, %v1810_v9 }
 0x12b   :  { %v499_v62 = vunpack.c.l.b16 %v2224_v53  ;;  %v475_v16 = vunpack.c.l.b16 %v2256_v12 }
 0x12d   :  { %v2242_v3 = vpack.c.b16 %v499_v62, %v499_v62  ;;  %v2277_v21 = vpack.c.b16 %v475_v16, %v475_v16 }
 0x130   :  { %429 = vrot.lane.b32.xlu1 %v2226_v54, %s2099_s21  ;;  %333 = vrot.lane.b32.xlu0 %v332_v55, %s2099_s21 }
 0x131   :  { %357 = vrot.lane.b32.xlu2 %v356_v58, %s2099_s21 }
 0x138   :  { %501 = vrot.lane.b32.xlu1 %v2242_v3, %s2099_s21  ;;  %405 = vrot.lane.b32.xlu0 %v404_v4, %s2099_s21 }
 0x139   :  { %381 = vrot.lane.b32.xlu2 %v2246_v6, %s2099_s21 }
 0x140   :  { %453 = vrot.lane.b32.xlu0 %v2258_v13, %s2099_s21  ;;  %549 = vrot.lane.b32.xlu1 %v2260_v14, %s2099_s21 }
 0x141   :  { %525 = vrot.lane.b32.xlu2 %v2262_v15, %s2099_s21 }
 0x148   :  { %477 = vrot.lane.b32.xlu0 %v2277_v21, %s2099_s21  ;;  %776 = vperm.xlu1 %1817, %v1854_v17  }
 0x149   :  { %780 = vperm.xlu2 %1818, %v1855_v18  }
 0x150   :  { %772 = vperm.xlu0 %1816, %v1856_v22   ;;  %788 = vperm.xlu1 %1817, %v1857_v24  }
 0x151   :  { %796 = vperm.xlu2 %1818, %v1858_v27  }
 0x158   :  { %784 = vperm.xlu0 %1816, %v1859_v28   ;;  %800 = vperm.xlu1 %1817, %v1860_v29  }
 0x159   :  { %1219 = vrot.lane.b32.xlu2 %v2185_v25, %s2088_s29 }
 0x160   :  { %792 = vperm.xlu0 %1816, %v1861_v30   ;;  %1177 = vrot.lane.b32.xlu1 %v2169_v11, %s2088_s29 }
 0x161   :  { %1261 = vrot.lane.b32.xlu2 %v2209_v43, %s2088_s29 }
 0x168   :  { %1198 = vrot.lane.b32.xlu0 %v2187_v26, %s2088_s29  ;;  %1282 = vrot.lane.b32.xlu1 %v332_v55, %s2088_s29 }
 0x169   :  { %1345 = vrot.lane.b32.xlu2 %v404_v4, %s2088_s29 }
 0x170   :  { %1155 = vrot.lane.b32.xlu0 %v2201_v39, %s2088_s29  ;;  %1303 = vrot.lane.b32.xlu1 %v356_v58, %s2088_s29 }
 0x178   :  { %1240 = vrot.lane.b32.xlu0 %v2207_v42, %s2088_s29 }
 0x183   :  { %v310_v25 = vpop.permute.xlu2 %309 }
 0x184   :  { %v315_v11 = vsel %vm190_vm1, %v310_v25, 0 }
 0x185   :  { %324 = vmatpush.bf16.xpose.msrb.mxu2 %v315_v11 }
 0x18b   :  { %v358_v31 = vpop.permute.xlu2 %357 }
 0x18c   :  { %1698 = vmatmul.msk.bf16.vlgmr.msrb.gmra.mxu2 %vm190_vm1, %v2197_v34  ;;  %v363_v39 = vsel %vm190_vm1, %v358_v31, 0 }
 0x192   :  { %v262_v26 = vpop.permute.xlu1 %261  ;;  %v238_v32 = vpop.permute.xlu0 %237 }
 0x193   :  { %v382_v35 = vpop.permute.xlu2 %381  ;;  %v2317_v36 = vpop.f32.mrf.mxu2  ;;  %v243_v37 = vsel %vm190_vm1, %v238_v32, 0  ;;  %v267_v38 = vsel %vm190_vm1, %v262_v26, 0 }
 0x194   :  { %252 = vmatpush.bf16.xpose.msra.mxu3 %v243_v37  ;;  %276 = vmatpush.bf16.xpose.msrb.mxu0 %v267_v38  ;;  %v574_v42 = vsel %vm570_vm2, %v2317_v36, -inf  ;;  %v387_v51 = vsel %vm190_vm1, %v382_v35, 0 }
 0x195   :  { %575 = vmax.xlane.f32.xlu2 %v574_v42 }
 0x19a   :  { %v286_v34 = vpop.permute.xlu1 %285  ;;  %v189_v43 = vpop.permute.xlu0 %188 }
 0x19b   :  { %v526_v45 = vpop.permute.xlu2 %525  ;;  %v232_v46 = vpop.f32.mrf.mxu2  ;;  %1695 = vmatmul.msk.bf16.vlgmr.msra.gmra.mxu3 %vm190_vm1, %v2179_v20  ;;  %1696 = vmatmul.msk.bf16.vlgmr.msrb.gmra.mxu0 %vm190_vm1, %v2177_v19  ;;  %v195_v47 = vsel %vm190_vm1, %v189_v43, 0  ;;  %v291_v48 = vsel %vm190_vm1, %v286_v34, 0 }
 0x19c   :  { %372 = vmatpush.bf16.xpose.msra.mxu0 %v363_v39  ;;  %204 = vmatpush.bf16.xpose.msra.mxu1 %v195_v47  ;;  %v531_v59 = vsel %vm190_vm1, %v526_v45, 0 }
 0x1a2   :  { %v430_v49 = vpop.permute.xlu1 %429  ;;  %v334_v50 = vpop.permute.xlu0 %333 }
 0x1a3   :  { %v435_v55 = vsel %vm190_vm1, %v430_v49, 0  ;;  %1693 = vmatmul.msk.bf16.vlgmr.msra.gmra.mxu1 %vm190_vm1, %v2183_v23  ;;  %v339_v20 = vsel %vm190_vm1, %v334_v50, 0  ;;  %v2335_v56 = vpop.permute.xlu2 %780 }
 0x1a4   :  { %300 = vmatpush.bf16.xpose.msrb.mxu1 %v291_v48  ;;  %348 = vmatpush.bf16.xpose.msrb.mxu3 %v339_v20 }
 0x1aa   :  { %v502_v19 = vpop.permute.xlu1 %501  ;;  %v406_v58 = vpop.permute.xlu0 %405 }
 0x1ab   :  { %v507_v60 = vsel %vm190_vm1, %v502_v19, 0  ;;  %v411_v61 = vsel %vm190_vm1, %v406_v58, 0  ;;  %1699 = vmatmul.msk.bf16.vlgmr.msrb.gmra.mxu3 %vm190_vm1, %v2205_v41  ;;  %1700 = vmatmul.msk.bf16.vlgmr.msra.gmra.mxu0 %vm190_vm1, %v2211_v44  ;;  %v2344_v23 = vpop.permute.xlu2 %796 }
 0x1ac   :  { %396 = vmatpush.bf16.xpose.msra.mxu1 %v387_v51  ;;  %444 = vmatpush.bf16.xpose.msra.mxu3 %v435_v55 }
 0x1ad   :  { %420 = vmatpush.bf16.xpose.msra.mxu2 %v411_v61 }
 0x1b2   :  { %v454_v62 = vpop.permute.xlu0 %453  ;;  %v550_v63 = vpop.permute.xlu1 %549 }
 0x1b3   :  { %v459_v0 = vsel %vm190_vm1, %v454_v62, 0  ;;  %v555_v4 = vsel %vm190_vm1, %v550_v63, 0  ;;  %1697 = vmatmul.msk.bf16.vlgmr.msrb.gmra.mxu1 %vm190_vm1, %v2195_v33  ;;  %v1220_v41 = vpop.permute.xlu2 %1219 }
 0x1b4   :  { %540 = vmatpush.bf16.xpose.msrb.mxu3 %v531_v59  ;;  %1702 = vmatmul.msk.bf16.vlgmr.msra.gmra.mxu2 %vm190_vm1, %v2222_v52  ;;  %v1225_v8 = vsel %vm1160_vm3, %v1220_v41, 0 }
 0x1b5   :  { %516 = vmatpush.bf16.xpose.msrb.mxu2 %v507_v60  ;;  %468 = vmatpush.bf16.xpose.msrb.mxu0 %v459_v0 }
 0x1ba   :  { %v478_v44 = vpop.permute.xlu0 %477  ;;  %v2352_v7 = vpop.permute.xlu1 %776 }
 0x1bb   :  { %v483_v9 = vsel %vm190_vm1, %v478_v44, 0  ;;  %1703 = vmatmul.msk.bf16.vlgmr.msra.gmra.mxu3 %vm190_vm1, %v2203_v40  ;;  %v1262_v40 = vpop.permute.xlu2 %1261 }
 0x1bc   :  { %1704 = vmatmul.msk.bf16.vlgmr.msrb.gmra.mxu0 %vm190_vm1, %v2238_v1  ;;  %492 = vmatpush.bf16.xpose.msrb.mxu1 %v483_v9 }
 0x1bd   :  { %564 = vmatpush.bf16.xpose.msra.mxu0 %v555_v4 }
 0x1c2   :  { %v2360_v33 = vpop.permute.xlu0 %772  ;;  %v2362_v52 = vpop.permute.xlu1 %788 }
 0x1c3   :  { %1701 = vmatmul.msk.bf16.vlgmr.msra.gmra.mxu1 %vm190_vm1, %v2228_v57  ;;  %v2393_v32 = vpop.permute.xlu2 %1345 }
 0x1c4   :  { %1706 = vmatmul.msk.bf16.vlgmr.msrb.gmra.mxu2 %vm190_vm1, %v2224_v53  ;;  %v1267_v53 = vsel %vm1160_vm3, %v1262_v40, 0 }
 0x1c5   :  { %1234 = vmatpush.bf16.msrb.mxu0 %v1225_v8 }
 0x1ca   :  { %v2368_v10 = vpop.permute.xlu0 %784  ;;  %v2370_v16 = vpop.permute.xlu1 %800 }
 0x1cb   :  { %1707 = vmatmul.msk.bf16.vlgmr.msrb.gmra.mxu3 %vm190_vm1, %v2244_v5 }
 0x1cc   :  { %1708 = vmatmul.msk.bf16.vlgmr.msra.gmra.mxu0 %vm190_vm1, %v2240_v2 }
 0x1d2   :  { %v2376_v1 = vpop.permute.xlu0 %792  ;;  %v1178_v17 = vpop.permute.xlu1 %1177 }
 0x1d3   :  { %v1183_v18 = vsel %vm1160_vm3, %v1178_v17, 0  ;;  %1705 = vmatmul.msk.bf16.vlgmr.msrb.gmra.mxu1 %vm190_vm1, %v2256_v12 }
 0x1d4   :  { %1192 = vmatpush.bf16.msra.mxu2 %v1183_v18 }
 0x1d8   :  { %1276 = vmatpush.bf16.msrb.mxu2 %v1267_v53 }
 0x1da   :  { %v1199_v57 = vpop.permute.xlu0 %1198  ;;  %v1283_v22 = vpop.permute.xlu1 %1282 }
 0x1db   :  { %v1204_v5 = vsel %vm1160_vm3, %v1199_v57, 0  ;;  %v1288_v24 = vsel %vm1160_vm3, %v1283_v22, 0 }
 0x1dc   :  { %1213 = vmatpush.bf16.msra.mxu3 %v1204_v5 }
 0x1e0   :  { %1297 = vmatpush.bf16.msrb.mxu3 %v1288_v24 }
 0x1e2   :  { %v1156_v2 = vpop.permute.xlu0 %1155  ;;  %v1304_v27 = vpop.permute.xlu1 %1303 }
 0x1e3   :  { %v1162_v28 = vsel %vm1160_vm3, %v1156_v2, 0  ;;  %v1309_v29 = vsel %vm1160_vm3, %v1304_v27, 0 }
 0x1e4   :  { %1171 = vmatpush.bf16.msra.mxu1 %v1162_v28  ;;  %1318 = vmatpush.bf16.msra.mxu0 %v1309_v29 }
 0x1ea   :  { %v1241_v12 = vpop.permute.xlu0 %1240 }
 0x1eb   :  { %v1246_v30 = vsel %vm1160_vm3, %v1241_v12, 0 }
 0x1ec   :  { %1255 = vmatpush.bf16.msrb.mxu1 %v1246_v30 }
 0x208   :  { %v576_v43 = vpop.xlane.xlu2 %575 }
 0x209   :  { %v620_v45 = vsub.f32 %v2317_v36, %v576_v43 }
 0x20b   :  { %v637_v49 = vmul.f32 1.442695, %v620_v45 }
 0x20d   :  { %1863 = vpow2.f32 %v637_v49 }
 0x20f   :  { %v2387_v25 = vpop.f32.mrf.mxu2 }
 0x210   :  { %v586_v34 = vsel %vm570_vm2, %v2387_v25, -inf }
 0x213   :  { %v2410_v58 = vpop.eup %1863 }
 0x214   :  { %v670_v60 = vsel %vm570_vm2, %v2410_v58, 0.0 }
 0x217   :  { %v328_v11 = vpop.f32.mrf.mxu2 }
 0x218   :  { %v2389_v31 = vpop.f32.mrf.mxu0 }
 0x219   :  { %v580_v26 = vsel %vm570_vm2, %v2389_v31, -inf }
 0x21a   :  { %581 = vmax.xlane.f32.xlu2 %v580_v26 }
 0x21e   :  { %v2395_v35 = vpop.f32.mrf.mxu3 }
 0x21f   :  { %v577_v37 = vsel %vm570_vm2, %v2395_v35, -inf }
 0x220   :  { %v280_v38 = vpop.f32.mrf.mxu0  ;;  %578 = vmax.xlane.f32.xlu0 %v577_v37  ;;  %v206_v39 = vpop.f32.mrf.mxu1 }
 0x221   :  { %v571_v42 = vsel %vm570_vm2, %v206_v39, -inf }
 0x222   :  { %572 = vmax.xlane.f32.xlu1 %v571_v42  ;;  %587 = vmax.xlane.f32.xlu2 %v586_v34 }
 0x226   :  { %v256_v46 = vpop.f32.mrf.mxu3 }
 0x228   :  { %v208_v47 = vpop.f32.mrf.mxu1  ;;  %v2403_v48 = vpop.f32.mrf.mxu0 }
 0x229   :  { %v592_v57 = vsel %vm570_vm2, %v2403_v48, -inf }
 0x22e   :  { %v2405_v50 = vpop.f32.mrf.mxu3 }
 0x22f   :  { %v589_v51 = vsel %vm570_vm2, %v2405_v50, -inf }
 0x230   :  { %v302_v55 = vpop.f32.mrf.mxu1  ;;  %590 = vmax.xlane.f32.xlu0 %v589_v51  ;;  %v376_v20 = vpop.f32.mrf.mxu0 }
 0x231   :  { %v583_v19 = vsel %vm570_vm2, %v302_v55, -inf }
 0x232   :  { %584 = vmax.xlane.f32.xlu1 %v583_v19 }
 0x236   :  { %v352_v36 = vpop.f32.mrf.mxu3 }
 0x237   :  { %v2412_v59 = vpop.f32.mrf.mxu2 }
 0x238   :  { %v304_v61 = vpop.f32.mrf.mxu1  ;;  %671 = vadd.xlane.f32.xlu0 %v670_v60  ;;  %v598_v4 = vsel %vm570_vm2, %v2412_v59, -inf }
 0x239   :  { %v2416_v62 = vpop.f32.mrf.mxu0 }
 0x23a   :  { %v604_v17 = vsel %vm570_vm2, %v2416_v62, -inf }
 0x23e   :  { %v2418_v0 = vpop.f32.mrf.mxu3 }
 0x23f   :  { %v424_v63 = vpop.f32.mrf.mxu2 }
 0x240   :  { %v398_v41 = vpop.f32.mrf.mxu1  ;;  %599 = vmax.xlane.f32.xlu0 %v598_v4 }
 0x241   :  { %v472_v44 = vpop.f32.mrf.mxu0  ;;  %v595_v8 = vsel %vm570_vm2, %v398_v41, -inf }
 0x242   :  { %596 = vmax.xlane.f32.xlu2 %v595_v8 }
 0x246   :  { %v448_v9 = vpop.f32.mrf.mxu3 }
 0x247   :  { %v2423_v40 = vpop.f32.mrf.mxu2 }
 0x248   :  { %v400_v18 = vpop.f32.mrf.mxu1  ;;  %605 = vmax.xlane.f32.xlu0 %v604_v17 }
 0x249   :  { %v2427_v53 = vpop.f32.mrf.mxu0 }
 0x24a   :  { %593 = vmax.xlane.f32.xlu2 %v592_v57  ;;  %v616_v24 = vsel %vm570_vm2, %v2427_v53, -inf }
 0x24e   :  { %v2431_v5 = vpop.f32.mrf.mxu3 }
 0x24f   :  { %v520_v22 = vpop.f32.mrf.mxu2  ;;  %v613_v30 = vsel %vm570_vm2, %v2431_v5, -inf }
 0x250   :  { %v2435_v2 = vpop.f32.mrf.mxu1  ;;  %617 = vmax.xlane.f32.xlu0 %v616_v24 }
 0x251   :  { %v568_v27 = vpop.f32.mrf.mxu0  ;;  %v607_v28 = vsel %vm570_vm2, %v2435_v2, -inf }
 0x252   :  { %608 = vmax.xlane.f32.xlu2 %v607_v28 }
 0x256   :  { %v544_v29 = vpop.f32.mrf.mxu3 }
 0x258   :  { %v496_v12 = vpop.f32.mrf.mxu1 }
 0x25a   :  { %614 = vmax.xlane.f32.xlu2 %v613_v30 }
 0x28d   :  { %v582_v43 = vpop.xlane.xlu2 %581 }
 0x28e   :  { %v622_v47 = vsub.f32 %v2389_v31, %v582_v43  ;;  %v610_v31 = vsel %vm570_vm2, %v2423_v40, -inf }
 0x290   :  { %v641_v19 = vmul.f32 1.442695, %v622_v47 }
 0x293   :  { %v579_v38 = vpop.xlane.xlu0 %578 }
 0x294   :  { %v621_v51 = vsub.f32 %v2395_v35, %v579_v38 }
 0x295   :  { %v573_v11 = vpop.xlane.xlu1 %572  ;;  %v588_v60 = vpop.xlane.xlu2 %587 }
 0x296   :  { %v619_v26 = vsub.f32 %v206_v39, %v573_v11  ;;  %v601_v39 = vsel %vm570_vm2, %v2418_v0, -inf  ;;  %v639_v36 = vmul.f32 1.442695, %v621_v51 }
 0x298   :  { %v635_v37 = vmul.f32 1.442695, %v619_v26 }
 0x29a   :  { %1865 = vpow2.f32 %v635_v37 }
 0x2a0   :  { %v2441_v42 = vpop.eup %1865 }
 0x2a1   :  { %v667_v34 = vsel %vm570_vm2, %v2441_v42, 0.0 }
 0x2a2   :  { %668 = vadd.xlane.f32.xlu1 %v667_v34 }
 0x2a3   :  { %v591_v49 = vpop.xlane.xlu0 %590 }
 0x2a4   :  { %v625_v18 = vsub.f32 %v2405_v50, %v591_v49 }
 0x2a5   :  { %v585_v45 = vpop.xlane.xlu1 %584 }
 0x2a6   :  { %v623_v46 = vsub.f32 %v302_v55, %v585_v45  ;;  %v624_v55 = vsub.f32 %v2387_v25, %v588_v60  ;;  %v647_v27 = vmul.f32 1.442695, %v625_v18  ;;  %v2492_v60 = vld [vmem:[#allocation8] sm:$0xff]  }
 0x2a8   :  { %v643_v20 = vmul.f32 1.442695, %v623_v46  ;;  %v645_v4 = vmul.f32 1.442695, %v624_v55 }
 0x2aa   :  { %1867 = vpow2.f32 %v643_v20  ;;  %602 = vmax.xlane.f32.xlu1 %v601_v39 }
 0x2ab   :  { %1869 = vpow2.f32 %v641_v19  ;;  %v672_v63 = vpop.xlane.xlu0 %671 }
 0x2ac   :  { %1871 = vpow2.f32 %v639_v36 }
 0x2ad   :  { %1873 = vpow2.f32 %v645_v4 }
 0x2b0   :  { %v2449_v61 = vpop.eup %1867 }
 0x2b1   :  { %v679_v35 = vsel %vm570_vm2, %v2449_v61, 0.0  ;;  %v2456_v44 = vpop.eup %1869 }
 0x2b2   :  { %611 = vmax.xlane.f32.xlu1 %v610_v31  ;;  %680 = vadd.xlane.f32.xlu2 %v679_v35  ;;  %v2458_v9 = vpop.eup %1871  ;;  %v676_v22 = vsel %vm570_vm2, %v2456_v44, 0.0 }
 0x2b3   :  { %v673_v57 = vsel %vm570_vm2, %v2458_v9, 0.0  ;;  %v600_v24 = vpop.xlane.xlu0 %599  ;;  %v2465_v29 = vpop.eup %1873 }
 0x2b4   :  { %v682_v30 = vsel %vm570_vm2, %v2465_v29, 0.0 }
 0x2b5   :  { %v597_v8 = vpop.xlane.xlu2 %596 }
 0x2b6   :  { %v627_v17 = vsub.f32 %v398_v41, %v597_v8 }
 0x2b8   :  { %v651_v25 = vmul.f32 1.442695, %v627_v17  ;;  %v1740_v17 = vunpack.c.l.bf16 %v2492_v60 }
 0x2ba   :  { %1875 = vpow2.f32 %v651_v25  ;;  %674 = vadd.xlane.f32.xlu1 %v673_v57  ;;  %677 = vadd.xlane.f32.xlu2 %v676_v22 }
 0x2bb   :  { %1877 = vpow2.f32 %v647_v27  ;;  %v606_v26 = vpop.xlane.xlu0 %605 }
 0x2bc   :  { %v630_v43 = vsub.f32 %v2416_v62, %v606_v26 }
 0x2bd   :  { %v594_v28 = vpop.xlane.xlu2 %593 }
 0x2be   :  { %v626_v41 = vsub.f32 %v2403_v48, %v594_v28  ;;  %v657_v49 = vmul.f32 1.442695, %v630_v43 }
 0x2c0   :  { %v2468_v12 = vpop.eup %1875  ;;  %v649_v50 = vmul.f32 1.442695, %v626_v41 }
 0x2c1   :  { %v691_v11 = vsel %vm570_vm2, %v2468_v12, 0.0  ;;  %v2474_v38 = vpop.eup %1877 }
 0x2c2   :  { %1879 = vpow2.f32 %v649_v50  ;;  %683 = vadd.xlane.f32.xlu2 %v682_v30  ;;  %692 = vadd.xlane.f32.xlu1 %v691_v11  ;;  %v685_v46 = vsel %vm570_vm2, %v2474_v38, 0.0 }
 0x2c5   :  { %v609_v37 = vpop.xlane.xlu2 %608 }
 0x2c6   :  { %v631_v34 = vsub.f32 %v2435_v2, %v609_v37  ;;  %v618_v37 = vpop.xlane.xlu0 %617 }
 0x2c8   :  { %v2477_v48 = vpop.eup %1879  ;;  %v659_v45 = vmul.f32 1.442695, %v631_v34 }
 0x2c9   :  { %v688_v47 = vsel %vm570_vm2, %v2477_v48, 0.0 }
 0x2ca   :  { %1881 = vpow2.f32 %v659_v45  ;;  %686 = vadd.xlane.f32.xlu2 %v685_v46  ;;  %689 = vadd.xlane.f32.xlu1 %v688_v47 }
 0x2cb   :  { %1883 = vpow2.f32 %v657_v49  ;;  %v634_v49 = vsub.f32 %v2427_v53, %v618_v37 }
 0x2cc   :  { %1885 = vrcp.f32 %v672_v63  ;;  %v628_v63 = vsub.f32 %v2412_v59, %v600_v24 }
 0x2cd   :  { %v615_v55 = vpop.xlane.xlu2 %614 }
 0x2ce   :  { %v633_v59 = vsub.f32 %v2431_v5, %v615_v55 }
 0x2d0   :  { %v2484_v51 = vpop.eup %1881  ;;  %v663_v26 = vmul.f32 1.442695, %v633_v59 }
 0x2d1   :  { %v703_v2 = vsel %vm570_vm2, %v2484_v51, 0.0  ;;  %v2488_v20 = vpop.eup %1883 }
 0x2d2   :  { %704 = vadd.xlane.f32.xlu1 %v703_v2  ;;  %v700_v62 = vsel %vm570_vm2, %v2488_v20, 0.0  ;;  %v1886_v19 = vpop.eup %1885 }
 0x2d3   :  { %v732_v18 = vmul.f32 %v1886_v19, %v2410_v58 }
 0x2d5   :  { %v804_v27 = vmul.f32 %v2360_v33, %v732_v18 }
 0x2d7   :  { %v2506_v50 = vadd.f32 %v1740_v17, %v804_v27 }
 0x2d9   :  { %v854_v11 = vsel %vm570_vm2, %v2506_v50, 0.0 }
 0x2da   :  { %701 = vadd.xlane.f32.xlu1 %v700_v62 }
 0x315   :  { %v669_v39 = vpop.xlane.xlu1 %668 }
 0x316   :  { %1887 = vrcp.f32 %v669_v39 }
 0x31c   :  { %v1888_v36 = vpop.eup %1887 }
 0x31d   :  { %v603_v31 = vpop.xlane.xlu1 %602  ;;  %v731_v35 = vmul.f32 %v1888_v36, %v2441_v42  ;;  %v653_v42 = vmul.f32 1.442695, %v628_v63  ;;  %v665_v36 = vmul.f32 1.442695, %v634_v49 }
 0x31e   :  { %v629_v4 = vsub.f32 %v2418_v0, %v603_v31 }
 0x31f   :  { %v803_v8 = vmul.f32 %v2360_v33, %v731_v35  ;;  %v2513_v33 = vld [vmem:[#allocation8 + $0x8] sm:$0xff]  }
 0x320   :  { %v655_v25 = vmul.f32 1.442695, %v629_v4  ;;  %v1744_v5 = vunpack.c.l.bf16 %v2513_v33 }
 0x321   :  { %v2500_v57 = vadd.f32 %v1740_v17, %v803_v8 }
 0x322   :  { %1889 = vpow2.f32 %v655_v25 }
 0x323   :  { %v851_v22 = vsel %vm570_vm2, %v2500_v57, 0.0 }
 0x324   :  { %852 = vadd.xlane.f32.xlu0 %v851_v22 }
 0x325   :  { %v612_v0 = vpop.xlane.xlu1 %611  ;;  %v681_v28 = vpop.xlane.xlu2 %680 }
 0x326   :  { %v632_v41 = vsub.f32 %v2423_v40, %v612_v0  ;;  %1891 = vrcp.f32 %v681_v28  ;;  %v1741_v0 = vunpack.c.h.bf16 %v2492_v60 }
 0x327   :  { %1893 = vpow2.f32 %v653_v42 }
 0x328   :  { %v2508_v58 = vpop.eup %1889  ;;  %v661_v24 = vmul.f32 1.442695, %v632_v41 }
 0x329   :  { %v697_v30 = vsel %vm570_vm2, %v2508_v58, 0.0 }
 0x32a   :  { %1895 = vpow2.f32 %v661_v24  ;;  %698 = vadd.xlane.f32.xlu2 %v697_v30  ;;  %v1745_v30 = vunpack.c.h.bf16 %v2513_v33 }
 0x32b   :  { %1897 = vpow2.f32 %v663_v26 }
 0x32c   :  { %v1892_v40 = vpop.eup %1891  ;;  %855 = vadd.xlane.f32.xlu0 %v854_v11 }
 0x32d   :  { %v678_v34 = vpop.xlane.xlu2 %677  ;;  %v735_v43 = vmul.f32 %v1892_v40, %v2449_v61  ;;  %v2519_v45 = vpop.eup %1893 }
 0x32e   :  { %v675_v2 = vpop.xlane.xlu1 %674  ;;  %v694_v61 = vsel %vm570_vm2, %v2519_v45, 0.0 }
 0x32f   :  { %v807_v46 = vmul.f32 %v2335_v56, %v735_v43  ;;  %1899 = vrcp.f32 %v675_v2  ;;  %v2568_v43 = vld [vmem:[#allocation8 + $0x10] sm:$0xff]  }
 0x330   :  { %v2522_v47 = vpop.eup %1895 }
 0x331   :  { %v706_v62 = vsel %vm570_vm2, %v2522_v47, 0.0  ;;  %v2527_v39 = vadd.f32 %v1744_v5, %v807_v46  ;;  %v2533_v53 = vpop.eup %1897  ;;  %v1748_v46 = vunpack.c.l.bf16 %v2568_v43 }
 0x332   :  { %707 = vadd.xlane.f32.xlu2 %v706_v62  ;;  %v709_v31 = vsel %vm570_vm2, %v2533_v53, 0.0 }
 0x333   :  { %v863_v19 = vsel %vm570_vm2, %v2527_v39, 0.0 }
 0x334   :  { %695 = vadd.xlane.f32.xlu0 %v694_v61  ;;  %864 = vadd.xlane.f32.xlu1 %v863_v19 }
 0x335   :  { %v684_v55 = vpop.xlane.xlu2 %683  ;;  %v1900_v35 = vpop.eup %1899 }
 0x336   :  { %1901 = vrcp.f32 %v684_v55  ;;  %v733_v17 = vmul.f32 %v1900_v35, %v2458_v9  ;;  %v693_v63 = vpop.xlane.xlu1 %692 }
 0x337   :  { %1903 = vpow2.f32 %v665_v36 }
 0x338   :  { %1905 = vrcp.f32 %v678_v34  ;;  %v805_v42 = vmul.f32 %v2352_v7, %v733_v17 }
 0x33a   :  { %710 = vadd.xlane.f32.xlu2 %v709_v31  ;;  %v2550_v59 = vadd.f32 %v1741_v0, %v805_v42  ;;  %v2593_v31 = vld [vmem:[#allocation8 + $0x18] sm:$0xff]  }
 0x33b   :  { %v1752_v35 = vunpack.c.l.bf16 %v2593_v31 }
 0x33c   :  { %v1902_v4 = vpop.eup %1901  ;;  %v857_v40 = vsel %vm570_vm2, %v2550_v59, 0.0 }
 0x33d   :  { %v687_v8 = vpop.xlane.xlu2 %686  ;;  %v2538_v18 = vpop.eup %1903  ;;  %v736_v25 = vmul.f32 %v1902_v4, %v2465_v29 }
 0x33e   :  { %1907 = vrcp.f32 %v687_v8  ;;  %v712_v27 = vsel %vm570_vm2, %v2538_v18, 0.0  ;;  %v1906_v28 = vpop.eup %1905  ;;  %v690_v11 = vpop.xlane.xlu1 %689 }
 0x33f   :  { %v808_v22 = vmul.f32 %v2335_v56, %v736_v25  ;;  %1909 = vrcp.f32 %v693_v63  ;;  %v734_v56 = vmul.f32 %v1906_v28, %v2456_v44 }
 0x340   :  { %1911 = vrcp.f32 %v690_v11 }
 0x341   :  { %v2546_v41 = vadd.f32 %v1744_v5, %v808_v22  ;;  %v806_v26 = vmul.f32 %v2352_v7, %v734_v56 }
 0x342   :  { %713 = vadd.xlane.f32.xlu2 %v712_v27 }
 0x343   :  { %v866_v9 = vsel %vm570_vm2, %v2546_v41, 0.0 }
 0x344   :  { %v1908_v29 = vpop.eup %1907  ;;  %867 = vadd.xlane.f32.xlu0 %v866_v9 }
 0x345   :  { %v737_v24 = vmul.f32 %v1908_v29, %v2474_v38  ;;  %v1910_v37 = vpop.eup %1909  ;;  %v2565_v38 = vadd.f32 %v1741_v0, %v806_v26 }
 0x346   :  { %v739_v33 = vmul.f32 %v1910_v37, %v2468_v12  ;;  %v1912_v49 = vpop.eup %1911 }
 0x347   :  { %v809_v60 = vmul.f32 %v2368_v10, %v737_v24  ;;  %v860_v7 = vsel %vm570_vm2, %v2565_v38, 0.0 }
 0x348   :  { %v811_v5 = vmul.f32 %v2362_v52, %v739_v33 }
 0x349   :  { %v2559_v34 = vadd.f32 %v1745_v30, %v809_v60 }
 0x34a   :  { %858 = vadd.xlane.f32.xlu2 %v857_v40  ;;  %v2576_v2 = vadd.f32 %v1748_v46, %v811_v5 }
 0x34b   :  { %v869_v44 = vsel %vm570_vm2, %v2559_v34, 0.0 }
 0x34c   :  { %870 = vadd.xlane.f32.xlu0 %v869_v44  ;;  %v875_v12 = vsel %vm570_vm2, %v2576_v2, 0.0  ;;  %v1749_v44 = vunpack.c.h.bf16 %v2568_v43 }
 0x34d   :  { %1387 = vrot.lane.b32.xlu1 %v2258_v13, %s2088_s29  ;;  %v738_v13 = vmul.f32 %v1912_v49, %v2477_v48  ;;  %v705_v48 = vpop.xlane.xlu1 %704 }
 0x34e   :  { %1913 = vrcp.f32 %v705_v48 }
 0x34f   :  { %v810_v62 = vmul.f32 %v2368_v10, %v738_v13 }
 0x351   :  { %v2582_v61 = vadd.f32 %v1745_v30, %v810_v62 }
 0x352   :  { %861 = vadd.xlane.f32.xlu2 %v860_v7 }
 0x353   :  { %v872_v19 = vsel %vm570_vm2, %v2582_v61, 0.0 }
 0x354   :  { %v1914_v36 = vpop.eup %1913 }
 0x355   :  { %v743_v10 = vmul.f32 %v1914_v36, %v2484_v51 }
 0x35a   :  { %876 = vadd.xlane.f32.xlu2 %v875_v12 }
 0x360   :  { %1324 = vrot.lane.b32.xlu0 %v2246_v6, %s2088_s29  ;;  %v815_v6 = vmul.f32 %v2344_v23, %v743_v10 }
 0x362   :  { %873 = vadd.xlane.f32.xlu2 %v872_v19 }
 0x368   :  { %1429 = vrot.lane.b32.xlu0 %v2242_v3, %s2088_s29  ;;  %v2599_v3 = vadd.f32 %v1752_v35, %v815_v6 }
 0x36a   :  { %v887_v22 = vsel %vm570_vm2, %v2599_v3, 0.0 }
 0x37a   :  { %1366 = vrot.lane.b32.xlu2 %v2226_v54, %s2088_s29  ;;  %v702_v54 = vpop.xlane.xlu1 %701 }
 0x397   :  { %v853_v55 = vpop.xlane.xlu0 %852 }
 0x398   :  { %1915 = vrcp.f32 %v853_v55  ;;  %v910_v63 = vand.u32 2147483648, %v853_v55  ;;  %v908_v42 = vand.u32 2147483647, %v853_v55  ;;  %vm904_vm5 = vweird.f32 %v853_v55 }
 0x39a   :  { %v911_v24 = vor.u32 1.1754944e-38, %v910_v63  ;;  %vm909_vm7 = vcmp.eq.f32.partialorder %v908_v42, 8.507059e+37 }
 0x39d   :  { %v699_v4 = vpop.xlane.xlu2 %698 }
 0x39e   :  { %v1916_v8 = vpop.eup %1915  ;;  %1917 = vrcp.f32 %v699_v4 }
 0x39f   :  { %v900_v17 = vmul.f32 %v1916_v8, %v853_v55  ;;  %v856_v25 = vpop.xlane.xlu0 %855  ;;  %vm905_vm4 = vweird.f32 %v1916_v8 }
 0x3a0   :  { %1919 = vrcp.f32 %v856_v25  ;;  %vm906_vm6 = vmor %vm904_vm5, %vm905_vm4  ;;  %v923_v12 = vand.u32 2147483647, %v856_v25  ;;  %vm919_vm9 = vweird.f32 %v856_v25 }
 0x3a1   :  { %v901_v51 = vsub.f32 1.0, %v900_v17  ;;  %1921 = vrcp.f32 %v702_v54 }
 0x3a2   :  { %vm924_vm11 = vcmp.eq.f32.partialorder %v923_v12, 8.507059e+37 }
 0x3a3   :  { %v902_v27 = vmul.f32 %v1916_v8, %v901_v51  ;;  %888 = vadd.xlane.f32.xlu2 %v887_v22 }
 0x3a4   :  { %v1918_v0 = vpop.eup %1917 }
 0x3a5   :  { %v903_v28 = vadd.f32 %v1916_v8, %v902_v27  ;;  %v708_v9 = vpop.xlane.xlu2 %707  ;;  %v741_v29 = vmul.f32 %v1918_v0, %v2508_v58  ;;  %v925_v58 = vand.u32 2147483648, %v856_v25 }
 0x3a6   :  { %v1920_v56 = vpop.eup %1919  ;;  %1923 = vrcp.f32 %v708_v9 }
 0x3a7   :  { %v907_v30 = vsel %vm906_vm6, %v1916_v8, %v903_v28  ;;  %v915_v60 = vmul.f32 %v1920_v56, %v856_v25  ;;  %v696_v11 = vpop.xlane.xlu0 %695  ;;  %v865_v40 = vpop.xlane.xlu1 %864  ;;  %v813_v26 = vmul.f32 %v2376_v1, %v741_v29  ;;  %vm920_vm8 = vweird.f32 %v1920_v56 }
 0x3a8   :  { %v912_v37 = vsel %vm909_vm7, %v911_v24, %v907_v30  ;;  %1925 = vrcp.f32 %v696_v11  ;;  %v1922_v49 = vpop.eup %1921  ;;  %vm921_vm10 = vmor %vm919_vm9, %vm920_vm8  ;;  %v926_v6 = vor.u32 1.1754944e-38, %v925_v58  ;;  %v970_v0 = vand.u32 2147483648, %v865_v40 }
 0x3a9   :  { %v913_v33 = vmul.f32 %v912_v37, %v2500_v57  ;;  %v916_v7 = vsub.f32 1.0, %v915_v60  ;;  %1927 = vrcp.f32 %v865_v40  ;;  %v2607_v5 = vadd.f32 %v1749_v44, %v813_v26 }
 0x3aa   :  { %v742_v27 = vmul.f32 %v1922_v49, %v2488_v20  ;;  %vm964_vm13 = vweird.f32 %v865_v40  ;;  %v971_v43 = vor.u32 1.1754944e-38, %v970_v0  ;;  %v1753_v58 = vunpack.c.h.bf16 %v2593_v31 }
 0x3ab   :  { %v917_v13 = vmul.f32 %v1920_v56, %v916_v7  ;;  %v1139_v62 = vpack.c.bf16 %v913_v33, %v913_v33  ;;  %v881_v48 = vsel %vm570_vm2, %v2607_v5, 0.0 }
 0x3ac   :  { %v1924_v19 = vpop.eup %1923  ;;  %882 = vadd.xlane.f32.xlu1 %v881_v48  ;;  %v814_v29 = vmul.f32 %v2376_v1, %v742_v27 }
 0x3ad   :  { %v918_v36 = vadd.f32 %v1920_v56, %v917_v13  ;;  %1709 = vmatmul.msk.bf16.vlgmr.msra.gmra.mxu1 %vm570_vm2, %v1139_v62  ;;  %v711_v57 = vpop.xlane.xlu2 %710  ;;  %v744_v10 = vmul.f32 %v1924_v19, %v2522_v47 }
 0x3ae   :  { %v1926_v55 = vpop.eup %1925  ;;  %1929 = vrcp.f32 %v711_v57  ;;  %v2634_v60 = vadd.f32 %v1749_v44, %v814_v29 }
 0x3af   :  { %v1928_v4 = vpop.eup %1927  ;;  %v922_v8 = vsel %vm921_vm10, %v1920_v56, %v918_v36  ;;  %v816_v54 = vmul.f32 %v2344_v23, %v744_v10  ;;  %v740_v17 = vmul.f32 %v1926_v55, %v2519_v45 }
 0x3b0   :  { %v927_v51 = vsel %vm924_vm11, %v926_v6, %v922_v8  ;;  %v960_v63 = vmul.f32 %v1928_v4, %v865_v40  ;;  %vm965_vm12 = vweird.f32 %v1928_v4  ;;  %v884_v33 = vsel %vm570_vm2, %v2634_v60, 0.0 }
 0x3b1   :  { %v928_v25 = vmul.f32 %v927_v51, %v2506_v50  ;;  %v2618_v22 = vadd.f32 %v1752_v35, %v816_v54  ;;  %v812_v47 = vmul.f32 %v2362_v52, %v740_v17  ;;  %v968_v50 = vand.u32 2147483647, %v865_v40  ;;  %vm966_vm14 = vmor %vm964_vm13, %vm965_vm12 }
 0x3b2   :  { %v961_v42 = vsub.f32 1.0, %v960_v63  ;;  %v1351_v35 = vsel %vm1160_vm3, %v2393_v32, 0 }
 0x3b3   :  { %v890_v23 = vsel %vm570_vm2, %v2618_v22, 0.0  ;;  %v1140_v28 = vpack.c.bf16 %v928_v25, %v928_v25  ;;  %v2626_v45 = vadd.f32 %v1748_v46, %v812_v47  ;;  %vm969_vm15 = vcmp.eq.f32.partialorder %v968_v50, 8.507059e+37 }
 0x3b4   :  { %v962_v9 = vmul.f32 %v1928_v4, %v961_v42  ;;  %891 = vadd.xlane.f32.xlu1 %v890_v23  ;;  %v1930_v56 = vpop.eup %1929 }
 0x3b5   :  { %1710 = vmatmul.msk.bf16.vlgmr.msra.gmra.mxu2 %vm570_vm2, %v1140_v28  ;;  %v714_v52 = vpop.xlane.xlu2 %713  ;;  %v878_v20 = vsel %vm570_vm2, %v2626_v45, 0.0  ;;  %v745_v11 = vmul.f32 %v1930_v56, %v2533_v53 }
 0x3b6   :  { %v963_v24 = vadd.f32 %v1928_v4, %v962_v9  ;;  %1360 = vmatpush.bf16.msra.mxu2 %v1351_v35  ;;  %1931 = vrcp.f32 %v714_v52  ;;  %879 = vadd.xlane.f32.xlu0 %v878_v20 }
 0x3b7   :  { %v868_v32 = vpop.xlane.xlu0 %867  ;;  %v817_v44 = vmul.f32 %v2370_v16, %v745_v11 }
 0x3b8   :  { %v967_v46 = vsel %vm966_vm14, %v1928_v4, %v963_v24  ;;  %1933 = vrcp.f32 %v868_v32  ;;  %v985_v31 = vand.u32 2147483648, %v868_v32  ;;  %v983_v48 = vand.u32 2147483647, %v868_v32 }
 0x3b9   :  { %v972_v30 = vsel %vm969_vm15, %v971_v43, %v967_v46  ;;  %v2650_v13 = vadd.f32 %v1753_v58, %v817_v44  ;;  %vm979_vm5 = vweird.f32 %v868_v32 }
 0x3ba   :  { %v973_v26 = vmul.f32 %v972_v30, %v2527_v39  ;;  %v986_v4 = vor.u32 1.1754944e-38, %v985_v31  ;;  %vm984_vm7 = vcmp.eq.f32.partialorder %v983_v48, 8.507059e+37 }
 0x3bb   :  { %1471 = vrot.lane.b32.xlu2 %v2260_v14, %s2088_s29  ;;  %v893_v10 = vsel %vm570_vm2, %v2650_v13, 0.0 }
 0x3bc   :  { %v1932_v1 = vpop.eup %1931  ;;  %v1143_v40 = vpack.c.bf16 %v973_v26, %v973_v26 }
 0x3bd   :  { %v859_v37 = vpop.xlane.xlu2 %858  ;;  %v746_v7 = vmul.f32 %v1932_v1, %v2538_v18 }
 0x3be   :  { %1713 = vmatmul.msk.bf16.vlgmr.msrb.gmra.mxu1 %vm570_vm2, %v1143_v40  ;;  %1935 = vrcp.f32 %v859_v37  ;;  %885 = vadd.xlane.f32.xlu0 %v884_v33  ;;  %v1934_v39 = vpop.eup %1933  ;;  %v940_v17 = vand.u32 2147483648, %v859_v37  ;;  %v938_v47 = vand.u32 2147483647, %v859_v37  ;;  %vm934_vm9 = vweird.f32 %v859_v37 }
 0x3bf   :  { %v818_v53 = vmul.f32 %v2370_v16, %v746_v7  ;;  %v975_v14 = vmul.f32 %v1934_v39, %v868_v32  ;;  %v2647_v49 = vpop.xlane.xlu0 %870  ;;  %vm980_vm4 = vweird.f32 %v1934_v39 }
 0x3c0   :  { %1937 = vrcp.f32 %v2647_v49  ;;  %vm981_vm6 = vmor %vm979_vm5, %vm980_vm4  ;;  %v941_v23 = vor.u32 1.1754944e-38, %v940_v17  ;;  %vm939_vm11 = vcmp.eq.f32.partialorder %v938_v47, 8.507059e+37  ;;  %v1000_v30 = vand.u32 2147483648, %v2647_v49 }
 0x3c1   :  { %v976_v12 = vsub.f32 1.0, %v975_v14  ;;  %v2652_v18 = vadd.f32 %v1753_v58, %v818_v53  ;;  %vm994_vm5 = vweird.f32 %v2647_v49  ;;  %v998_v44 = vand.u32 2147483647, %v2647_v49 }
 0x3c3   :  { %v977_v19 = vmul.f32 %v1934_v39, %v976_v12  ;;  %v896_v36 = vsel %vm570_vm2, %v2652_v18, 0.0  ;;  %v1388_v12 = vpop.permute.xlu1 %1387 }
 0x3c4   :  { %v1936_v62 = vpop.eup %1935  ;;  %897 = vadd.xlane.f32.xlu1 %v896_v36 }
 0x3c5   :  { %v930_v57 = vmul.f32 %v1936_v62, %v859_v37  ;;  %v862_v16 = vpop.xlane.xlu2 %861  ;;  %v978_v55 = vadd.f32 %v1934_v39, %v977_v19  ;;  %vm935_vm8 = vweird.f32 %v1936_v62 }
 0x3c6   :  { %1939 = vrcp.f32 %v862_v16  ;;  %894 = vadd.xlane.f32.xlu0 %v893_v10  ;;  %v2658_v6 = vpop.eup %1937  ;;  %vm936_vm10 = vmor %vm934_vm9, %vm935_vm8  ;;  %v955_v24 = vand.u32 2147483648, %v862_v16  ;;  %v953_v46 = vand.u32 2147483647, %v862_v16  ;;  %vm949_vm13 = vweird.f32 %v862_v16 }
 0x3c7   :  { %v931_v8 = vsub.f32 1.0, %v930_v57  ;;  %v982_v54 = vsel %vm981_vm6, %v1934_v39, %v978_v55  ;;  %v990_v51 = vmul.f32 %v2658_v6, %v2647_v49  ;;  %vm995_vm14 = vweird.f32 %v2658_v6 }
 0x3c8   :  { %v987_v63 = vsel %vm984_vm7, %v986_v4, %v982_v54  ;;  %vm954_vm4 = vcmp.eq.f32.partialorder %v953_v46, 8.507059e+37  ;;  %vm996_vm6 = vmor %vm994_vm5, %vm995_vm14  ;;  %vm999_vm8 = vcmp.eq.f32.partialorder %v998_v44, 8.507059e+37  ;;  %v1393_v49 = vsel %vm1160_vm3, %v1388_v12, 0 }
 0x3c9   :  { %v932_v25 = vmul.f32 %v1936_v62, %v931_v8  ;;  %v988_v27 = vmul.f32 %v987_v63, %v2546_v41  ;;  %v991_v28 = vsub.f32 1.0, %v990_v51 }
 0x3cb   :  { %v933_v42 = vadd.f32 %v1936_v62, %v932_v25  ;;  %v1144_v9 = vpack.c.bf16 %v988_v27, %v988_v27  ;;  %v992_v41 = vmul.f32 %v2658_v6, %v991_v28 }
 0x3cc   :  { %v1940_v0 = vpop.eup %1939 }
 0x3cd   :  { %v937_v50 = vsel %vm936_vm10, %v1936_v62, %v933_v42  ;;  %v945_v35 = vmul.f32 %v1940_v0, %v862_v16  ;;  %v877_v52 = vpop.xlane.xlu2 %876  ;;  %1714 = vmatmul.msk.bf16.vlgmr.msrb.gmra.mxu2 %vm570_vm2, %v1144_v9  ;;  %vm950_vm12 = vweird.f32 %v1940_v0  ;;  %v993_v40 = vadd.f32 %v2658_v6, %v992_v41 }
 0x3ce   :  { %v942_v20 = vsel %vm939_vm11, %v941_v23, %v937_v50  ;;  %1941 = vrcp.f32 %v877_v52  ;;  %vm951_vm15 = vmor %vm949_vm13, %vm950_vm12  ;;  %v1001_v62 = vor.u32 1.1754944e-38, %v1000_v30  ;;  %v1030_v19 = vand.u32 2147483648, %v877_v52 }
 0x3cf   :  { %v943_v29 = vmul.f32 %v942_v20, %v2550_v59  ;;  %v946_v56 = vsub.f32 1.0, %v945_v35  ;;  %v956_v59 = vor.u32 1.1754944e-38, %v955_v24  ;;  %v997_v31 = vsel %vm996_vm6, %v2658_v6, %v993_v40 }
 0x3d0   :  { %v1028_v36 = vand.u32 2147483647, %v877_v52  ;;  %v1002_v16 = vsel %vm999_vm8, %v1001_v62, %v997_v31  ;;  %vm1024_vm9 = vweird.f32 %v877_v52  ;;  %v1031_v6 = vor.u32 1.1754944e-38, %v1030_v19 }
 0x3d1   :  { %v947_v43 = vmul.f32 %v1940_v0, %v946_v56  ;;  %v1141_v32 = vpack.c.bf16 %v943_v29, %v943_v29 }
 0x3d2   :  { %v1325_v26 = vpop.permute.xlu0 %1324  ;;  %vm1029_vm11 = vcmp.eq.f32.partialorder %v1028_v36, 8.507059e+37 }
 0x3d3   :  { %v948_v11 = vadd.f32 %v1940_v0, %v947_v43  ;;  %v1330_v37 = vsel %vm1160_vm3, %v1325_v26, 0  ;;  %1711 = vmatmul.msk.bf16.vlgmr.msra.gmra.mxu3 %vm570_vm2, %v1141_v32 }
 0x3d4   :  { %v1942_v1 = vpop.eup %1941  ;;  %1339 = vmatpush.bf16.msra.mxu1 %v1330_v37 }
 0x3d5   :  { %v952_v33 = vsel %vm951_vm15, %v1940_v0, %v948_v11  ;;  %v1020_v7 = vmul.f32 %v1942_v1, %v877_v52  ;;  %v874_v58 = vpop.xlane.xlu2 %873  ;;  %vm1025_vm7 = vweird.f32 %v1942_v1 }
 0x3d6   :  { %v957_v39 = vsel %vm954_vm4, %v956_v59, %v952_v33  ;;  %1943 = vrcp.f32 %v874_v58  ;;  %vm1026_vm10 = vmor %vm1024_vm9, %vm1025_vm7  ;;  %v1015_v27 = vand.u32 2147483648, %v874_v58  ;;  %v1013_v0 = vand.u32 2147483647, %v874_v58 }
 0x3d7   :  { %v958_v53 = vmul.f32 %v957_v39, %v2565_v38  ;;  %v1021_v14 = vsub.f32 1.0, %v1020_v7  ;;  %vm1009_vm13 = vweird.f32 %v874_v58 }
 0x3d8   :  { %vm1014_vm15 = vcmp.eq.f32.partialorder %v1013_v0, 8.507059e+37 }
 0x3d9   :  { %v1022_v48 = vmul.f32 %v1942_v1, %v1021_v14  ;;  %v1142_v57 = vpack.c.bf16 %v958_v53, %v958_v53 }
 0x3da   :  { %1408 = vrot.lane.b32.xlu0 %v2277_v21, %s2088_s29  ;;  %v1430_v38 = vpop.permute.xlu0 %1429  ;;  %v1003_v21 = vmul.f32 %v1002_v16, %v2559_v34  ;;  %v1016_v34 = vor.u32 1.1754944e-38, %v1015_v27 }
 0x3db   :  { %v1023_v10 = vadd.f32 %v1942_v1, %v1022_v48  ;;  %1712 = vmatmul.msk.bf16.vlgmr.msrb.gmra.mxu0 %vm570_vm2, %v1142_v57  ;;  %v1435_v4 = vsel %vm1160_vm3, %v1430_v38, 0 }
 0x3dc   :  { %v1944_v55 = vpop.eup %1943  ;;  %1402 = vmatpush.bf16.msrb.mxu0 %v1393_v49  ;;  %1444 = vmatpush.bf16.msrb.mxu2 %v1435_v4  ;;  %v1145_v28 = vpack.c.bf16 %v1003_v21, %v1003_v21 }
 0x3dd   :  { %v1027_v8 = vsel %vm1026_vm10, %v1942_v1, %v1023_v10  ;;  %v1005_v54 = vmul.f32 %v1944_v55, %v874_v58  ;;  %v1367_v17 = vpop.permute.xlu2 %1366  ;;  %1450 = vrot.lane.b32.xlu1 %v2262_v15, %s2088_s29  ;;  %vm1010_vm12 = vweird.f32 %v1944_v55 }
 0x3de   :  { %v1032_v51 = vsel %vm1029_vm11, %v1031_v6, %v1027_v8  ;;  %v1372_v63 = vsel %vm1160_vm3, %v1367_v17, 0  ;;  %vm1011_vm14 = vmor %vm1009_vm13, %vm1010_vm12 }
 0x3df   :  { %v1033_v25 = vmul.f32 %v1032_v51, %v2576_v2  ;;  %v1006_v47 = vsub.f32 1.0, %v1005_v54  ;;  %1381 = vmatpush.bf16.msra.mxu3 %v1372_v63 }
 0x3e1   :  { %v1007_v42 = vmul.f32 %v1944_v55, %v1006_v47  ;;  %v1147_v23 = vpack.c.bf16 %v1033_v25, %v1033_v25 }
 0x3e3   :  { %v1008_v9 = vadd.f32 %v1944_v55, %v1007_v42  ;;  %1717 = vmatmul.msk.bf16.vlgmr.msra.gmra.mxu1 %vm570_vm2, %v1147_v23  ;;  %1715 = vmatmul.msk.bf16.vlgmr.msrb.gmra.mxu3 %vm570_vm2, %v1145_v28 }
 0x3e5   :  { %v1012_v15 = vsel %vm1011_vm14, %v1944_v55, %v1008_v9 }
 0x3e6   :  { %v1017_v50 = vsel %vm1014_vm15, %v1016_v34, %v1012_v15 }
 0x3e7   :  { %v1018_v2 = vmul.f32 %v1017_v50, %v2582_v61 }
 0x3e9   :  { %v1146_v35 = vpack.c.bf16 %v1018_v2, %v1018_v2 }
 0x3eb   :  { %1716 = vmatmul.msk.bf16.vlgmr.msra.gmra.mxu0 %vm570_vm2, %v1146_v35 }
 0x416   :  { %v2689_v52 = vpop.xlane.xlu2 %888 }
 0x417   :  { %v1088_v28 = vand.u32 2147483647, %v2689_v52 }
 0x41e   :  { %v1472_v20 = vpop.permute.xlu2 %1471 }
 0x41f   :  { %v1477_v29 = vsel %vm1160_vm3, %v1472_v20, 0  ;;  %v883_v56 = vpop.xlane.xlu1 %882 }
 0x420   :  { %1486 = vmatpush.bf16.msra.mxu0 %v1477_v29  ;;  %1945 = vrcp.f32 %v883_v56  ;;  %v1060_v30 = vand.u32 2147483648, %v883_v56  ;;  %v1058_v26 = vand.u32 2147483647, %v883_v56  ;;  %vm1054_vm5 = vweird.f32 %v883_v56 }
 0x422   :  { %v1061_v59 = vor.u32 1.1754944e-38, %v1060_v30  ;;  %vm1059_vm7 = vcmp.eq.f32.partialorder %v1058_v26, 8.507059e+37 }
 0x426   :  { %v1946_v41 = vpop.eup %1945 }
 0x427   :  { %v1050_v24 = vmul.f32 %v1946_v41, %v883_v56  ;;  %v2692_v43 = vpop.xlane.xlu1 %891  ;;  %vm1055_vm4 = vweird.f32 %v1946_v41 }
 0x428   :  { %1947 = vrcp.f32 %v2692_v43  ;;  %vm1056_vm6 = vmor %vm1054_vm5, %vm1055_vm4  ;;  %vm1099_vm4 = vweird.f32 %v2692_v43  ;;  %v1105_v50 = vand.u32 2147483648, %v2692_v43  ;;  %v1103_v20 = vand.u32 2147483647, %v2692_v43 }
 0x429   :  { %v880_v46 = vpop.xlane.xlu0 %879  ;;  %v1051_v32 = vsub.f32 1.0, %v1050_v24  ;;  %v1090_v24 = vand.u32 2147483648, %v2689_v52 }
 0x42a   :  { %1949 = vrcp.f32 %v880_v46  ;;  %v2695_v61 = vpop.f32.mrf.mxu1  ;;  %v1045_v19 = vand.u32 2147483648, %v880_v46  ;;  %v1043_v57 = vand.u32 2147483647, %v880_v46  ;;  %vm1039_vm9 = vweird.f32 %v880_v46 }
 0x42b   :  { %1951 = vrcp.f32 %v2689_v52  ;;  %v1052_v11 = vmul.f32 %v1946_v41, %v1051_v32 }
 0x42c   :  { %v1046_v38 = vor.u32 1.1754944e-38, %v1045_v19  ;;  %vm1044_vm11 = vcmp.eq.f32.partialorder %v1043_v57, 8.507059e+37 }
 0x42d   :  { %v1053_v1 = vadd.f32 %v1946_v41, %v1052_v11 }
 0x42e   :  { %v2698_v40 = vpop.eup %1947 }
 0x42f   :  { %v1057_v33 = vsel %vm1056_vm6, %v1946_v41, %v1053_v1  ;;  %v1095_v12 = vmul.f32 %v2698_v40, %v2692_v43  ;;  %vm1100_vm14 = vweird.f32 %v2698_v40 }
 0x430   :  { %v1950_v37 = vpop.eup %1949  ;;  %v1062_v58 = vsel %vm1059_vm7, %v1061_v59, %v1057_v33  ;;  %vm1084_vm7 = vweird.f32 %v2689_v52 }
 0x431   :  { %v2700_v7 = vpop.eup %1951  ;;  %v1035_v44 = vmul.f32 %v1950_v37, %v880_v46  ;;  %v886_v39 = vpop.xlane.xlu0 %885  ;;  %v1063_v53 = vmul.f32 %v1062_v58, %v2607_v5  ;;  %vm1040_vm8 = vweird.f32 %v1950_v37  ;;  %v1096_v49 = vsub.f32 1.0, %v1095_v12 }
 0x432   :  { %1953 = vrcp.f32 %v886_v39  ;;  %v1175_v14 = vpop.f32.mrf.mxu1  ;;  %v1080_v62 = vmul.f32 %v2700_v7, %v2689_v52  ;;  %vm1041_vm10 = vmor %vm1039_vm9, %vm1040_vm8  ;;  %v1075_v27 = vand.u32 2147483648, %v886_v39  ;;  %v1073_v0 = vand.u32 2147483647, %v886_v39 }
 0x433   :  { %v1036_v31 = vsub.f32 1.0, %v1035_v44  ;;  %v1149_v48 = vpack.c.bf16 %v1063_v53, %v1063_v53  ;;  %v1097_v21 = vmul.f32 %v2698_v40, %v1096_v49  ;;  %vm1085_vm13 = vweird.f32 %v2700_v7  ;;  %vm2735_vm8 = vmor %vm1099_vm4, %vm1100_vm14 }
 0x434   :  { %v1081_v10 = vsub.f32 1.0, %v1080_v62  ;;  %vm1069_vm15 = vweird.f32 %v886_v39  ;;  %v1076_v2 = vor.u32 1.1754944e-38, %v1075_v27  ;;  %vm1074_vm6 = vcmp.eq.f32.partialorder %v1073_v0, 8.507059e+37  ;;  %vm2741_vm9 = vmor %vm1084_vm7, %vm1085_vm13 }
 0x435   :  { %v1037_v36 = vmul.f32 %v1950_v37, %v1036_v31  ;;  %1719 = vmatmul.msk.bf16.vlgmr.msra.gmra.mxu3 %vm570_vm2, %v1149_v48  ;;  %v1098_v9 = vadd.f32 %v2698_v40, %v1097_v21 }
 0x436   :  { %v1082_v47 = vmul.f32 %v2700_v7, %v1081_v10 }
 0x437   :  { %v1038_v16 = vadd.f32 %v1950_v37, %v1037_v36  ;;  %v2708_v55 = vpop.xlane.xlu1 %897  ;;  %v1102_v30 = vsel %vm2735_vm8, %v2698_v40, %v1098_v9  ;;  %vm1555_vm8 = vcmask 130048  }
 0x438   :  { %v1954_v5 = vpop.eup %1953  ;;  %v2710_v6 = vpop.f32.mrf.mxu2  ;;  %1955 = vrcp.f32 %v2708_v55  ;;  %v1083_v15 = vadd.f32 %v2700_v7, %v1082_v47  ;;  %vm1129_vm14 = vweird.f32 %v2708_v55  ;;  %v1133_v48 = vand.u32 2147483647, %v2708_v55 }
 0x439   :  { %v1042_v4 = vsel %vm1041_vm10, %v1950_v37, %v1038_v16  ;;  %v1065_v8 = vmul.f32 %v1954_v5, %v886_v39  ;;  %v2712_v54 = vpop.xlane.xlu0 %894  ;;  %vm1070_vm12 = vweird.f32 %v1954_v5  ;;  %vm1089_vm10 = vcmp.eq.f32.partialorder %v1088_v28, 8.507059e+37 }
 0x43a   :  { %v1047_v17 = vsel %vm1044_vm11, %v1046_v38, %v1042_v4  ;;  %1957 = vrcp.f32 %v2712_v54  ;;  %vm1071_vm5 = vmor %vm1069_vm15, %vm1070_vm12  ;;  %v1087_v59 = vsel %vm2741_vm9, %v2700_v7, %v1083_v15  ;;  %v1106_v37 = vor.u32 1.1754944e-38, %v1105_v50 }
 0x43b   :  { %v1048_v51 = vmul.f32 %v1047_v17, %v2626_v45  ;;  %v1066_v63 = vsub.f32 1.0, %v1065_v8  ;;  %v2717_v25 = vpop.f32.mrf.mxu1  ;;  %vm1104_vm11 = vcmp.eq.f32.partialorder %v1103_v20, 8.507059e+37  ;;  %v1091_v39 = vor.u32 1.1754944e-38, %v1090_v24 }
 0x43c   :  { %v1107_v53 = vsel %vm1104_vm11, %v1106_v37, %v1102_v30  ;;  %v1120_v40 = vand.u32 2147483648, %v2712_v54  ;;  %v1118_v12 = vand.u32 2147483647, %v2712_v54  ;;  %v1135_v7 = vand.u32 2147483648, %v2708_v55 }
 0x43d   :  { %v1067_v42 = vmul.f32 %v1954_v5, %v1066_v63  ;;  %v1148_v23 = vpack.c.bf16 %v1048_v51, %v1048_v51  ;;  %v1092_v31 = vsel %vm1089_vm10, %v1091_v39, %v1087_v59  ;;  %v1108_v62 = vmul.f32 %v1107_v53, %v2618_v22  ;;  %v1737_v39 = vld [vmem:[#allocation7 + $0x8] sm:$0xff]  ;;  %v1736_v53 = vld [vmem:[#allocation7] sm:$0xff] }
 0x43e   :  { %v1956_v34 = vpop.eup %1955  ;;  %vm1114_vm4 = vweird.f32 %v2712_v54  ;;  %v1121_v57 = vor.u32 1.1754944e-38, %v1120_v40  ;;  %v1093_v49 = vmul.f32 %v1092_v31, %v2599_v3  ;;  %v1136_v10 = vor.u32 1.1754944e-38, %v1135_v7 }
 0x43f   :  { %v1068_v45 = vadd.f32 %v1954_v5, %v1067_v42  ;;  %1718 = vmatmul.msk.bf16.vlgmr.msra.gmra.mxu2 %vm570_vm2, %v1148_v23  ;;  %v1125_v56 = vmul.f32 %v1956_v34, %v2708_v55  ;;  %vm1130_vm12 = vweird.f32 %v1956_v34  ;;  %vm1134_vm7 = vcmp.eq.f32.partialorder %v1133_v48, 8.507059e+37 }
 0x440   :  { %v1196_v35 = vpop.f32.mrf.mxu2  ;;  %v1958_v41 = vpop.eup %1957  ;;  %vm2759_vm15 = vmor %vm1129_vm14, %vm1130_vm12  ;;  %v1152_v8 = vpack.c.bf16 %v1108_v62, %v1108_v62  ;;  %v1151_v17 = vpack.c.bf16 %v1093_v49, %v1093_v49  ;;  %vm1561_vm9 = vcmask 195584   ;;  %vm1564_vm10 = vcmask 228352  }
 0x441   :  { %v1072_v29 = vsel %vm1071_vm5, %v1954_v5, %v1068_v45  ;;  %v1126_v52 = vsub.f32 1.0, %v1125_v56  ;;  %v1110_v26 = vmul.f32 %v1958_v41, %v2712_v54  ;;  %vm1115_vm13 = vweird.f32 %v1958_v41 }
 0x442   :  { %v1077_v32 = vsel %vm1074_vm6, %v1076_v2, %v1072_v29  ;;  %vm1116_vm5 = vmor %vm1114_vm4, %vm1115_vm13  ;;  %vm1119_vm6 = vcmp.eq.f32.partialorder %v1118_v12, 8.507059e+37  ;;  %vm1651_vm11 = vcmask 523264   ;;  %vm1653_vm12 = vcmask 785408  }
 0x443   :  { %v1078_v11 = vmul.f32 %v1077_v32, %v2634_v60  ;;  %v1259_v1 = vpop.f32.mrf.mxu1  ;;  %v1127_v33 = vmul.f32 %v1956_v34, %v1126_v52  ;;  %v1111_v58 = vsub.f32 1.0, %v1110_v26  ;;  %vm1661_vm13 = vcmask 1041408  }
 0x445   :  { %v1150_v44 = vpack.c.bf16 %v1078_v11, %v1078_v11  ;;  %v1128_v60 = vadd.f32 %v1956_v34, %v1127_v33  ;;  %v1112_v14 = vmul.f32 %v1958_v41, %v1111_v58 }
 0x447   :  { %1720 = vmatmul.msk.bf16.vlgmr.msrb.gmra.mxu0 %vm570_vm2, %v1150_v44  ;;  %v1113_v36 = vadd.f32 %v1958_v41, %v1112_v14  ;;  %v1132_v16 = vsel %vm2759_vm15, %v1956_v34, %v1128_v60 }
 0x448   :  { %v1137_v55 = vsel %vm1134_vm7, %v1136_v10, %v1132_v16 }
 0x449   :  { %v1117_v5 = vsel %vm1116_vm5, %v1958_v41, %v1113_v36  ;;  %v1138_v21 = vmul.f32 %v1137_v55, %v2652_v18 }
 0x44a   :  { %v1122_v22 = vsel %vm1119_vm6, %v1121_v57, %v1117_v5 }
 0x44b   :  { %v1123_v54 = vmul.f32 %v1122_v22, %v2650_v13  ;;  %v1154_v13 = vpack.c.bf16 %v1138_v21, %v1138_v21 }
 0x44c   :  { %v1409_v38 = vpop.permute.xlu0 %1408 }
 0x44d   :  { %v1414_v4 = vsel %vm1160_vm3, %v1409_v38, 0  ;;  %v1153_v27 = vpack.c.bf16 %v1123_v54, %v1123_v54 }
 0x44e   :  { %1423 = vmatpush.bf16.msrb.mxu1 %v1414_v4 }
 0x44f   :  { %1722 = vmatmul.msk.bf16.vlgmr.msrb.gmra.mxu2 %vm570_vm2, %v1152_v8  ;;  %v1451_v3 = vpop.permute.xlu1 %1450 }
 0x450   :  { %v1456_v51 = vsel %vm1160_vm3, %v1451_v3, 0  ;;  %v1278_v63 = vpop.f32.mrf.mxu2  ;;  %vm1552_vm3 = vcmask 97280  }
 0x451   :  { %1721 = vmatmul.msk.bf16.vlgmr.msrb.gmra.mxu1 %vm570_vm2, %v1151_v17  ;;  %v1824_v47 = vpack.i.bf16 %v1278_v63, %v2717_v25  ;;  %1465 = vmatpush.bf16.msrb.mxu3 %v1456_v51 }
 0x452   :  { %1597 = vmatpush.bf16.msra.mxu1 %v1737_v39 }
 0x453   :  { %1825 = vrot.lane.b32.xlu0 %v1824_v47, %s2092_s9  ;;  %s2105_s9 = smov 16  }
 0x454   :  { %1723 = vmatmul.msk.bf16.vlgmr.msrb.gmra.mxu3 %vm570_vm2, %v1153_v27 }
 0x456   :  { %v1215_v42 = vpop.f32.mrf.mxu3  ;;  %1598 = vmatpush.bf16.msra.mxu1 %v1736_v53 }
 0x457   :  { %1724 = vmatmul.msk.bf16.vlgmr.msra.gmra.mxu0 %vm570_vm2, %v1154_v13 }
 0x458   :  { %v1236_v0 = vpop.f32.mrf.mxu0  ;;  %v1280_v18 = vpop.f32.mrf.mxu2 }
 0x459   :  { %v1819_v23 = vpack.i.bf16 %v1236_v0, %v1215_v42 }
 0x45b   :  { %1820 = vrot.lane.b32.xlu1 %v1819_v23, %s2089_s30  ;;  %s2106_s30 = smov 20  }
 0x45e   :  { %v1217_v28 = vpop.f32.mrf.mxu3 }
 0x460   :  { %v1238_v9 = vpop.f32.mrf.mxu0  ;;  %v1341_v45 = vpop.f32.mrf.mxu1 }
 0x466   :  { %v1299_v34 = vpop.f32.mrf.mxu3 }
 0x468   :  { %v1320_v25 = vpop.f32.mrf.mxu0  ;;  %v1343_v15 = vpop.f32.mrf.mxu1 }
 0x469   :  { %v1829_v50 = vpack.i.bf16 %v1320_v25, %v1299_v34 }
 0x46b   :  { %1830 = vrot.lane.b32.xlu1 %v1829_v50, %s2104_s5 }
 0x46e   :  { %v1301_v2 = vpop.f32.mrf.mxu3 }
 0x470   :  { %v1322_v35 = vpop.f32.mrf.mxu0 }
 0x4b8   :  { %v1383_v20 = vpop.f32.mrf.mxu3 }
 0x4c0   :  { %v1385_v29 = vpop.f32.mrf.mxu3 }
 0x4c2   :  { %v1362_v56 = vpop.f32.mrf.mxu2 }
 0x4c3   :  { %v1834_v41 = vpack.i.bf16 %v1362_v56, %v1341_v45  ;;  %v1862_v45 = vld [vmem:[%s2809_s3] ss:$0 sm:$0xff]  ;;  %s2110_s3 = smov [#allocation10]  }
 0x4c4   :  { %v1404_v24 = vpop.f32.mrf.mxu0  ;;  %s1670_s22 = sshll.u32 %s2110_s3, 4  ;;  %s1671_s22 = int_to_ptr.vmem [resolvable:$true] %s1670_s22 }
 0x4c5   :  { %v1839_v46 = vpack.i.bf16 %v1404_v24, %v1383_v20  ;;  %1835 = vrot.lane.b32.xlu0 %v1834_v41, %s2105_s9  ;;  %v1826_v60 = vpop.permute.xlu0 %1825 }
 0x4c6   :  { %v1828_v57 = vunpack.i.h.bf16 %v1826_v60  ;;  %v1827_v49 = vunpack.i.l.bf16 %v1826_v60 }
 0x4c7   :  { %1840 = vrot.lane.b32.xlu1 %v1839_v46, %s2106_s30 }
 0x4ca   :  { %v1364_v32 = vpop.f32.mrf.mxu2 }
 0x4cc   :  { %v1406_v43 = vpop.f32.mrf.mxu0 }
 0x4cd   :  { %v1821_v40 = vpop.permute.xlu1 %1820 }
 0x4ce   :  { %v1425_v30 = vpop.f32.mrf.mxu1  ;;  %v1823_v12 = vunpack.i.h.bf16 %v1821_v40  ;;  %v1822_v31 = vunpack.i.l.bf16 %v1821_v40 }
 0x4d0   :  { %v1549_v62 = vsel %vm190_vm1, %v2710_v6, %v1823_v12  ;;  %v1548_v19 = vsel %vm190_vm1, %v2695_v61, %v1822_v31  ;;  %vm1558_vm1 = vcmask 162816  }
 0x4d1   :  { %v1550_v22 = vsel %vm570_vm2, %v1548_v19, %v1827_v49  ;;  %v1551_v38 = vsel %vm570_vm2, %v1549_v62, %v1828_v57  ;;  %vm1608_vm2 = vcmask 1041409  }
 0x4d2   :  { %v1446_v11 = vpop.f32.mrf.mxu2 }
 0x4d3   :  { %v1844_v52 = vpack.i.bf16 %v1446_v11, %v1425_v30 }
 0x4d4   :  { %v1488_v26 = vpop.f32.mrf.mxu0 }
 0x4d5   :  { %1845 = vrot.lane.b32.xlu0 %v1844_v52, %s2107_s18 }
 0x4d6   :  { %v1427_v1 = vpop.f32.mrf.mxu1 }
 0x4d7   :  { %v1467_v59 = vpop.f32.mrf.mxu3 }
 0x4d8   :  { %v1849_v37 = vpack.i.bf16 %v1488_v26, %v1467_v59 }
 0x4da   :  { %v1448_v33 = vpop.f32.mrf.mxu2  ;;  %1850 = vrot.lane.b32.xlu2 %v1849_v37, %s2108_s2 }
 0x4dc   :  { %v1490_v58 = vpop.f32.mrf.mxu0 }
 0x4dd   :  { %v1831_v14 = vpop.permute.xlu1 %1830 }
 0x4de   :  { %v1833_v48 = vunpack.i.h.bf16 %v1831_v14  ;;  %v1832_v36 = vunpack.i.l.bf16 %v1831_v14 }
 0x4df   :  { %v1469_v44 = vpop.f32.mrf.mxu3 }
 0x4e0   :  { %v1554_v4 = vsel %vm1552_vm3, %v1551_v38, %v1833_v48  ;;  %v1553_v8 = vsel %vm1552_vm3, %v1550_v22, %v1832_v36 }
 0x534   :  { %v1851_v6 = vpop.permute.xlu2 %1850 }
 0x535   :  { %v1853_v63 = vunpack.i.h.bf16 %v1851_v6  ;;  %v1852_v47 = vunpack.i.l.bf16 %v1851_v6 }
 0x537   :  { %v1836_v7 = vpop.permute.xlu0 %1835 }
 0x538   :  { %v1838_v16 = vunpack.i.h.bf16 %v1836_v7  ;;  %v1837_v5 = vunpack.i.l.bf16 %v1836_v7 }
 0x539   :  { %v1841_v10 = vpop.permute.xlu1 %1840 }
 0x53a   :  { %v1843_v55 = vunpack.i.h.bf16 %v1841_v10  ;;  %v1842_v54 = vunpack.i.l.bf16 %v1841_v10  ;;  %v1556_v17 = vsel %vm1555_vm8, %v1553_v8, %v1837_v5  ;;  %v1557_v3 = vsel %vm1555_vm8, %v1554_v4, %v1838_v16 }
 0x53c   :  { %v1560_v27 = vsel %vm1558_vm1, %v1557_v3, %v1843_v55  ;;  %v1559_v13 = vsel %vm1558_vm1, %v1556_v17, %v1842_v54 }
 0x547   :  { %v1846_v61 = vpop.permute.xlu0 %1845 }
 0x548   :  { %v1848_v21 = vunpack.i.h.bf16 %v1846_v61  ;;  %v1847_v51 = vunpack.i.l.bf16 %v1846_v61 }
 0x54a   :  { %v1563_v42 = vsel %vm1561_vm9, %v1560_v27, %v1848_v21  ;;  %v1562_v0 = vsel %vm1561_vm9, %v1559_v13, %v1847_v51 }
 0x54b   :  { %v1565_v23 = vsel %vm1564_vm10, %v1562_v0, %v1852_v47  ;;  %v1566_v18 = vsel %vm1564_vm10, %v1563_v42, %v1853_v63 }
 0x54c   :  { %v1567_v28 = vpack.c.bf16 %v1566_v18, %v1565_v23 }
 0x54e   :  { %1733 = vmatmul.msk.bf16.vlgmr.msra.gmra.mxu1 %vm107_vm0, %v1567_v28 }
 0x5cb   :  { %v1600_v9 = vpop.f32.mrf.mxu1 }
 0x5cc   :  { %v1601_v34 = vadd.f32 %v1862_v45, %v1600_v9 }
 0x5ce   :  { %v1611_v50 = vrot.slane %v1601_v34, 1  ;;  %v1638_v2 = vrot.slane %v1601_v34, 6  ;;  %v1632_v29 = vrot.slane %v1601_v34, 5  ;;  %v1628_v43 = vrot.slane %v1601_v34, 4 }
 0x5cf   :  { %v1622_v26 = vrot.slane %v1601_v34, 3  ;;  %v1644_v33 = vrot.slane %v1601_v34, 7  ;;  %v1616_v58 = vrot.slane %v1601_v34, 2 }
 0x5d3   :  { %v1602_v25 = vpop.f32.mrf.mxu1 }
 0x5d4   :  { %v1603_v15 = vadd.f32 %v1862_v45, %v1602_v25 }
 0x5d6   :  { %v1612_v35 = vsel %vm1608_vm2, %v1603_v15, %v1611_v50  ;;  %v1639_v20 = vrot.slane %v1603_v15, 5  ;;  %v1633_v56 = vrot.slane %v1603_v15, 4  ;;  %v1607_v41 = vrot.slane %v1603_v15, 7 }
 0x5d7   :  { %1613 = vrot.lane.b32.xlu2 %v1612_v35, %s2109_s20  ;;  %v1629_v24 = vrot.slane %v1603_v15, 3  ;;  %v1623_v11 = vrot.slane %v1603_v15, 2  ;;  %v1645_v1 = vrot.slane %v1603_v15, 6  ;;  %v1617_v59 = vrot.slane %v1603_v15, 1 }
 0x5d8   :  { %v1640_v46 = vsel %vm1608_vm2, %v1639_v20, %v1638_v2  ;;  %v1634_v32 = vsel %vm1608_vm2, %v1633_v56, %v1632_v29  ;;  %v1609_v30 = vsel %vm1608_vm2, %v1607_v41, %v1601_v34 }
 0x5d9   :  { %1641 = vrot.lane.b32.xlu0 %v1640_v46, %s2088_s29  ;;  %1635 = vrot.lane.b32.xlu1 %v1634_v32, %s2109_s20  ;;  %v1630_v52 = vsel %vm1608_vm2, %v1629_v24, %v1628_v43  ;;  %v1624_v37 = vsel %vm1608_vm2, %v1623_v11, %v1622_v26  ;;  %v1646_v44 = vsel %vm1608_vm2, %v1645_v1, %v1644_v33 }
 0x5da   :  { %v1618_v39 = vsel %vm1608_vm2, %v1617_v59, %v1616_v58 }
 0x5df   :  { %1625 = vrot.lane.b32.xlu2 %v1624_v37, %s2099_s21 }
 0x5e1   :  { %1647 = vrot.lane.b32.xlu1 %v1646_v44, %s2099_s21  ;;  %1619 = vrot.lane.b32.xlu0 %v1618_v39, %s2088_s29  ;;  %s1672_s21 = sshll.u32 %s2812_s6, 4  ;;  %s1673_s21 = int_to_ptr.hbm [resolvable:$true] %s1672_s21 }
 0x631   :  { %v1614_v53 = vpop.permute.xlu2 %1613 }
 0x632   :  { %v1650_v12 = vsel %vm107_vm0, %v1609_v30, %v1614_v53 }
 0x639   :  { %v1626_v19 = vpop.permute.xlu2 %1625 }
 0x64b   :  { %v1642_v40 = vpop.permute.xlu0 %1641  ;;  %v1636_v60 = vpop.permute.xlu1 %1635 }
 0x64c   :  { %v1655_v14 = vsel %vm107_vm0, %v1630_v52, %v1636_v60 }
 0x64d   :  { %v1656_v7 = vsel %vm1651_vm11, %v1655_v14, %v1642_v40 }
 0x653   :  { %v1648_v31 = vpop.permute.xlu1 %1647  ;;  %v1620_v62 = vpop.permute.xlu0 %1619 }
 0x654   :  { %v1657_v48 = vsel %vm1653_vm12, %v1656_v7, %v1648_v31  ;;  %v1652_v36 = vsel %vm1651_vm11, %v1650_v12, %v1620_v62 }
 0x655   :  { %v1660_v57 = vrot.slane %v1657_v48, 6  ;;  %v1654_v49 = vsel %vm1653_vm12, %v1652_v36, %v1626_v19 }
 0x657   :  { %v1662_v16 = vsel %vm1661_vm13, %v1654_v49, %v1660_v57 }
 0x658   :  { %1664 = vst [vmem:[#allocation10] sm:$0xf] %v1662_v16 }
 0x659   :  { %1675 = dma.vmem_to_hbm [thread:$0]  %s1671_s22, 64, %s1673_s21, [#allocation4]  }
 0x65a   :  { %2085 = dma.done.wait [#allocation4], 64  }
 0x65b   :  { %2086 = vsyncadd [#allocation4], 4294967232 }
 0x65c   :  { %1680 = vsyncpa [#allocation3], 1 }
 0x65d   :  { %1681 = vsyncpa [#allocation6], 1 }
 0x65e   :  { %1682 = vsyncpa [#allocation9], 1 }
 0x65f   :  { %1683 = vsyncpa [#allocation4], 1 }

// kernel: tpu_custom_call.1
= control target key start
LH: loop header
LB: loop body
LE: loop exit
PB: predicated region body
PF: predicated region fallthrough
CT: control target
= control target key end

     0   :  { %11 = vsyncpa [#allocation3], 0  ;;  %s2806_s0 = inlined_call_operand.hbm [shape: f32[2,8,32], index: 0, kind: input, shape index: {}]   ;;  %s2807_s1 = inlined_call_operand.hbm [shape: bf16[32,96], index: 1, kind: input, shape index: {}]   ;;  %s2808_s2 = inlined_call_operand.hbm [shape: bf16[32,32], index: 2, kind: input, shape index: {}]   ;;  %s2809_s3 = inlined_call_operand.vmem [shape: f32[1,32], index: 3, kind: input, shape index: {}]   ;;  %s2810_s4 = inlined_call_operand.hbm [shape: bf16[8,1,8,8], index: 4, kind: input, shape index: {}]   ;;  %s2811_s5 = inlined_call_operand.vmem [shape: f32[8,1,1,1], index: 5, kind: input, shape index: {}]   ;;  %s2812_s6 = inlined_call_operand.hbm [shape: f32[2,256], index: 6, kind: output, shape index: {}]  }
   0x1   :  { %12 = vsyncpa [#allocation6], 0 }
   0x2   :  { %13 = vsyncpa [#allocation9], 0  ;;  %s32_s23 = sshll.u32 %s2807_s1, 4  ;;  %s33_s23 = int_to_ptr.hbm [resolvable:$true] %s32_s23 }
   0x3   :  { %14 = vsyncpa [#allocation4], 0  ;;  %s2087_s24 = smov [#allocation5]   ;;  %s19_s28 = sshll.u32 %s2806_s0, 4  ;;  %s20_s28 = int_to_ptr.hbm [resolvable:$true] %s19_s28 }
   0x4   :  { %s34_s25 = sshll.u32 %s2087_s24, 4  ;;  %s2088_s29 = smov 64   ;;  %s35_s25 = int_to_ptr.vmem [resolvable:$true] %s34_s25 }
   0x5   :  { %s2089_s30 = smov 4   ;;  %s2090_s7 = smov [#allocation2]  }
   0x6   :  { %40 = dma.hbm_to_vmem [thread:$0]  %s33_s23, 256, %s35_s25, [#allocation6], %s2088_s29, %s2088_s29, %s2089_s30  }
   0x7   :  { %s21_s8 = sshll.u32 %s2090_s7, 4  ;;  %s2091_s1 = smov 128   ;;  %s22_s8 = int_to_ptr.vmem [resolvable:$true] %s21_s8 }
   0x8   :  { %s2092_s9 = smov 8   ;;  %s45_s12 = sshll.u32 %s2808_s2, 4  ;;  %s46_s12 = int_to_ptr.hbm [resolvable:$true] %s45_s12 }
   0x9   :  { %27 = dma.hbm_to_vmem [thread:$0]  %s20_s28, 256, %s22_s8, [#allocation3], %s2091_s1, %s2091_s1, %s2092_s9  }
   0xa   :  { %s2093_s0 = smov [#allocation7]   ;;  %s60_s16 = sshll.u32 %s2810_s4, 4  ;;  %s61_s16 = int_to_ptr.hbm [resolvable:$true] %s60_s16 }
   0xb   :  { %s47_s13 = sshll.u32 %s2093_s0, 4  ;;  %s2094_s17 = smov [#allocation8]   ;;  %s48_s13 = int_to_ptr.vmem [resolvable:$true] %s47_s13 }
   0xc   :  { %53 = dma.hbm_to_vmem [thread:$0]  %s46_s12, 256, %s48_s13, [#allocation6], %s2088_s29, %s2088_s29, %s2089_s30  }
   0xd   :  { %s62_s18 = sshll.u32 %s2094_s17, 4  ;;  %s63_s18 = int_to_ptr.vmem [resolvable:$true] %s62_s18 }
   0xe   :  { %68 = dma.hbm_to_vmem [thread:$0]  %s61_s16, 512, %s63_s18, [#allocation9], %s2088_s29, %s2088_s29, %s2089_s30  }
   0xf   :  { %2079 = dma.done.wait [#allocation3], 256  }
  0x10   :  { %2080 = vsyncadd [#allocation3], 4294967040 }
  0x11   :  { %2081 = dma.done.wait [#allocation6], 512  }
  0x12   :  { %2082 = vsyncadd [#allocation6], 4294966784 }
  0x13   :  { %2083 = dma.done.wait [#allocation9], 512  }
  0x14   :  { %2084 = vsyncadd [#allocation9], 4294966784  ;;  %v1735_v0 = vld [vmem:[#allocation5 + $0x8] sm:$0xff]  ;;  %v1734_v1 = vld [vmem:[#allocation5] sm:$0xff]  ;;  %vm107_vm0 = vcmask 261120   ;;  %s2095_s2 = smov 108  }
  0x15   :  { %v88_v2 = vld [vmem:[#allocation2] sm:$0xff]  ;;  %v89_v3 = vld [vmem:[#allocation2 + $0x8] sm:$0xff]  ;;  %117 = vmatpush.bf16.msra.mxu0 %v1735_v0  ;;  %s2096_s4 = smov 116   ;;  %s2097_s19 = smov 124   ;;  %vm190_vm1 = vcmask 31744   ;;  %v2103_v35 = vmov 0  }
  0x16   :  { %v90_v4 = vpack.c.bf16 %v89_v3, %v88_v2  ;;  %s2098_s20 = smov 112   ;;  %s2099_s21 = smov 96   ;;  %1818 = vset.pattern.permute.xlu2 %v2103_v35  ;;  %1817 = vset.pattern.permute.xlu1 %v2103_v35  ;;  %vm570_vm2 = vcmask 64512   ;;  %vm1160_vm3 = vcmask 1043456  }
  0x17   :  { %s2100_s22 = smov 120   ;;  %s2101_s23 = smov 104   ;;  %1816 = vset.pattern.permute.xlu0 %v2103_v35 }
  0x18   :  { %s2102_s24 = smov 100   ;;  %s2107_s18 = smov 24  }
  0x19   :  { %118 = vmatpush.bf16.msra.mxu0 %v1734_v1 }
  0x1c   :  { %1692 = vmatmul.msk.bf16.vlgmr.msra.gmra.mxu0 %vm107_vm0, %v90_v4 }
  0x99   :  { %v120_v5 = vpop.f32.mrf.mxu0 }
  0x9a   :  { %v2183_v23 = vpack.c.bf16 %v120_v5, %v120_v5 }
  0x9c   :  { %v186_v30 = vunpack.c.l.b16 %v2183_v23 }
  0x9e   :  { %v2201_v39 = vpack.c.b16 %v186_v30, %v186_v30  ;;  %v1861_v30 = vld [vmem:[%s2811_s5 + $0x5] ss:$0 sm:$0xff] }
  0xa1   :  { %v122_v6 = vpop.f32.mrf.mxu0 }
  0xa2   :  { %v1801_v7 = vpack.i.bf16 %v122_v6, %v120_v5  ;;  %v170_v8 = vpack.c.bf16 %v122_v6, %v122_v6  ;;  %v1796_v10 = vpack.i.bf16 %v120_v5, %v122_v6 }
  0xa4   :  { %1802 = vrot.lane.b32.xlu2 %v1801_v7, %s2095_s2  ;;  %1792 = vrot.lane.b32.xlu1 %v1801_v7, %s2096_s4  ;;  %v211_v9 = vunpack.c.l.b16 %v170_v8  ;;  %s2108_s2 = smov 28  }
  0xa5   :  { %1782 = vrot.lane.b32.xlu0 %v1801_v7, %s2097_s19 }
  0xa6   :  { %v2169_v11 = vpack.c.b16 %v211_v9, %v211_v9 }
  0xac   :  { %1797 = vrot.lane.b32.xlu1 %v1796_v10, %s2098_s20  ;;  %213 = vrot.lane.b32.xlu2 %v2169_v11, %s2099_s21  ;;  %s2109_s20 = smov 32  }
  0xad   :  { %1787 = vrot.lane.b32.xlu0 %v1796_v10, %s2100_s22 }
  0xb4   :  { %1807 = vrot.lane.b32.xlu1 %v1796_v10, %s2101_s23  ;;  %1812 = vrot.lane.b32.xlu2 %v1801_v7, %s2102_s24 }
  0xfe   :  { %v2173_v12 = vpop.permute.xlu2 %1802 }
  0xff   :  { %v1804_v31 = vunpack.i.l.bf16 %v2173_v12  ;;  %v1805_v59 = vunpack.i.h.bf16 %v2173_v12 }
 0x101   :  { %v2203_v40 = vpack.c.bf16 %v1804_v31, %v1804_v31  ;;  %v2238_v1 = vpack.c.bf16 %v1805_v59, %v1805_v59 }
 0x103   :  { %v427_v46 = vunpack.c.l.b16 %v2203_v40  ;;  %v451_v7 = vunpack.c.l.b16 %v2238_v1 }
 0x105   :  { %v2226_v54 = vpack.c.b16 %v427_v46, %v427_v46 }
 0x106   :  { %v214_v13 = vpop.permute.xlu2 %213 }
 0x107   :  { %v219_v14 = vsel %vm190_vm1, %v214_v13, 0  ;;  %v2258_v13 = vpack.c.b16 %v451_v7, %v451_v7 }
 0x108   :  { %228 = vmatpush.bf16.xpose.msra.mxu2 %v219_v14 }
 0x10e   :  { %v1813_v56 = vpop.permute.xlu2 %1812 }
 0x10f   :  { %1694 = vmatmul.msk.bf16.vlgmr.msra.gmra.mxu2 %vm190_vm1, %v170_v8  ;;  %v1815_v60 = vunpack.i.h.bf16 %v1813_v56  ;;  %v1814_v63 = vunpack.i.l.bf16 %v1813_v56 }
 0x111   :  { %v2240_v2 = vpack.c.bf16 %v1815_v60, %v1815_v60  ;;  %v2244_v5 = vpack.c.bf16 %v1814_v63, %v1814_v63 }
 0x113   :  { %v547_v8 = vunpack.c.l.b16 %v2240_v2  ;;  %v523_v10 = vunpack.c.l.b16 %v2244_v5 }
 0x115   :  { %v2260_v14 = vpack.c.b16 %v547_v8, %v547_v8 }
 0x116   :  { %v1793_v15 = vpop.permute.xlu1 %1792 }
 0x117   :  { %v1783_v16 = vpop.permute.xlu0 %1782  ;;  %v1794_v32 = vunpack.i.l.bf16 %v1793_v15  ;;  %v1795_v36 = vunpack.i.h.bf16 %v1793_v15  ;;  %v2262_v15 = vpack.c.b16 %v523_v10, %v523_v10 }
 0x118   :  { %v1785_v17 = vunpack.i.h.bf16 %v1783_v16  ;;  %v1784_v18 = vunpack.i.l.bf16 %v1783_v16 }
 0x119   :  { %v2205_v41 = vpack.c.bf16 %v1794_v32, %v1794_v32  ;;  %v2211_v44 = vpack.c.bf16 %v1795_v36, %v1795_v36 }
 0x11a   :  { %v2177_v19 = vpack.c.bf16 %v1785_v17, %v1785_v17  ;;  %v2179_v20 = vpack.c.bf16 %v1784_v18, %v1784_v18  ;;  %v1854_v17 = vld [vmem:[%s2811_s5 + $0x1] ss:$0 sm:$0xff]  ;;  %v1855_v18 = vld [vmem:[%s2811_s5 + $0x2] ss:$0 sm:$0xff] }
 0x11b   :  { %v331_v47 = vunpack.c.l.b16 %v2205_v41  ;;  %v355_v50 = vunpack.c.l.b16 %v2211_v44 }
 0x11c   :  { %v259_v21 = vunpack.c.l.b16 %v2177_v19  ;;  %v235_v22 = vunpack.c.l.b16 %v2179_v20 }
 0x11d   :  { %v332_v55 = vpack.c.b16 %v331_v47, %v331_v47  ;;  %v356_v58 = vpack.c.b16 %v355_v50, %v355_v50 }
 0x11e   :  { %v1798_v24 = vpop.permute.xlu1 %1797  ;;  %v2185_v25 = vpack.c.b16 %v259_v21, %v259_v21  ;;  %v2187_v26 = vpack.c.b16 %v235_v22, %v235_v22  ;;  %v1856_v22 = vld [vmem:[%s2811_s5] ss:$0 sm:$0xff] }
 0x11f   :  { %v1788_v27 = vpop.permute.xlu0 %1787  ;;  %v1799_v48 = vunpack.i.l.bf16 %v1798_v24  ;;  %v1800_v51 = vunpack.i.h.bf16 %v1798_v24  ;;  %v1857_v24 = vld [vmem:[%s2811_s5 + $0x4] ss:$0 sm:$0xff] }
 0x120   :  { %v1790_v28 = vunpack.i.h.bf16 %v1788_v27  ;;  %v1789_v29 = vunpack.i.l.bf16 %v1788_v27  ;;  %261 = vrot.lane.b32.xlu1 %v2185_v25, %s2099_s21  ;;  %237 = vrot.lane.b32.xlu0 %v2187_v26, %s2099_s21  ;;  %v1858_v27 = vld [vmem:[%s2811_s5 + $0x6] ss:$0 sm:$0xff] }
 0x121   :  { %v2222_v52 = vpack.c.bf16 %v1799_v48, %v1799_v48  ;;  %v2228_v57 = vpack.c.bf16 %v1800_v51, %v1800_v51 }
 0x122   :  { %v2195_v33 = vpack.c.bf16 %v1790_v28, %v1790_v28  ;;  %v2197_v34 = vpack.c.bf16 %v1789_v29, %v1789_v29  ;;  %v1859_v28 = vld [vmem:[%s2811_s5 + $0x3] ss:$0 sm:$0xff]  ;;  %v1860_v29 = vld [vmem:[%s2811_s5 + $0x7] ss:$0 sm:$0xff]  ;;  %s2104_s5 = smov 12  }
 0x123   :  { %v403_v61 = vunpack.c.l.b16 %v2222_v52  ;;  %v379_v0 = vunpack.c.l.b16 %v2228_v57 }
 0x124   :  { %v283_v37 = vunpack.c.l.b16 %v2195_v33  ;;  %v307_v38 = vunpack.c.l.b16 %v2197_v34 }
 0x125   :  { %v404_v4 = vpack.c.b16 %v403_v61, %v403_v61  ;;  %v2246_v6 = vpack.c.b16 %v379_v0, %v379_v0 }
 0x126   :  { %v2207_v42 = vpack.c.b16 %v283_v37, %v283_v37  ;;  %v2209_v43 = vpack.c.b16 %v307_v38, %v307_v38  ;;  %v1808_v45 = vpop.permute.xlu1 %1807 }
 0x127   :  { %v1809_v49 = vunpack.i.l.bf16 %v1808_v45  ;;  %v1810_v9 = vunpack.i.h.bf16 %v1808_v45 }
 0x128   :  { %285 = vrot.lane.b32.xlu1 %v2207_v42, %s2099_s21  ;;  %188 = vrot.lane.b32.xlu0 %v2201_v39, %s2099_s21 }
 0x129   :  { %309 = vrot.lane.b32.xlu2 %v2209_v43, %s2099_s21  ;;  %v2224_v53 = vpack.c.bf16 %v1809_v49, %v1809_v49  ;;  %v2256_v12 = vpack.c.bf16 %v1810_v9, %v1810_v9 }
 0x12b   :  { %v499_v62 = vunpack.c.l.b16 %v2224_v53  ;;  %v475_v16 = vunpack.c.l.b16 %v2256_v12 }
 0x12d   :  { %v2242_v3 = vpack.c.b16 %v499_v62, %v499_v62  ;;  %v2277_v21 = vpack.c.b16 %v475_v16, %v475_v16 }
 0x130   :  { %429 = vrot.lane.b32.xlu1 %v2226_v54, %s2099_s21  ;;  %333 = vrot.lane.b32.xlu0 %v332_v55, %s2099_s21 }
 0x131   :  { %357 = vrot.lane.b32.xlu2 %v356_v58, %s2099_s21 }
 0x138   :  { %501 = vrot.lane.b32.xlu1 %v2242_v3, %s2099_s21  ;;  %405 = vrot.lane.b32.xlu0 %v404_v4, %s2099_s21 }
 0x139   :  { %381 = vrot.lane.b32.xlu2 %v2246_v6, %s2099_s21 }
 0x140   :  { %453 = vrot.lane.b32.xlu0 %v2258_v13, %s2099_s21  ;;  %549 = vrot.lane.b32.xlu1 %v2260_v14, %s2099_s21 }
 0x141   :  { %525 = vrot.lane.b32.xlu2 %v2262_v15, %s2099_s21 }
 0x148   :  { %477 = vrot.lane.b32.xlu0 %v2277_v21, %s2099_s21  ;;  %776 = vperm.xlu1 %1817, %v1854_v17  }
 0x149   :  { %780 = vperm.xlu2 %1818, %v1855_v18  }
 0x150   :  { %772 = vperm.xlu0 %1816, %v1856_v22   ;;  %788 = vperm.xlu1 %1817, %v1857_v24  }
 0x151   :  { %796 = vperm.xlu2 %1818, %v1858_v27  }
 0x158   :  { %784 = vperm.xlu0 %1816, %v1859_v28   ;;  %800 = vperm.xlu1 %1817, %v1860_v29  }
 0x159   :  { %1219 = vrot.lane.b32.xlu2 %v2185_v25, %s2088_s29 }
 0x160   :  { %792 = vperm.xlu0 %1816, %v1861_v30   ;;  %1177 = vrot.lane.b32.xlu1 %v2169_v11, %s2088_s29 }
 0x161   :  { %1261 = vrot.lane.b32.xlu2 %v2209_v43, %s2088_s29 }
 0x168   :  { %1198 = vrot.lane.b32.xlu0 %v2187_v26, %s2088_s29  ;;  %1282 = vrot.lane.b32.xlu1 %v332_v55, %s2088_s29 }
 0x169   :  { %1345 = vrot.lane.b32.xlu2 %v404_v4, %s2088_s29 }
 0x170   :  { %1155 = vrot.lane.b32.xlu0 %v2201_v39, %s2088_s29  ;;  %1303 = vrot.lane.b32.xlu1 %v356_v58, %s2088_s29 }
 0x178   :  { %1240 = vrot.lane.b32.xlu0 %v2207_v42, %s2088_s29 }
 0x183   :  { %v310_v25 = vpop.permute.xlu2 %309 }
 0x184   :  { %v315_v11 = vsel %vm190_vm1, %v310_v25, 0 }
 0x185   :  { %324 = vmatpush.bf16.xpose.msrb.mxu2 %v315_v11 }
 0x18b   :  { %v358_v31 = vpop.permute.xlu2 %357 }
 0x18c   :  { %1698 = vmatmul.msk.bf16.vlgmr.msrb.gmra.mxu2 %vm190_vm1, %v2197_v34  ;;  %v363_v39 = vsel %vm190_vm1, %v358_v31, 0 }
 0x192   :  { %v262_v26 = vpop.permute.xlu1 %261  ;;  %v238_v32 = vpop.permute.xlu0 %237 }
 0x193   :  { %v382_v35 = vpop.permute.xlu2 %381  ;;  %v2317_v36 = vpop.f32.mrf.mxu2  ;;  %v243_v37 = vsel %vm190_vm1, %v238_v32, 0  ;;  %v267_v38 = vsel %vm190_vm1, %v262_v26, 0 }
 0x194   :  { %252 = vmatpush.bf16.xpose.msra.mxu3 %v243_v37  ;;  %276 = vmatpush.bf16.xpose.msrb.mxu0 %v267_v38  ;;  %v574_v42 = vsel %vm570_vm2, %v2317_v36, -inf  ;;  %v387_v51 = vsel %vm190_vm1, %v382_v35, 0 }
 0x195   :  { %575 = vmax.xlane.f32.xlu2 %v574_v42 }
 0x19a   :  { %v286_v34 = vpop.permute.xlu1 %285  ;;  %v189_v43 = vpop.permute.xlu0 %188 }
 0x19b   :  { %v526_v45 = vpop.permute.xlu2 %525  ;;  %v232_v46 = vpop.f32.mrf.mxu2  ;;  %1695 = vmatmul.msk.bf16.vlgmr.msra.gmra.mxu3 %vm190_vm1, %v2179_v20  ;;  %1696 = vmatmul.msk.bf16.vlgmr.msrb.gmra.mxu0 %vm190_vm1, %v2177_v19  ;;  %v195_v47 = vsel %vm190_vm1, %v189_v43, 0  ;;  %v291_v48 = vsel %vm190_vm1, %v286_v34, 0 }
 0x19c   :  { %372 = vmatpush.bf16.xpose.msra.mxu0 %v363_v39  ;;  %204 = vmatpush.bf16.xpose.msra.mxu1 %v195_v47  ;;  %v531_v59 = vsel %vm190_vm1, %v526_v45, 0 }
 0x1a2   :  { %v430_v49 = vpop.permute.xlu1 %429  ;;  %v334_v50 = vpop.permute.xlu0 %333 }
 0x1a3   :  { %v435_v55 = vsel %vm190_vm1, %v430_v49, 0  ;;  %1693 = vmatmul.msk.bf16.vlgmr.msra.gmra.mxu1 %vm190_vm1, %v2183_v23  ;;  %v339_v20 = vsel %vm190_vm1, %v334_v50, 0  ;;  %v2335_v56 = vpop.permute.xlu2 %780 }
 0x1a4   :  { %300 = vmatpush.bf16.xpose.msrb.mxu1 %v291_v48  ;;  %348 = vmatpush.bf16.xpose.msrb.mxu3 %v339_v20 }
 0x1aa   :  { %v502_v19 = vpop.permute.xlu1 %501  ;;  %v406_v58 = vpop.permute.xlu0 %405 }
 0x1ab   :  { %v507_v60 = vsel %vm190_vm1, %v502_v19, 0  ;;  %v411_v61 = vsel %vm190_vm1, %v406_v58, 0  ;;  %1699 = vmatmul.msk.bf16.vlgmr.msrb.gmra.mxu3 %vm190_vm1, %v2205_v41  ;;  %1700 = vmatmul.msk.bf16.vlgmr.msra.gmra.mxu0 %vm190_vm1, %v2211_v44  ;;  %v2344_v23 = vpop.permute.xlu2 %796 }
 0x1ac   :  { %396 = vmatpush.bf16.xpose.msra.mxu1 %v387_v51  ;;  %444 = vmatpush.bf16.xpose.msra.mxu3 %v435_v55 }
 0x1ad   :  { %420 = vmatpush.bf16.xpose.msra.mxu2 %v411_v61 }
 0x1b2   :  { %v454_v62 = vpop.permute.xlu0 %453  ;;  %v550_v63 = vpop.permute.xlu1 %549 }
 0x1b3   :  { %v459_v0 = vsel %vm190_vm1, %v454_v62, 0  ;;  %v555_v4 = vsel %vm190_vm1, %v550_v63, 0  ;;  %1697 = vmatmul.msk.bf16.vlgmr.msrb.gmra.mxu1 %vm190_vm1, %v2195_v33  ;;  %v1220_v41 = vpop.permute.xlu2 %1219 }
 0x1b4   :  { %540 = vmatpush.bf16.xpose.msrb.mxu3 %v531_v59  ;;  %1702 = vmatmul.msk.bf16.vlgmr.msra.gmra.mxu2 %vm190_vm1, %v2222_v52  ;;  %v1225_v8 = vsel %vm1160_vm3, %v1220_v41, 0 }
 0x1b5   :  { %516 = vmatpush.bf16.xpose.msrb.mxu2 %v507_v60  ;;  %468 = vmatpush.bf16.xpose.msrb.mxu0 %v459_v0 }
 0x1ba   :  { %v478_v44 = vpop.permute.xlu0 %477  ;;  %v2352_v7 = vpop.permute.xlu1 %776 }
 0x1bb   :  { %v483_v9 = vsel %vm190_vm1, %v478_v44, 0  ;;  %1703 = vmatmul.msk.bf16.vlgmr.msra.gmra.mxu3 %vm190_vm1, %v2203_v40  ;;  %v1262_v40 = vpop.permute.xlu2 %1261 }
 0x1bc   :  { %1704 = vmatmul.msk.bf16.vlgmr.msrb.gmra.mxu0 %vm190_vm1, %v2238_v1  ;;  %492 = vmatpush.bf16.xpose.msrb.mxu1 %v483_v9 }
 0x1bd   :  { %564 = vmatpush.bf16.xpose.msra.mxu0 %v555_v4 }
 0x1c2   :  { %v2360_v33 = vpop.permute.xlu0 %772  ;;  %v2362_v52 = vpop.permute.xlu1 %788 }
 0x1c3   :  { %1701 = vmatmul.msk.bf16.vlgmr.msra.gmra.mxu1 %vm190_vm1, %v2228_v57  ;;  %v2393_v32 = vpop.permute.xlu2 %1345 }
 0x1c4   :  { %1706 = vmatmul.msk.bf16.vlgmr.msrb.gmra.mxu2 %vm190_vm1, %v2224_v53  ;;  %v1267_v53 = vsel %vm1160_vm3, %v1262_v40, 0 }
 0x1c5   :  { %1234 = vmatpush.bf16.msrb.mxu0 %v1225_v8 }
 0x1ca   :  { %v2368_v10 = vpop.permute.xlu0 %784  ;;  %v2370_v16 = vpop.permute.xlu1 %800 }
 0x1cb   :  { %1707 = vmatmul.msk.bf16.vlgmr.msrb.gmra.mxu3 %vm190_vm1, %v2244_v5 }
 0x1cc   :  { %1708 = vmatmul.msk.bf16.vlgmr.msra.gmra.mxu0 %vm190_vm1, %v2240_v2 }
 0x1d2   :  { %v2376_v1 = vpop.permute.xlu0 %792  ;;  %v1178_v17 = vpop.permute.xlu1 %1177 }
 0x1d3   :  { %v1183_v18 = vsel %vm1160_vm3, %v1178_v17, 0  ;;  %1705 = vmatmul.msk.bf16.vlgmr.msrb.gmra.mxu1 %vm190_vm1, %v2256_v12 }
 0x1d4   :  { %1192 = vmatpush.bf16.msra.mxu2 %v1183_v18 }
 0x1d8   :  { %1276 = vmatpush.bf16.msrb.mxu2 %v1267_v53 }
 0x1da   :  { %v1199_v57 = vpop.permute.xlu0 %1198  ;;  %v1283_v22 = vpop.permute.xlu1 %1282 }
 0x1db   :  { %v1204_v5 = vsel %vm1160_vm3, %v1199_v57, 0  ;;  %v1288_v24 = vsel %vm1160_vm3, %v1283_v22, 0 }
 0x1dc   :  { %1213 = vmatpush.bf16.msra.mxu3 %v1204_v5 }
 0x1e0   :  { %1297 = vmatpush.bf16.msrb.mxu3 %v1288_v24 }
 0x1e2   :  { %v1156_v2 = vpop.permute.xlu0 %1155  ;;  %v1304_v27 = vpop.permute.xlu1 %1303 }
 0x1e3   :  { %v1162_v28 = vsel %vm1160_vm3, %v1156_v2, 0  ;;  %v1309_v29 = vsel %vm1160_vm3, %v1304_v27, 0 }
 0x1e4   :  { %1171 = vmatpush.bf16.msra.mxu1 %v1162_v28  ;;  %1318 = vmatpush.bf16.msra.mxu0 %v1309_v29 }
 0x1ea   :  { %v1241_v12 = vpop.permute.xlu0 %1240 }
 0x1eb   :  { %v1246_v30 = vsel %vm1160_vm3, %v1241_v12, 0 }
 0x1ec   :  { %1255 = vmatpush.bf16.msrb.mxu1 %v1246_v30 }
 0x208   :  { %v576_v43 = vpop.xlane.xlu2 %575 }
 0x209   :  { %v620_v45 = vsub.f32 %v2317_v36, %v576_v43 }
 0x20b   :  { %v637_v49 = vmul.f32 1.442695, %v620_v45 }
 0x20d   :  { %1863 = vpow2.f32 %v637_v49 }
 0x20f   :  { %v2387_v25 = vpop.f32.mrf.mxu2 }
 0x210   :  { %v586_v34 = vsel %vm570_vm2, %v2387_v25, -inf }
 0x213   :  { %v2410_v58 = vpop.eup %1863 }
 0x214   :  { %v670_v60 = vsel %vm570_vm2, %v2410_v58, 0.0 }
 0x217   :  { %v328_v11 = vpop.f32.mrf.mxu2 }
 0x218   :  { %v2389_v31 = vpop.f32.mrf.mxu0 }
 0x219   :  { %v580_v26 = vsel %vm570_vm2, %v2389_v31, -inf }
 0x21a   :  { %581 = vmax.xlane.f32.xlu2 %v580_v26 }
 0x21e   :  { %v2395_v35 = vpop.f32.mrf.mxu3 }
 0x21f   :  { %v577_v37 = vsel %vm570_vm2, %v2395_v35, -inf }
 0x220   :  { %v280_v38 = vpop.f32.mrf.mxu0  ;;  %578 = vmax.xlane.f32.xlu0 %v577_v37  ;;  %v206_v39 = vpop.f32.mrf.mxu1 }
 0x221   :  { %v571_v42 = vsel %vm570_vm2, %v206_v39, -inf }
 0x222   :  { %572 = vmax.xlane.f32.xlu1 %v571_v42  ;;  %587 = vmax.xlane.f32.xlu2 %v586_v34 }
 0x226   :  { %v256_v46 = vpop.f32.mrf.mxu3 }
 0x228   :  { %v208_v47 = vpop.f32.mrf.mxu1  ;;  %v2403_v48 = vpop.f32.mrf.mxu0 }
 0x229   :  { %v592_v57 = vsel %vm570_vm2, %v2403_v48, -inf }
 0x22e   :  { %v2405_v50 = vpop.f32.mrf.mxu3 }
 0x22f   :  { %v589_v51 = vsel %vm570_vm2, %v2405_v50, -inf }
 0x230   :  { %v302_v55 = vpop.f32.mrf.mxu1  ;;  %590 = vmax.xlane.f32.xlu0 %v589_v51  ;;  %v376_v20 = vpop.f32.mrf.mxu0 }
 0x231   :  { %v583_v19 = vsel %vm570_vm2, %v302_v55, -inf }
 0x232   :  { %584 = vmax.xlane.f32.xlu1 %v583_v19 }
 0x236   :  { %v352_v36 = vpop.f32.mrf.mxu3 }
 0x237   :  { %v2412_v59 = vpop.f32.mrf.mxu2 }
 0x238   :  { %v304_v61 = vpop.f32.mrf.mxu1  ;;  %671 = vadd.xlane.f32.xlu0 %v670_v60  ;;  %v598_v4 = vsel %vm570_vm2, %v2412_v59, -inf }
 0x239   :  { %v2416_v62 = vpop.f32.mrf.mxu0 }
 0x23a   :  { %v604_v17 = vsel %vm570_vm2, %v2416_v62, -inf }
 0x23e   :  { %v2418_v0 = vpop.f32.mrf.mxu3 }
 0x23f   :  { %v424_v63 = vpop.f32.mrf.mxu2 }
 0x240   :  { %v398_v41 = vpop.f32.mrf.mxu1  ;;  %599 = vmax.xlane.f32.xlu0 %v598_v4 }
 0x241   :  { %v472_v44 = vpop.f32.mrf.mxu0  ;;  %v595_v8 = vsel %vm570_vm2, %v398_v41, -inf }
 0x242   :  { %596 = vmax.xlane.f32.xlu2 %v595_v8 }
 0x246   :  { %v448_v9 = vpop.f32.mrf.mxu3 }
 0x247   :  { %v2423_v40 = vpop.f32.mrf.mxu2 }
 0x248   :  { %v400_v18 = vpop.f32.mrf.mxu1  ;;  %605 = vmax.xlane.f32.xlu0 %v604_v17 }
 0x249   :  { %v2427_v53 = vpop.f32.mrf.mxu0 }
 0x24a   :  { %593 = vmax.xlane.f32.xlu2 %v592_v57  ;;  %v616_v24 = vsel %vm570_vm2, %v2427_v53, -inf }
 0x24e   :  { %v2431_v5 = vpop.f32.mrf.mxu3 }
 0x24f   :  { %v520_v22 = vpop.f32.mrf.mxu2  ;;  %v613_v30 = vsel %vm570_vm2, %v2431_v5, -inf }
 0x250   :  { %v2435_v2 = vpop.f32.mrf.mxu1  ;;  %617 = vmax.xlane.f32.xlu0 %v616_v24 }
 0x251   :  { %v568_v27 = vpop.f32.mrf.mxu0  ;;  %v607_v28 = vsel %vm570_vm2, %v2435_v2, -inf }
 0x252   :  { %608 = vmax.xlane.f32.xlu2 %v607_v28 }
 0x256   :  { %v544_v29 = vpop.f32.mrf.mxu3 }
 0x258   :  { %v496_v12 = vpop.f32.mrf.mxu1 }
 0x25a   :  { %614 = vmax.xlane.f32.xlu2 %v613_v30 }
 0x28d   :  { %v582_v43 = vpop.xlane.xlu2 %581 }
 0x28e   :  { %v622_v47 = vsub.f32 %v2389_v31, %v582_v43  ;;  %v610_v31 = vsel %vm570_vm2, %v2423_v40, -inf }
 0x290   :  { %v641_v19 = vmul.f32 1.442695, %v622_v47 }
 0x293   :  { %v579_v38 = vpop.xlane.xlu0 %578 }
 0x294   :  { %v621_v51 = vsub.f32 %v2395_v35, %v579_v38 }
 0x295   :  { %v573_v11 = vpop.xlane.xlu1 %572  ;;  %v588_v60 = vpop.xlane.xlu2 %587 }
 0x296   :  { %v619_v26 = vsub.f32 %v206_v39, %v573_v11  ;;  %v601_v39 = vsel %vm570_vm2, %v2418_v0, -inf  ;;  %v639_v36 = vmul.f32 1.442695, %v621_v51 }
 0x298   :  { %v635_v37 = vmul.f32 1.442695, %v619_v26 }
 0x29a   :  { %1865 = vpow2.f32 %v635_v37 }
 0x2a0   :  { %v2441_v42 = vpop.eup %1865 }
 0x2a1   :  { %v667_v34 = vsel %vm570_vm2, %v2441_v42, 0.0 }
 0x2a2   :  { %668 = vadd.xlane.f32.xlu1 %v667_v34 }
 0x2a3   :  { %v591_v49 = vpop.xlane.xlu0 %590 }
 0x2a4   :  { %v625_v18 = vsub.f32 %v2405_v50, %v591_v49 }
 0x2a5   :  { %v585_v45 = vpop.xlane.xlu1 %584 }
 0x2a6   :  { %v623_v46 = vsub.f32 %v302_v55, %v585_v45  ;;  %v624_v55 = vsub.f32 %v2387_v25, %v588_v60  ;;  %v647_v27 = vmul.f32 1.442695, %v625_v18  ;;  %v2492_v60 = vld [vmem:[#allocation8] sm:$0xff]  }
 0x2a8   :  { %v643_v20 = vmul.f32 1.442695, %v623_v46  ;;  %v645_v4 = vmul.f32 1.442695, %v624_v55 }
 0x2aa   :  { %1867 = vpow2.f32 %v643_v20  ;;  %602 = vmax.xlane.f32.xlu1 %v601_v39 }
 0x2ab   :  { %1869 = vpow2.f32 %v641_v19  ;;  %v672_v63 = vpop.xlane.xlu0 %671 }
 0x2ac   :  { %1871 = vpow2.f32 %v639_v36 }
 0x2ad   :  { %1873 = vpow2.f32 %v645_v4 }
 0x2b0   :  { %v2449_v61 = vpop.eup %1867 }
 0x2b1   :  { %v679_v35 = vsel %vm570_vm2, %v2449_v61, 0.0  ;;  %v2456_v44 = vpop.eup %1869 }
 0x2b2   :  { %611 = vmax.xlane.f32.xlu1 %v610_v31  ;;  %680 = vadd.xlane.f32.xlu2 %v679_v35  ;;  %v2458_v9 = vpop.eup %1871  ;;  %v676_v22 = vsel %vm570_vm2, %v2456_v44, 0.0 }
 0x2b3   :  { %v673_v57 = vsel %vm570_vm2, %v2458_v9, 0.0  ;;  %v600_v24 = vpop.xlane.xlu0 %599  ;;  %v2465_v29 = vpop.eup %1873 }
 0x2b4   :  { %v682_v30 = vsel %vm570_vm2, %v2465_v29, 0.0 }
 0x2b5   :  { %v597_v8 = vpop.xlane.xlu2 %596 }
 0x2b6   :  { %v627_v17 = vsub.f32 %v398_v41, %v597_v8 }
 0x2b8   :  { %v651_v25 = vmul.f32 1.442695, %v627_v17  ;;  %v1740_v17 = vunpack.c.l.bf16 %v2492_v60 }
 0x2ba   :  { %1875 = vpow2.f32 %v651_v25  ;;  %674 = vadd.xlane.f32.xlu1 %v673_v57  ;;  %677 = vadd.xlane.f32.xlu2 %v676_v22 }
 0x2bb   :  { %1877 = vpow2.f32 %v647_v27  ;;  %v606_v26 = vpop.xlane.xlu0 %605 }
 0x2bc   :  { %v630_v43 = vsub.f32 %v2416_v62, %v606_v26 }
 0x2bd   :  { %v594_v28 = vpop.xlane.xlu2 %593 }
 0x2be   :  { %v626_v41 = vsub.f32 %v2403_v48, %v594_v28  ;;  %v657_v49 = vmul.f32 1.442695, %v630_v43 }
 0x2c0   :  { %v2468_v12 = vpop.eup %1875  ;;  %v649_v50 = vmul.f32 1.442695, %v626_v41 }
 0x2c1   :  { %v691_v11 = vsel %vm570_vm2, %v2468_v12, 0.0  ;;  %v2474_v38 = vpop.eup %1877 }
 0x2c2   :  { %1879 = vpow2.f32 %v649_v50  ;;  %683 = vadd.xlane.f32.xlu2 %v682_v30  ;;  %692 = vadd.xlane.f32.xlu1 %v691_v11  ;;  %v685_v46 = vsel %vm570_vm2, %v2474_v38, 0.0 }
 0x2c5   :  { %v609_v37 = vpop.xlane.xlu2 %608 }
 0x2c6   :  { %v631_v34 = vsub.f32 %v2435_v2, %v609_v37  ;;  %v618_v37 = vpop.xlane.xlu0 %617 }
 0x2c8   :  { %v2477_v48 = vpop.eup %1879  ;;  %v659_v45 = vmul.f32 1.442695, %v631_v34 }
 0x2c9   :  { %v688_v47 = vsel %vm570_vm2, %v2477_v48, 0.0 }
 0x2ca   :  { %1881 = vpow2.f32 %v659_v45  ;;  %686 = vadd.xlane.f32.xlu2 %v685_v46  ;;  %689 = vadd.xlane.f32.xlu1 %v688_v47 }
 0x2cb   :  { %1883 = vpow2.f32 %v657_v49  ;;  %v634_v49 = vsub.f32 %v2427_v53, %v618_v37 }
 0x2cc   :  { %1885 = vrcp.f32 %v672_v63  ;;  %v628_v63 = vsub.f32 %v2412_v59, %v600_v24 }
 0x2cd   :  { %v615_v55 = vpop.xlane.xlu2 %614 }
 0x2ce   :  { %v633_v59 = vsub.f32 %v2431_v5, %v615_v55 }
 0x2d0   :  { %v2484_v51 = vpop.eup %1881  ;;  %v663_v26 = vmul.f32 1.442695, %v633_v59 }
 0x2d1   :  { %v703_v2 = vsel %vm570_vm2, %v2484_v51, 0.0  ;;  %v2488_v20 = vpop.eup %1883 }
 0x2d2   :  { %704 = vadd.xlane.f32.xlu1 %v703_v2  ;;  %v700_v62 = vsel %vm570_vm2, %v2488_v20, 0.0  ;;  %v1886_v19 = vpop.eup %1885 }
 0x2d3   :  { %v732_v18 = vmul.f32 %v1886_v19, %v2410_v58 }
 0x2d5   :  { %v804_v27 = vmul.f32 %v2360_v33, %v732_v18 }
 0x2d7   :  { %v2506_v50 = vadd.f32 %v1740_v17, %v804_v27 }
 0x2d9   :  { %v854_v11 = vsel %vm570_vm2, %v2506_v50, 0.0 }
 0x2da   :  { %701 = vadd.xlane.f32.xlu1 %v700_v62 }
 0x315   :  { %v669_v39 = vpop.xlane.xlu1 %668 }
 0x316   :  { %1887 = vrcp.f32 %v669_v39 }
 0x31c   :  { %v1888_v36 = vpop.eup %1887 }
 0x31d   :  { %v603_v31 = vpop.xlane.xlu1 %602  ;;  %v731_v35 = vmul.f32 %v1888_v36, %v2441_v42  ;;  %v653_v42 = vmul.f32 1.442695, %v628_v63  ;;  %v665_v36 = vmul.f32 1.442695, %v634_v49 }
 0x31e   :  { %v629_v4 = vsub.f32 %v2418_v0, %v603_v31 }
 0x31f   :  { %v803_v8 = vmul.f32 %v2360_v33, %v731_v35  ;;  %v2513_v33 = vld [vmem:[#allocation8 + $0x8] sm:$0xff]  }
 0x320   :  { %v655_v25 = vmul.f32 1.442695, %v629_v4  ;;  %v1744_v5 = vunpack.c.l.bf16 %v2513_v33 }
 0x321   :  { %v2500_v57 = vadd.f32 %v1740_v17, %v803_v8 }
 0x322   :  { %1889 = vpow2.f32 %v655_v25 }
 0x323   :  { %v851_v22 = vsel %vm570_vm2, %v2500_v57, 0.0 }
 0x324   :  { %852 = vadd.xlane.f32.xlu0 %v851_v22 }
 0x325   :  { %v612_v0 = vpop.xlane.xlu1 %611  ;;  %v681_v28 = vpop.xlane.xlu2 %680 }
 0x326   :  { %v632_v41 = vsub.f32 %v2423_v40, %v612_v0  ;;  %1891 = vrcp.f32 %v681_v28  ;;  %v1741_v0 = vunpack.c.h.bf16 %v2492_v60 }
 0x327   :  { %1893 = vpow2.f32 %v653_v42 }
 0x328   :  { %v2508_v58 = vpop.eup %1889  ;;  %v661_v24 = vmul.f32 1.442695, %v632_v41 }
 0x329   :  { %v697_v30 = vsel %vm570_vm2, %v2508_v58, 0.0 }
 0x32a   :  { %1895 = vpow2.f32 %v661_v24  ;;  %698 = vadd.xlane.f32.xlu2 %v697_v30  ;;  %v1745_v30 = vunpack.c.h.bf16 %v2513_v33 }
 0x32b   :  { %1897 = vpow2.f32 %v663_v26 }
 0x32c   :  { %v1892_v40 = vpop.eup %1891  ;;  %855 = vadd.xlane.f32.xlu0 %v854_v11 }
 0x32d   :  { %v678_v34 = vpop.xlane.xlu2 %677  ;;  %v735_v43 = vmul.f32 %v1892_v40, %v2449_v61  ;;  %v2519_v45 = vpop.eup %1893 }
 0x32e   :  { %v675_v2 = vpop.xlane.xlu1 %674  ;;  %v694_v61 = vsel %vm570_vm2, %v2519_v45, 0.0 }
 0x32f   :  { %v807_v46 = vmul.f32 %v2335_v56, %v735_v43  ;;  %1899 = vrcp.f32 %v675_v2  ;;  %v2568_v43 = vld [vmem:[#allocation8 + $0x10] sm:$0xff]  }
 0x330   :  { %v2522_v47 = vpop.eup %1895 }
 0x331   :  { %v706_v62 = vsel %vm570_vm2, %v2522_v47, 0.0  ;;  %v2527_v39 = vadd.f32 %v1744_v5, %v807_v46  ;;  %v2533_v53 = vpop.eup %1897  ;;  %v1748_v46 = vunpack.c.l.bf16 %v2568_v43 }
 0x332   :  { %707 = vadd.xlane.f32.xlu2 %v706_v62  ;;  %v709_v31 = vsel %vm570_vm2, %v2533_v53, 0.0 }
 0x333   :  { %v863_v19 = vsel %vm570_vm2, %v2527_v39, 0.0 }
 0x334   :  { %695 = vadd.xlane.f32.xlu0 %v694_v61  ;;  %864 = vadd.xlane.f32.xlu1 %v863_v19 }
 0x335   :  { %v684_v55 = vpop.xlane.xlu2 %683  ;;  %v1900_v35 = vpop.eup %1899 }
 0x336   :  { %1901 = vrcp.f32 %v684_v55  ;;  %v733_v17 = vmul.f32 %v1900_v35, %v2458_v9  ;;  %v693_v63 = vpop.xlane.xlu1 %692 }
 0x337   :  { %1903 = vpow2.f32 %v665_v36 }
 0x338   :  { %1905 = vrcp.f32 %v678_v34  ;;  %v805_v42 = vmul.f32 %v2352_v7, %v733_v17 }
 0x33a   :  { %710 = vadd.xlane.f32.xlu2 %v709_v31  ;;  %v2550_v59 = vadd.f32 %v1741_v0, %v805_v42  ;;  %v2593_v31 = vld [vmem:[#allocation8 + $0x18] sm:$0xff]  }
 0x33b   :  { %v1752_v35 = vunpack.c.l.bf16 %v2593_v31 }
 0x33c   :  { %v1902_v4 = vpop.eup %1901  ;;  %v857_v40 = vsel %vm570_vm2, %v2550_v59, 0.0 }
 0x33d   :  { %v687_v8 = vpop.xlane.xlu2 %686  ;;  %v2538_v18 = vpop.eup %1903  ;;  %v736_v25 = vmul.f32 %v1902_v4, %v2465_v29 }
 0x33e   :  { %1907 = vrcp.f32 %v687_v8  ;;  %v712_v27 = vsel %vm570_vm2, %v2538_v18, 0.0  ;;  %v1906_v28 = vpop.eup %1905  ;;  %v690_v11 = vpop.xlane.xlu1 %689 }
 0x33f   :  { %v808_v22 = vmul.f32 %v2335_v56, %v736_v25  ;;  %1909 = vrcp.f32 %v693_v63  ;;  %v734_v56 = vmul.f32 %v1906_v28, %v2456_v44 }
 0x340   :  { %1911 = vrcp.f32 %v690_v11 }
 0x341   :  { %v2546_v41 = vadd.f32 %v1744_v5, %v808_v22  ;;  %v806_v26 = vmul.f32 %v2352_v7, %v734_v56 }
 0x342   :  { %713 = vadd.xlane.f32.xlu2 %v712_v27 }
 0x343   :  { %v866_v9 = vsel %vm570_vm2, %v2546_v41, 0.0 }
 0x344   :  { %v1908_v29 = vpop.eup %1907  ;;  %867 = vadd.xlane.f32.xlu0 %v866_v9 }
 0x345   :  { %v737_v24 = vmul.f32 %v1908_v29, %v2474_v38  ;;  %v1910_v37 = vpop.eup %1909  ;;  %v2565_v38 = vadd.f32 %v1741_v0, %v806_v26 }
 0x346   :  { %v739_v33 = vmul.f32 %v1910_v37, %v2468_v12  ;;  %v1912_v49 = vpop.eup %1911 }
 0x347   :  { %v809_v60 = vmul.f32 %v2368_v10, %v737_v24  ;;  %v860_v7 = vsel %vm570_vm2, %v2565_v38, 0.0 }
 0x348   :  { %v811_v5 = vmul.f32 %v2362_v52, %v739_v33 }
 0x349   :  { %v2559_v34 = vadd.f32 %v1745_v30, %v809_v60 }
 0x34a   :  { %858 = vadd.xlane.f32.xlu2 %v857_v40  ;;  %v2576_v2 = vadd.f32 %v1748_v46, %v811_v5 }
 0x34b   :  { %v869_v44 = vsel %vm570_vm2, %v2559_v34, 0.0 }
 0x34c   :  { %870 = vadd.xlane.f32.xlu0 %v869_v44  ;;  %v875_v12 = vsel %vm570_vm2, %v2576_v2, 0.0  ;;  %v1749_v44 = vunpack.c.h.bf16 %v2568_v43 }
 0x34d   :  { %1387 = vrot.lane.b32.xlu1 %v2258_v13, %s2088_s29  ;;  %v738_v13 = vmul.f32 %v1912_v49, %v2477_v48  ;;  %v705_v48 = vpop.xlane.xlu1 %704 }
 0x34e   :  { %1913 = vrcp.f32 %v705_v48 }
 0x34f   :  { %v810_v62 = vmul.f32 %v2368_v10, %v738_v13 }
 0x351   :  { %v2582_v61 = vadd.f32 %v1745_v30, %v810_v62 }
 0x352   :  { %861 = vadd.xlane.f32.xlu2 %v860_v7 }
 0x353   :  { %v872_v19 = vsel %vm570_vm2, %v2582_v61, 0.0 }
 0x354   :  { %v1914_v36 = vpop.eup %1913 }
 0x355   :  { %v743_v10 = vmul.f32 %v1914_v36, %v2484_v51 }
 0x35a   :  { %876 = vadd.xlane.f32.xlu2 %v875_v12 }
 0x360   :  { %1324 = vrot.lane.b32.xlu0 %v2246_v6, %s2088_s29  ;;  %v815_v6 = vmul.f32 %v2344_v23, %v743_v10 }
 0x362   :  { %873 = vadd.xlane.f32.xlu2 %v872_v19 }
 0x368   :  { %1429 = vrot.lane.b32.xlu0 %v2242_v3, %s2088_s29  ;;  %v2599_v3 = vadd.f32 %v1752_v35, %v815_v6 }
 0x36a   :  { %v887_v22 = vsel %vm570_vm2, %v2599_v3, 0.0 }
 0x37a   :  { %1366 = vrot.lane.b32.xlu2 %v2226_v54, %s2088_s29  ;;  %v702_v54 = vpop.xlane.xlu1 %701 }
 0x397   :  { %v853_v55 = vpop.xlane.xlu0 %852 }
 0x398   :  { %1915 = vrcp.f32 %v853_v55  ;;  %v910_v63 = vand.u32 2147483648, %v853_v55  ;;  %v908_v42 = vand.u32 2147483647, %v853_v55  ;;  %vm904_vm5 = vweird.f32 %v853_v55 }
 0x39a   :  { %v911_v24 = vor.u32 1.1754944e-38, %v910_v63  ;;  %vm909_vm7 = vcmp.eq.f32.partialorder %v908_v42, 8.507059e+37 }
 0x39d   :  { %v699_v4 = vpop.xlane.xlu2 %698 }
 0x39e   :  { %v1916_v8 = vpop.eup %1915  ;;  %1917 = vrcp.f32 %v699_v4 }
 0x39f   :  { %v900_v17 = vmul.f32 %v1916_v8, %v853_v55  ;;  %v856_v25 = vpop.xlane.xlu0 %855  ;;  %vm905_vm4 = vweird.f32 %v1916_v8 }
 0x3a0   :  { %1919 = vrcp.f32 %v856_v25  ;;  %vm906_vm6 = vmor %vm904_vm5, %vm905_vm4  ;;  %v923_v12 = vand.u32 2147483647, %v856_v25  ;;  %vm919_vm9 = vweird.f32 %v856_v25 }
 0x3a1   :  { %v901_v51 = vsub.f32 1.0, %v900_v17  ;;  %1921 = vrcp.f32 %v702_v54 }
 0x3a2   :  { %vm924_vm11 = vcmp.eq.f32.partialorder %v923_v12, 8.507059e+37 }
 0x3a3   :  { %v902_v27 = vmul.f32 %v1916_v8, %v901_v51  ;;  %888 = vadd.xlane.f32.xlu2 %v887_v22 }
 0x3a4   :  { %v1918_v0 = vpop.eup %1917 }
 0x3a5   :  { %v903_v28 = vadd.f32 %v1916_v8, %v902_v27  ;;  %v708_v9 = vpop.xlane.xlu2 %707  ;;  %v741_v29 = vmul.f32 %v1918_v0, %v2508_v58  ;;  %v925_v58 = vand.u32 2147483648, %v856_v25 }
 0x3a6   :  { %v1920_v56 = vpop.eup %1919  ;;  %1923 = vrcp.f32 %v708_v9 }
 0x3a7   :  { %v907_v30 = vsel %vm906_vm6, %v1916_v8, %v903_v28  ;;  %v915_v60 = vmul.f32 %v1920_v56, %v856_v25  ;;  %v696_v11 = vpop.xlane.xlu0 %695  ;;  %v865_v40 = vpop.xlane.xlu1 %864  ;;  %v813_v26 = vmul.f32 %v2376_v1, %v741_v29  ;;  %vm920_vm8 = vweird.f32 %v1920_v56 }
 0x3a8   :  { %v912_v37 = vsel %vm909_vm7, %v911_v24, %v907_v30  ;;  %1925 = vrcp.f32 %v696_v11  ;;  %v1922_v49 = vpop.eup %1921  ;;  %vm921_vm10 = vmor %vm919_vm9, %vm920_vm8  ;;  %v926_v6 = vor.u32 1.1754944e-38, %v925_v58  ;;  %v970_v0 = vand.u32 2147483648, %v865_v40 }
 0x3a9   :  { %v913_v33 = vmul.f32 %v912_v37, %v2500_v57  ;;  %v916_v7 = vsub.f32 1.0, %v915_v60  ;;  %1927 = vrcp.f32 %v865_v40  ;;  %v2607_v5 = vadd.f32 %v1749_v44, %v813_v26 }
 0x3aa   :  { %v742_v27 = vmul.f32 %v1922_v49, %v2488_v20  ;;  %vm964_vm13 = vweird.f32 %v865_v40  ;;  %v971_v43 = vor.u32 1.1754944e-38, %v970_v0  ;;  %v1753_v58 = vunpack.c.h.bf16 %v2593_v31 }
 0x3ab   :  { %v917_v13 = vmul.f32 %v1920_v56, %v916_v7  ;;  %v1139_v62 = vpack.c.bf16 %v913_v33, %v913_v33  ;;  %v881_v48 = vsel %vm570_vm2, %v2607_v5, 0.0 }
 0x3ac   :  { %v1924_v19 = vpop.eup %1923  ;;  %882 = vadd.xlane.f32.xlu1 %v881_v48  ;;  %v814_v29 = vmul.f32 %v2376_v1, %v742_v27 }
 0x3ad   :  { %v918_v36 = vadd.f32 %v1920_v56, %v917_v13  ;;  %1709 = vmatmul.msk.bf16.vlgmr.msra.gmra.mxu1 %vm570_vm2, %v1139_v62  ;;  %v711_v57 = vpop.xlane.xlu2 %710  ;;  %v744_v10 = vmul.f32 %v1924_v19, %v2522_v47 }
 0x3ae   :  { %v1926_v55 = vpop.eup %1925  ;;  %1929 = vrcp.f32 %v711_v57  ;;  %v2634_v60 = vadd.f32 %v1749_v44, %v814_v29 }
 0x3af   :  { %v1928_v4 = vpop.eup %1927  ;;  %v922_v8 = vsel %vm921_vm10, %v1920_v56, %v918_v36  ;;  %v816_v54 = vmul.f32 %v2344_v23, %v744_v10  ;;  %v740_v17 = vmul.f32 %v1926_v55, %v2519_v45 }
 0x3b0   :  { %v927_v51 = vsel %vm924_vm11, %v926_v6, %v922_v8  ;;  %v960_v63 = vmul.f32 %v1928_v4, %v865_v40  ;;  %vm965_vm12 = vweird.f32 %v1928_v4  ;;  %v884_v33 = vsel %vm570_vm2, %v2634_v60, 0.0 }
 0x3b1   :  { %v928_v25 = vmul.f32 %v927_v51, %v2506_v50  ;;  %v2618_v22 = vadd.f32 %v1752_v35, %v816_v54  ;;  %v812_v47 = vmul.f32 %v2362_v52, %v740_v17  ;;  %v968_v50 = vand.u32 2147483647, %v865_v40  ;;  %vm966_vm14 = vmor %vm964_vm13, %vm965_vm12 }
 0x3b2   :  { %v961_v42 = vsub.f32 1.0, %v960_v63  ;;  %v1351_v35 = vsel %vm1160_vm3, %v2393_v32, 0 }
 0x3b3   :  { %v890_v23 = vsel %vm570_vm2, %v2618_v22, 0.0  ;;  %v1140_v28 = vpack.c.bf16 %v928_v25, %v928_v25  ;;  %v2626_v45 = vadd.f32 %v1748_v46, %v812_v47  ;;  %vm969_vm15 = vcmp.eq.f32.partialorder %v968_v50, 8.507059e+37 }
 0x3b4   :  { %v962_v9 = vmul.f32 %v1928_v4, %v961_v42  ;;  %891 = vadd.xlane.f32.xlu1 %v890_v23  ;;  %v1930_v56 = vpop.eup %1929 }
 0x3b5   :  { %1710 = vmatmul.msk.bf16.vlgmr.msra.gmra.mxu2 %vm570_vm2, %v1140_v28  ;;  %v714_v52 = vpop.xlane.xlu2 %713  ;;  %v878_v20 = vsel %vm570_vm2, %v2626_v45, 0.0  ;;  %v745_v11 = vmul.f32 %v1930_v56, %v2533_v53 }
 0x3b6   :  { %v963_v24 = vadd.f32 %v1928_v4, %v962_v9  ;;  %1360 = vmatpush.bf16.msra.mxu2 %v1351_v35  ;;  %1931 = vrcp.f32 %v714_v52  ;;  %879 = vadd.xlane.f32.xlu0 %v878_v20 }
 0x3b7   :  { %v868_v32 = vpop.xlane.xlu0 %867  ;;  %v817_v44 = vmul.f32 %v2370_v16, %v745_v11 }
 0x3b8   :  { %v967_v46 = vsel %vm966_vm14, %v1928_v4, %v963_v24  ;;  %1933 = vrcp.f32 %v868_v32  ;;  %v985_v31 = vand.u32 2147483648, %v868_v32  ;;  %v983_v48 = vand.u32 2147483647, %v868_v32 }
 0x3b9   :  { %v972_v30 = vsel %vm969_vm15, %v971_v43, %v967_v46  ;;  %v2650_v13 = vadd.f32 %v1753_v58, %v817_v44  ;;  %vm979_vm5 = vweird.f32 %v868_v32 }
 0x3ba   :  { %v973_v26 = vmul.f32 %v972_v30, %v2527_v39  ;;  %v986_v4 = vor.u32 1.1754944e-38, %v985_v31  ;;  %vm984_vm7 = vcmp.eq.f32.partialorder %v983_v48, 8.507059e+37 }
 0x3bb   :  { %1471 = vrot.lane.b32.xlu2 %v2260_v14, %s2088_s29  ;;  %v893_v10 = vsel %vm570_vm2, %v2650_v13, 0.0 }
 0x3bc   :  { %v1932_v1 = vpop.eup %1931  ;;  %v1143_v40 = vpack.c.bf16 %v973_v26, %v973_v26 }
 0x3bd   :  { %v859_v37 = vpop.xlane.xlu2 %858  ;;  %v746_v7 = vmul.f32 %v1932_v1, %v2538_v18 }
 0x3be   :  { %1713 = vmatmul.msk.bf16.vlgmr.msrb.gmra.mxu1 %vm570_vm2, %v1143_v40  ;;  %1935 = vrcp.f32 %v859_v37  ;;  %885 = vadd.xlane.f32.xlu0 %v884_v33  ;;  %v1934_v39 = vpop.eup %1933  ;;  %v940_v17 = vand.u32 2147483648, %v859_v37  ;;  %v938_v47 = vand.u32 2147483647, %v859_v37  ;;  %vm934_vm9 = vweird.f32 %v859_v37 }
 0x3bf   :  { %v818_v53 = vmul.f32 %v2370_v16, %v746_v7  ;;  %v975_v14 = vmul.f32 %v1934_v39, %v868_v32  ;;  %v2647_v49 = vpop.xlane.xlu0 %870  ;;  %vm980_vm4 = vweird.f32 %v1934_v39 }
 0x3c0   :  { %1937 = vrcp.f32 %v2647_v49  ;;  %vm981_vm6 = vmor %vm979_vm5, %vm980_vm4  ;;  %v941_v23 = vor.u32 1.1754944e-38, %v940_v17  ;;  %vm939_vm11 = vcmp.eq.f32.partialorder %v938_v47, 8.507059e+37  ;;  %v1000_v30 = vand.u32 2147483648, %v2647_v49 }
 0x3c1   :  { %v976_v12 = vsub.f32 1.0, %v975_v14  ;;  %v2652_v18 = vadd.f32 %v1753_v58, %v818_v53  ;;  %vm994_vm5 = vweird.f32 %v2647_v49  ;;  %v998_v44 = vand.u32 2147483647, %v2647_v49 }
 0x3c3   :  { %v977_v19 = vmul.f32 %v1934_v39, %v976_v12  ;;  %v896_v36 = vsel %vm570_vm2, %v2652_v18, 0.0  ;;  %v1388_v12 = vpop.permute.xlu1 %1387 }
 0x3c4   :  { %v1936_v62 = vpop.eup %1935  ;;  %897 = vadd.xlane.f32.xlu1 %v896_v36 }
 0x3c5   :  { %v930_v57 = vmul.f32 %v1936_v62, %v859_v37  ;;  %v862_v16 = vpop.xlane.xlu2 %861  ;;  %v978_v55 = vadd.f32 %v1934_v39, %v977_v19  ;;  %vm935_vm8 = vweird.f32 %v1936_v62 }
 0x3c6   :  { %1939 = vrcp.f32 %v862_v16  ;;  %894 = vadd.xlane.f32.xlu0 %v893_v10  ;;  %v2658_v6 = vpop.eup %1937  ;;  %vm936_vm10 = vmor %vm934_vm9, %vm935_vm8  ;;  %v955_v24 = vand.u32 2147483648, %v862_v16  ;;  %v953_v46 = vand.u32 2147483647, %v862_v16  ;;  %vm949_vm13 = vweird.f32 %v862_v16 }
 0x3c7   :  { %v931_v8 = vsub.f32 1.0, %v930_v57  ;;  %v982_v54 = vsel %vm981_vm6, %v1934_v39, %v978_v55  ;;  %v990_v51 = vmul.f32 %v2658_v6, %v2647_v49  ;;  %vm995_vm14 = vweird.f32 %v2658_v6 }
 0x3c8   :  { %v987_v63 = vsel %vm984_vm7, %v986_v4, %v982_v54  ;;  %vm954_vm4 = vcmp.eq.f32.partialorder %v953_v46, 8.507059e+37  ;;  %vm996_vm6 = vmor %vm994_vm5, %vm995_vm14  ;;  %vm999_vm8 = vcmp.eq.f32.partialorder %v998_v44, 8.507059e+37  ;;  %v1393_v49 = vsel %vm1160_vm3, %v1388_v12, 0 }
 0x3c9   :  { %v932_v25 = vmul.f32 %v1936_v62, %v931_v8  ;;  %v988_v27 = vmul.f32 %v987_v63, %v2546_v41  ;;  %v991_v28 = vsub.f32 1.0, %v990_v51 }
 0x3cb   :  { %v933_v42 = vadd.f32 %v1936_v62, %v932_v25  ;;  %v1144_v9 = vpack.c.bf16 %v988_v27, %v988_v27  ;;  %v992_v41 = vmul.f32 %v2658_v6, %v991_v28 }
 0x3cc   :  { %v1940_v0 = vpop.eup %1939 }
 0x3cd   :  { %v937_v50 = vsel %vm936_vm10, %v1936_v62, %v933_v42  ;;  %v945_v35 = vmul.f32 %v1940_v0, %v862_v16  ;;  %v877_v52 = vpop.xlane.xlu2 %876  ;;  %1714 = vmatmul.msk.bf16.vlgmr.msrb.gmra.mxu2 %vm570_vm2, %v1144_v9  ;;  %vm950_vm12 = vweird.f32 %v1940_v0  ;;  %v993_v40 = vadd.f32 %v2658_v6, %v992_v41 }
 0x3ce   :  { %v942_v20 = vsel %vm939_vm11, %v941_v23, %v937_v50  ;;  %1941 = vrcp.f32 %v877_v52  ;;  %vm951_vm15 = vmor %vm949_vm13, %vm950_vm12  ;;  %v1001_v62 = vor.u32 1.1754944e-38, %v1000_v30  ;;  %v1030_v19 = vand.u32 2147483648, %v877_v52 }
 0x3cf   :  { %v943_v29 = vmul.f32 %v942_v20, %v2550_v59  ;;  %v946_v56 = vsub.f32 1.0, %v945_v35  ;;  %v956_v59 = vor.u32 1.1754944e-38, %v955_v24  ;;  %v997_v31 = vsel %vm996_vm6, %v2658_v6, %v993_v40 }
 0x3d0   :  { %v1028_v36 = vand.u32 2147483647, %v877_v52  ;;  %v1002_v16 = vsel %vm999_vm8, %v1001_v62, %v997_v31  ;;  %vm1024_vm9 = vweird.f32 %v877_v52  ;;  %v1031_v6 = vor.u32 1.1754944e-38, %v1030_v19 }
 0x3d1   :  { %v947_v43 = vmul.f32 %v1940_v0, %v946_v56  ;;  %v1141_v32 = vpack.c.bf16 %v943_v29, %v943_v29 }
 0x3d2   :  { %v1325_v26 = vpop.permute.xlu0 %1324  ;;  %vm1029_vm11 = vcmp.eq.f32.partialorder %v1028_v36, 8.507059e+37 }
 0x3d3   :  { %v948_v11 = vadd.f32 %v1940_v0, %v947_v43  ;;  %v1330_v37 = vsel %vm1160_vm3, %v1325_v26, 0  ;;  %1711 = vmatmul.msk.bf16.vlgmr.msra.gmra.mxu3 %vm570_vm2, %v1141_v32 }
 0x3d4   :  { %v1942_v1 = vpop.eup %1941  ;;  %1339 = vmatpush.bf16.msra.mxu1 %v1330_v37 }
 0x3d5   :  { %v952_v33 = vsel %vm951_vm15, %v1940_v0, %v948_v11  ;;  %v1020_v7 = vmul.f32 %v1942_v1, %v877_v52  ;;  %v874_v58 = vpop.xlane.xlu2 %873  ;;  %vm1025_vm7 = vweird.f32 %v1942_v1 }
 0x3d6   :  { %v957_v39 = vsel %vm954_vm4, %v956_v59, %v952_v33  ;;  %1943 = vrcp.f32 %v874_v58  ;;  %vm1026_vm10 = vmor %vm1024_vm9, %vm1025_vm7  ;;  %v1015_v27 = vand.u32 2147483648, %v874_v58  ;;  %v1013_v0 = vand.u32 2147483647, %v874_v58 }
 0x3d7   :  { %v958_v53 = vmul.f32 %v957_v39, %v2565_v38  ;;  %v1021_v14 = vsub.f32 1.0, %v1020_v7  ;;  %vm1009_vm13 = vweird.f32 %v874_v58 }
 0x3d8   :  { %vm1014_vm15 = vcmp.eq.f32.partialorder %v1013_v0, 8.507059e+37 }
 0x3d9   :  { %v1022_v48 = vmul.f32 %v1942_v1, %v1021_v14  ;;  %v1142_v57 = vpack.c.bf16 %v958_v53, %v958_v53 }
 0x3da   :  { %1408 = vrot.lane.b32.xlu0 %v2277_v21, %s2088_s29  ;;  %v1430_v38 = vpop.permute.xlu0 %1429  ;;  %v1003_v21 = vmul.f32 %v1002_v16, %v2559_v34  ;;  %v1016_v34 = vor.u32 1.1754944e-38, %v1015_v27 }
 0x3db   :  { %v1023_v10 = vadd.f32 %v1942_v1, %v1022_v48  ;;  %1712 = vmatmul.msk.bf16.vlgmr.msrb.gmra.mxu0 %vm570_vm2, %v1142_v57  ;;  %v1435_v4 = vsel %vm1160_vm3, %v1430_v38, 0 }
 0x3dc   :  { %v1944_v55 = vpop.eup %1943  ;;  %1402 = vmatpush.bf16.msrb.mxu0 %v1393_v49  ;;  %1444 = vmatpush.bf16.msrb.mxu2 %v1435_v4  ;;  %v1145_v28 = vpack.c.bf16 %v1003_v21, %v1003_v21 }
 0x3dd   :  { %v1027_v8 = vsel %vm1026_vm10, %v1942_v1, %v1023_v10  ;;  %v1005_v54 = vmul.f32 %v1944_v55, %v874_v58  ;;  %v1367_v17 = vpop.permute.xlu2 %1366  ;;  %1450 = vrot.lane.b32.xlu1 %v2262_v15, %s2088_s29  ;;  %vm1010_vm12 = vweird.f32 %v1944_v55 }
 0x3de   :  { %v1032_v51 = vsel %vm1029_vm11, %v1031_v6, %v1027_v8  ;;  %v1372_v63 = vsel %vm1160_vm3, %v1367_v17, 0  ;;  %vm1011_vm14 = vmor %vm1009_vm13, %vm1010_vm12 }
 0x3df   :  { %v1033_v25 = vmul.f32 %v1032_v51, %v2576_v2  ;;  %v1006_v47 = vsub.f32 1.0, %v1005_v54  ;;  %1381 = vmatpush.bf16.msra.mxu3 %v1372_v63 }
 0x3e1   :  { %v1007_v42 = vmul.f32 %v1944_v55, %v1006_v47  ;;  %v1147_v23 = vpack.c.bf16 %v1033_v25, %v1033_v25 }
 0x3e3   :  { %v1008_v9 = vadd.f32 %v1944_v55, %v1007_v42  ;;  %1717 = vmatmul.msk.bf16.vlgmr.msra.gmra.mxu1 %vm570_vm2, %v1147_v23  ;;  %1715 = vmatmul.msk.bf16.vlgmr.msrb.gmra.mxu3 %vm570_vm2, %v1145_v28 }
 0x3e5   :  { %v1012_v15 = vsel %vm1011_vm14, %v1944_v55, %v1008_v9 }
 0x3e6   :  { %v1017_v50 = vsel %vm1014_vm15, %v1016_v34, %v1012_v15 }
 0x3e7   :  { %v1018_v2 = vmul.f32 %v1017_v50, %v2582_v61 }
 0x3e9   :  { %v1146_v35 = vpack.c.bf16 %v1018_v2, %v1018_v2 }
 0x3eb   :  { %1716 = vmatmul.msk.bf16.vlgmr.msra.gmra.mxu0 %vm570_vm2, %v1146_v35 }
 0x416   :  { %v2689_v52 = vpop.xlane.xlu2 %888 }
 0x417   :  { %v1088_v28 = vand.u32 2147483647, %v2689_v52 }
 0x41e   :  { %v1472_v20 = vpop.permute.xlu2 %1471 }
 0x41f   :  { %v1477_v29 = vsel %vm1160_vm3, %v1472_v20, 0  ;;  %v883_v56 = vpop.xlane.xlu1 %882 }
 0x420   :  { %1486 = vmatpush.bf16.msra.mxu0 %v1477_v29  ;;  %1945 = vrcp.f32 %v883_v56  ;;  %v1060_v30 = vand.u32 2147483648, %v883_v56  ;;  %v1058_v26 = vand.u32 2147483647, %v883_v56  ;;  %vm1054_vm5 = vweird.f32 %v883_v56 }
 0x422   :  { %v1061_v59 = vor.u32 1.1754944e-38, %v1060_v30  ;;  %vm1059_vm7 = vcmp.eq.f32.partialorder %v1058_v26, 8.507059e+37 }
 0x426   :  { %v1946_v41 = vpop.eup %1945 }
 0x427   :  { %v1050_v24 = vmul.f32 %v1946_v41, %v883_v56  ;;  %v2692_v43 = vpop.xlane.xlu1 %891  ;;  %vm1055_vm4 = vweird.f32 %v1946_v41 }
 0x428   :  { %1947 = vrcp.f32 %v2692_v43  ;;  %vm1056_vm6 = vmor %vm1054_vm5, %vm1055_vm4  ;;  %vm1099_vm4 = vweird.f32 %v2692_v43  ;;  %v1105_v50 = vand.u32 2147483648, %v2692_v43  ;;  %v1103_v20 = vand.u32 2147483647, %v2692_v43 }
 0x429   :  { %v880_v46 = vpop.xlane.xlu0 %879  ;;  %v1051_v32 = vsub.f32 1.0, %v1050_v24  ;;  %v1090_v24 = vand.u32 2147483648, %v2689_v52 }
 0x42a   :  { %1949 = vrcp.f32 %v880_v46  ;;  %v2695_v61 = vpop.f32.mrf.mxu1  ;;  %v1045_v19 = vand.u32 2147483648, %v880_v46  ;;  %v1043_v57 = vand.u32 2147483647, %v880_v46  ;;  %vm1039_vm9 = vweird.f32 %v880_v46 }
 0x42b   :  { %1951 = vrcp.f32 %v2689_v52  ;;  %v1052_v11 = vmul.f32 %v1946_v41, %v1051_v32 }
 0x42c   :  { %v1046_v38 = vor.u32 1.1754944e-38, %v1045_v19  ;;  %vm1044_vm11 = vcmp.eq.f32.partialorder %v1043_v57, 8.507059e+37 }
 0x42d   :  { %v1053_v1 = vadd.f32 %v1946_v41, %v1052_v11 }
 0x42e   :  { %v2698_v40 = vpop.eup %1947 }
 0x42f   :  { %v1057_v33 = vsel %vm1056_vm6, %v1946_v41, %v1053_v1  ;;  %v1095_v12 = vmul.f32 %v2698_v40, %v2692_v43  ;;  %vm1100_vm14 = vweird.f32 %v2698_v40 }
 0x430   :  { %v1950_v37 = vpop.eup %1949  ;;  %v1062_v58 = vsel %vm1059_vm7, %v1061_v59, %v1057_v33  ;;  %vm1084_vm7 = vweird.f32 %v2689_v52 }
 0x431   :  { %v2700_v7 = vpop.eup %1951  ;;  %v1035_v44 = vmul.f32 %v1950_v37, %v880_v46  ;;  %v886_v39 = vpop.xlane.xlu0 %885  ;;  %v1063_v53 = vmul.f32 %v1062_v58, %v2607_v5  ;;  %vm1040_vm8 = vweird.f32 %v1950_v37  ;;  %v1096_v49 = vsub.f32 1.0, %v1095_v12 }
 0x432   :  { %1953 = vrcp.f32 %v886_v39  ;;  %v1175_v14 = vpop.f32.mrf.mxu1  ;;  %v1080_v62 = vmul.f32 %v2700_v7, %v2689_v52  ;;  %vm1041_vm10 = vmor %vm1039_vm9, %vm1040_vm8  ;;  %v1075_v27 = vand.u32 2147483648, %v886_v39  ;;  %v1073_v0 = vand.u32 2147483647, %v886_v39 }
 0x433   :  { %v1036_v31 = vsub.f32 1.0, %v1035_v44  ;;  %v1149_v48 = vpack.c.bf16 %v1063_v53, %v1063_v53  ;;  %v1097_v21 = vmul.f32 %v2698_v40, %v1096_v49  ;;  %vm1085_vm13 = vweird.f32 %v2700_v7  ;;  %vm2735_vm8 = vmor %vm1099_vm4, %vm1100_vm14 }
 0x434   :  { %v1081_v10 = vsub.f32 1.0, %v1080_v62  ;;  %vm1069_vm15 = vweird.f32 %v886_v39  ;;  %v1076_v2 = vor.u32 1.1754944e-38, %v1075_v27  ;;  %vm1074_vm6 = vcmp.eq.f32.partialorder %v1073_v0, 8.507059e+37  ;;  %vm2741_vm9 = vmor %vm1084_vm7, %vm1085_vm13 }
 0x435   :  { %v1037_v36 = vmul.f32 %v1950_v37, %v1036_v31  ;;  %1719 = vmatmul.msk.bf16.vlgmr.msra.gmra.mxu3 %vm570_vm2, %v1149_v48  ;;  %v1098_v9 = vadd.f32 %v2698_v40, %v1097_v21 }
 0x436   :  { %v1082_v47 = vmul.f32 %v2700_v7, %v1081_v10 }
 0x437   :  { %v1038_v16 = vadd.f32 %v1950_v37, %v1037_v36  ;;  %v2708_v55 = vpop.xlane.xlu1 %897  ;;  %v1102_v30 = vsel %vm2735_vm8, %v2698_v40, %v1098_v9  ;;  %vm1555_vm8 = vcmask 130048  }
 0x438   :  { %v1954_v5 = vpop.eup %1953  ;;  %v2710_v6 = vpop.f32.mrf.mxu2  ;;  %1955 = vrcp.f32 %v2708_v55  ;;  %v1083_v15 = vadd.f32 %v2700_v7, %v1082_v47  ;;  %vm1129_vm14 = vweird.f32 %v2708_v55  ;;  %v1133_v48 = vand.u32 2147483647, %v2708_v55 }
 0x439   :  { %v1042_v4 = vsel %vm1041_vm10, %v1950_v37, %v1038_v16  ;;  %v1065_v8 = vmul.f32 %v1954_v5, %v886_v39  ;;  %v2712_v54 = vpop.xlane.xlu0 %894  ;;  %vm1070_vm12 = vweird.f32 %v1954_v5  ;;  %vm1089_vm10 = vcmp.eq.f32.partialorder %v1088_v28, 8.507059e+37 }
 0x43a   :  { %v1047_v17 = vsel %vm1044_vm11, %v1046_v38, %v1042_v4  ;;  %1957 = vrcp.f32 %v2712_v54  ;;  %vm1071_vm5 = vmor %vm1069_vm15, %vm1070_vm12  ;;  %v1087_v59 = vsel %vm2741_vm9, %v2700_v7, %v1083_v15  ;;  %v1106_v37 = vor.u32 1.1754944e-38, %v1105_v50 }
 0x43b   :  { %v1048_v51 = vmul.f32 %v1047_v17, %v2626_v45  ;;  %v1066_v63 = vsub.f32 1.0, %v1065_v8  ;;  %v2717_v25 = vpop.f32.mrf.mxu1  ;;  %vm1104_vm11 = vcmp.eq.f32.partialorder %v1103_v20, 8.507059e+37  ;;  %v1091_v39 = vor.u32 1.1754944e-38, %v1090_v24 }
 0x43c   :  { %v1107_v53 = vsel %vm1104_vm11, %v1106_v37, %v1102_v30  ;;  %v1120_v40 = vand.u32 2147483648, %v2712_v54  ;;  %v1118_v12 = vand.u32 2147483647, %v2712_v54  ;;  %v1135_v7 = vand.u32 2147483648, %v2708_v55 }
 0x43d   :  { %v1067_v42 = vmul.f32 %v1954_v5, %v1066_v63  ;;  %v1148_v23 = vpack.c.bf16 %v1048_v51, %v1048_v51  ;;  %v1092_v31 = vsel %vm1089_vm10, %v1091_v39, %v1087_v59  ;;  %v1108_v62 = vmul.f32 %v1107_v53, %v2618_v22  ;;  %v1737_v39 = vld [vmem:[#allocation7 + $0x8] sm:$0xff]  ;;  %v1736_v53 = vld [vmem:[#allocation7] sm:$0xff] }
 0x43e   :  { %v1956_v34 = vpop.eup %1955  ;;  %vm1114_vm4 = vweird.f32 %v2712_v54  ;;  %v1121_v57 = vor.u32 1.1754944e-38, %v1120_v40  ;;  %v1093_v49 = vmul.f32 %v1092_v31, %v2599_v3  ;;  %v1136_v10 = vor.u32 1.1754944e-38, %v1135_v7 }
 0x43f   :  { %v1068_v45 = vadd.f32 %v1954_v5, %v1067_v42  ;;  %1718 = vmatmul.msk.bf16.vlgmr.msra.gmra.mxu2 %vm570_vm2, %v1148_v23  ;;  %v1125_v56 = vmul.f32 %v1956_v34, %v2708_v55  ;;  %vm1130_vm12 = vweird.f32 %v1956_v34  ;;  %vm1134_vm7 = vcmp.eq.f32.partialorder %v1133_v48, 8.507059e+37 }
 0x440   :  { %v1196_v35 = vpop.f32.mrf.mxu2  ;;  %v1958_v41 = vpop.eup %1957  ;;  %vm2759_vm15 = vmor %vm1129_vm14, %vm1130_vm12  ;;  %v1152_v8 = vpack.c.bf16 %v1108_v62, %v1108_v62  ;;  %v1151_v17 = vpack.c.bf16 %v1093_v49, %v1093_v49  ;;  %vm1561_vm9 = vcmask 195584   ;;  %vm1564_vm10 = vcmask 228352  }
 0x441   :  { %v1072_v29 = vsel %vm1071_vm5, %v1954_v5, %v1068_v45  ;;  %v1126_v52 = vsub.f32 1.0, %v1125_v56  ;;  %v1110_v26 = vmul.f32 %v1958_v41, %v2712_v54  ;;  %vm1115_vm13 = vweird.f32 %v1958_v41 }
 0x442   :  { %v1077_v32 = vsel %vm1074_vm6, %v1076_v2, %v1072_v29  ;;  %vm1116_vm5 = vmor %vm1114_vm4, %vm1115_vm13  ;;  %vm1119_vm6 = vcmp.eq.f32.partialorder %v1118_v12, 8.507059e+37  ;;  %vm1651_vm11 = vcmask 523264   ;;  %vm1653_vm12 = vcmask 785408  }
 0x443   :  { %v1078_v11 = vmul.f32 %v1077_v32, %v2634_v60  ;;  %v1259_v1 = vpop.f32.mrf.mxu1  ;;  %v1127_v33 = vmul.f32 %v1956_v34, %v1126_v52  ;;  %v1111_v58 = vsub.f32 1.0, %v1110_v26  ;;  %vm1661_vm13 = vcmask 1041408  }
 0x445   :  { %v1150_v44 = vpack.c.bf16 %v1078_v11, %v1078_v11  ;;  %v1128_v60 = vadd.f32 %v1956_v34, %v1127_v33  ;;  %v1112_v14 = vmul.f32 %v1958_v41, %v1111_v58 }
 0x447   :  { %1720 = vmatmul.msk.bf16.vlgmr.msrb.gmra.mxu0 %vm570_vm2, %v1150_v44  ;;  %v1113_v36 = vadd.f32 %v1958_v41, %v1112_v14  ;;  %v1132_v16 = vsel %vm2759_vm15, %v1956_v34, %v1128_v60 }
 0x448   :  { %v1137_v55 = vsel %vm1134_vm7, %v1136_v10, %v1132_v16 }
 0x449   :  { %v1117_v5 = vsel %vm1116_vm5, %v1958_v41, %v1113_v36  ;;  %v1138_v21 = vmul.f32 %v1137_v55, %v2652_v18 }
 0x44a   :  { %v1122_v22 = vsel %vm1119_vm6, %v1121_v57, %v1117_v5 }
 0x44b   :  { %v1123_v54 = vmul.f32 %v1122_v22, %v2650_v13  ;;  %v1154_v13 = vpack.c.bf16 %v1138_v21, %v1138_v21 }
 0x44c   :  { %v1409_v38 = vpop.permute.xlu0 %1408 }
 0x44d   :  { %v1414_v4 = vsel %vm1160_vm3, %v1409_v38, 0  ;;  %v1153_v27 = vpack.c.bf16 %v1123_v54, %v1123_v54 }
 0x44e   :  { %1423 = vmatpush.bf16.msrb.mxu1 %v1414_v4 }
 0x44f   :  { %1722 = vmatmul.msk.bf16.vlgmr.msrb.gmra.mxu2 %vm570_vm2, %v1152_v8  ;;  %v1451_v3 = vpop.permute.xlu1 %1450 }
 0x450   :  { %v1456_v51 = vsel %vm1160_vm3, %v1451_v3, 0  ;;  %v1278_v63 = vpop.f32.mrf.mxu2  ;;  %vm1552_vm3 = vcmask 97280  }
 0x451   :  { %1721 = vmatmul.msk.bf16.vlgmr.msrb.gmra.mxu1 %vm570_vm2, %v1151_v17  ;;  %v1824_v47 = vpack.i.bf16 %v1278_v63, %v2717_v25  ;;  %1465 = vmatpush.bf16.msrb.mxu3 %v1456_v51 }
 0x452   :  { %1597 = vmatpush.bf16.msra.mxu1 %v1737_v39 }
 0x453   :  { %1825 = vrot.lane.b32.xlu0 %v1824_v47, %s2092_s9  ;;  %s2105_s9 = smov 16  }
 0x454   :  { %1723 = vmatmul.msk.bf16.vlgmr.msrb.gmra.mxu3 %vm570_vm2, %v1153_v27 }
 0x456   :  { %v1215_v42 = vpop.f32.mrf.mxu3  ;;  %1598 = vmatpush.bf16.msra.mxu1 %v1736_v53 }
 0x457   :  { %1724 = vmatmul.msk.bf16.vlgmr.msra.gmra.mxu0 %vm570_vm2, %v1154_v13 }
 0x458   :  { %v1236_v0 = vpop.f32.mrf.mxu0  ;;  %v1280_v18 = vpop.f32.mrf.mxu2 }
 0x459   :  { %v1819_v23 = vpack.i.bf16 %v1236_v0, %v1215_v42 }
 0x45b   :  { %1820 = vrot.lane.b32.xlu1 %v1819_v23, %s2089_s30  ;;  %s2106_s30 = smov 20  }
 0x45e   :  { %v1217_v28 = vpop.f32.mrf.mxu3 }
 0x460   :  { %v1238_v9 = vpop.f32.mrf.mxu0  ;;  %v1341_v45 = vpop.f32.mrf.mxu1 }
 0x466   :  { %v1299_v34 = vpop.f32.mrf.mxu3 }
 0x468   :  { %v1320_v25 = vpop.f32.mrf.mxu0  ;;  %v1343_v15 = vpop.f32.mrf.mxu1 }
 0x469   :  { %v1829_v50 = vpack.i.bf16 %v1320_v25, %v1299_v34 }
 0x46b   :  { %1830 = vrot.lane.b32.xlu1 %v1829_v50, %s2104_s5 }
 0x46e   :  { %v1301_v2 = vpop.f32.mrf.mxu3 }
 0x470   :  { %v1322_v35 = vpop.f32.mrf.mxu0 }
 0x4b8   :  { %v1383_v20 = vpop.f32.mrf.mxu3 }
 0x4c0   :  { %v1385_v29 = vpop.f32.mrf.mxu3 }
 0x4c2   :  { %v1362_v56 = vpop.f32.mrf.mxu2 }
 0x4c3   :  { %v1834_v41 = vpack.i.bf16 %v1362_v56, %v1341_v45  ;;  %v1862_v45 = vld [vmem:[%s2809_s3] ss:$0 sm:$0xff]  ;;  %s2110_s3 = smov [#allocation10]  }
 0x4c4   :  { %v1404_v24 = vpop.f32.mrf.mxu0  ;;  %s1670_s22 = sshll.u32 %s2110_s3, 4  ;;  %s1671_s22 = int_to_ptr.vmem [resolvable:$true] %s1670_s22 }
 0x4c5   :  { %v1839_v46 = vpack.i.bf16 %v1404_v24, %v1383_v20  ;;  %1835 = vrot.lane.b32.xlu0 %v1834_v41, %s2105_s9  ;;  %v1826_v60 = vpop.permute.xlu0 %1825 }
 0x4c6   :  { %v1828_v57 = vunpack.i.h.bf16 %v1826_v60  ;;  %v1827_v49 = vunpack.i.l.bf16 %v1826_v60 }
 0x4c7   :  { %1840 = vrot.lane.b32.xlu1 %v1839_v46, %s2106_s30 }
 0x4ca   :  { %v1364_v32 = vpop.f32.mrf.mxu2 }
 0x4cc   :  { %v1406_v43 = vpop.f32.mrf.mxu0 }
 0x4cd   :  { %v1821_v40 = vpop.permute.xlu1 %1820 }
 0x4ce   :  { %v1425_v30 = vpop.f32.mrf.mxu1  ;;  %v1823_v12 = vunpack.i.h.bf16 %v1821_v40  ;;  %v1822_v31 = vunpack.i.l.bf16 %v1821_v40 }
 0x4d0   :  { %v1549_v62 = vsel %vm190_vm1, %v2710_v6, %v1823_v12  ;;  %v1548_v19 = vsel %vm190_vm1, %v2695_v61, %v1822_v31  ;;  %vm1558_vm1 = vcmask 162816  }
 0x4d1   :  { %v1550_v22 = vsel %vm570_vm2, %v1548_v19, %v1827_v49  ;;  %v1551_v38 = vsel %vm570_vm2, %v1549_v62, %v1828_v57  ;;  %vm1608_vm2 = vcmask 1041409  }
 0x4d2   :  { %v1446_v11 = vpop.f32.mrf.mxu2 }
 0x4d3   :  { %v1844_v52 = vpack.i.bf16 %v1446_v11, %v1425_v30 }
 0x4d4   :  { %v1488_v26 = vpop.f32.mrf.mxu0 }
 0x4d5   :  { %1845 = vrot.lane.b32.xlu0 %v1844_v52, %s2107_s18 }
 0x4d6   :  { %v1427_v1 = vpop.f32.mrf.mxu1 }
 0x4d7   :  { %v1467_v59 = vpop.f32.mrf.mxu3 }
 0x4d8   :  { %v1849_v37 = vpack.i.bf16 %v1488_v26, %v1467_v59 }
 0x4da   :  { %v1448_v33 = vpop.f32.mrf.mxu2  ;;  %1850 = vrot.lane.b32.xlu2 %v1849_v37, %s2108_s2 }
 0x4dc   :  { %v1490_v58 = vpop.f32.mrf.mxu0 }
 0x4dd   :  { %v1831_v14 = vpop.permute.xlu1 %1830 }
 0x4de   :  { %v1833_v48 = vunpack.i.h.bf16 %v1831_v14  ;;  %v1832_v36 = vunpack.i.l.bf16 %v1831_v14 }
 0x4df   :  { %v1469_v44 = vpop.f32.mrf.mxu3 }
 0x4e0   :  { %v1554_v4 = vsel %vm1552_vm3, %v1551_v38, %v1833_v48  ;;  %v1553_v8 = vsel %vm1552_vm3, %v1550_v22, %v1832_v36 }
 0x534   :  { %v1851_v6 = vpop.permute.xlu2 %1850 }
 0x535   :  { %v1853_v63 = vunpack.i.h.bf16 %v1851_v6  ;;  %v1852_v47 = vunpack.i.l.bf16 %v1851_v6 }
 0x537   :  { %v1836_v7 = vpop.permute.xlu0 %1835 }
 0x538   :  { %v1838_v16 = vunpack.i.h.bf16 %v1836_v7  ;;  %v1837_v5 = vunpack.i.l.bf16 %v1836_v7 }
 0x539   :  { %v1841_v10 = vpop.permute.xlu1 %1840 }
 0x53a   :  { %v1843_v55 = vunpack.i.h.bf16 %v1841_v10  ;;  %v1842_v54 = vunpack.i.l.bf16 %v1841_v10  ;;  %v1556_v17 = vsel %vm1555_vm8, %v1553_v8, %v1837_v5  ;;  %v1557_v3 = vsel %vm1555_vm8, %v1554_v4, %v1838_v16 }
 0x53c   :  { %v1560_v27 = vsel %vm1558_vm1, %v1557_v3, %v1843_v55  ;;  %v1559_v13 = vsel %vm1558_vm1, %v1556_v17, %v1842_v54 }
 0x547   :  { %v1846_v61 = vpop.permute.xlu0 %1845 }
 0x548   :  { %v1848_v21 = vunpack.i.h.bf16 %v1846_v61  ;;  %v1847_v51 = vunpack.i.l.bf16 %v1846_v61 }
 0x54a   :  { %v1563_v42 = vsel %vm1561_vm9, %v1560_v27, %v1848_v21  ;;  %v1562_v0 = vsel %vm1561_vm9, %v1559_v13, %v1847_v51 }
 0x54b   :  { %v1565_v23 = vsel %vm1564_vm10, %v1562_v0, %v1852_v47  ;;  %v1566_v18 = vsel %vm1564_vm10, %v1563_v42, %v1853_v63 }
 0x54c   :  { %v1567_v28 = vpack.c.bf16 %v1566_v18, %v1565_v23 }
 0x54e   :  { %1733 = vmatmul.msk.bf16.vlgmr.msra.gmra.mxu1 %vm107_vm0, %v1567_v28 }
 0x5cb   :  { %v1600_v9 = vpop.f32.mrf.mxu1 }
 0x5cc   :  { %v1601_v34 = vadd.f32 %v1862_v45, %v1600_v9 }
 0x5ce   :  { %v1611_v50 = vrot.slane %v1601_v34, 1  ;;  %v1638_v2 = vrot.slane %v1601_v34, 6  ;;  %v1632_v29 = vrot.slane %v1601_v34, 5  ;;  %v1628_v43 = vrot.slane %v1601_v34, 4 }
 0x5cf   :  { %v1622_v26 = vrot.slane %v1601_v34, 3  ;;  %v1644_v33 = vrot.slane %v1601_v34, 7  ;;  %v1616_v58 = vrot.slane %v1601_v34, 2 }
 0x5d3   :  { %v1602_v25 = vpop.f32.mrf.mxu1 }
 0x5d4   :  { %v1603_v15 = vadd.f32 %v1862_v45, %v1602_v25 }
 0x5d6   :  { %v1612_v35 = vsel %vm1608_vm2, %v1603_v15, %v1611_v50  ;;  %v1639_v20 = vrot.slane %v1603_v15, 5  ;;  %v1633_v56 = vrot.slane %v1603_v15, 4  ;;  %v1607_v41 = vrot.slane %v1603_v15, 7 }
 0x5d7   :  { %1613 = vrot.lane.b32.xlu2 %v1612_v35, %s2109_s20  ;;  %v1629_v24 = vrot.slane %v1603_v15, 3  ;;  %v1623_v11 = vrot.slane %v1603_v15, 2  ;;  %v1645_v1 = vrot.slane %v1603_v15, 6  ;;  %v1617_v59 = vrot.slane %v1603_v15, 1 }
 0x5d8   :  { %v1640_v46 = vsel %vm1608_vm2, %v1639_v20, %v1638_v2  ;;  %v1634_v32 = vsel %vm1608_vm2, %v1633_v56, %v1632_v29  ;;  %v1609_v30 = vsel %vm1608_vm2, %v1607_v41, %v1601_v34 }
 0x5d9   :  { %1641 = vrot.lane.b32.xlu0 %v1640_v46, %s2088_s29  ;;  %1635 = vrot.lane.b32.xlu1 %v1634_v32, %s2109_s20  ;;  %v1630_v52 = vsel %vm1608_vm2, %v1629_v24, %v1628_v43  ;;  %v1624_v37 = vsel %vm1608_vm2, %v1623_v11, %v1622_v26  ;;  %v1646_v44 = vsel %vm1608_vm2, %v1645_v1, %v1644_v33 }
 0x5da   :  { %v1618_v39 = vsel %vm1608_vm2, %v1617_v59, %v1616_v58 }
 0x5df   :  { %1625 = vrot.lane.b32.xlu2 %v1624_v37, %s2099_s21 }
 0x5e1   :  { %1647 = vrot.lane.b32.xlu1 %v1646_v44, %s2099_s21  ;;  %1619 = vrot.lane.b32.xlu0 %v1618_v39, %s2088_s29  ;;  %s1672_s21 = sshll.u32 %s2812_s6, 4  ;;  %s1673_s21 = int_to_ptr.hbm [resolvable:$true] %s1672_s21 }
 0x631   :  { %v1614_v53 = vpop.permute.xlu2 %1613 }
 0x632   :  { %v1650_v12 = vsel %vm107_vm0, %v1609_v30, %v1614_v53 }
 0x639   :  { %v1626_v19 = vpop.permute.xlu2 %1625 }
 0x64b   :  { %v1642_v40 = vpop.permute.xlu0 %1641  ;;  %v1636_v60 = vpop.permute.xlu1 %1635 }
 0x64c   :  { %v1655_v14 = vsel %vm107_vm0, %v1630_v52, %v1636_v60 }
 0x64d   :  { %v1656_v7 = vsel %vm1651_vm11, %v1655_v14, %v1642_v40 }
 0x653   :  { %v1648_v31 = vpop.permute.xlu1 %1647  ;;  %v1620_v62 = vpop.permute.xlu0 %1619 }
 0x654   :  { %v1657_v48 = vsel %vm1653_vm12, %v1656_v7, %v1648_v31  ;;  %v1652_v36 = vsel %vm1651_vm11, %v1650_v12, %v1620_v62 }
 0x655   :  { %v1660_v57 = vrot.slane %v1657_v48, 6  ;;  %v1654_v49 = vsel %vm1653_vm12, %v1652_v36, %v1626_v19 }
 0x657   :  { %v1662_v16 = vsel %vm1661_vm13, %v1654_v49, %v1660_v57 }
 0x658   :  { %1664 = vst [vmem:[#allocation10] sm:$0xf] %v1662_v16 }
 0x659   :  { %1675 = dma.vmem_to_hbm [thread:$0]  %s1671_s22, 64, %s1673_s21, [#allocation4]  }
 0x65a   :  { %2085 = dma.done.wait [#allocation4], 64  }
 0x65b   :  { %2086 = vsyncadd [#allocation4], 4294967232 }
 0x65c   :  { %1680 = vsyncpa [#allocation3], 1 }
 0x65d   :  { %1681 = vsyncpa [#allocation6], 1 }
 0x65e   :  { %1682 = vsyncpa [#allocation9], 1 }
 0x65f   :  { %1683 = vsyncpa [#allocation4], 1 }

</bundles_post_ra>
